<compile_context>
chip_gen: v7x
topology: tpu7x:2x2x1
jax: 0.10.0
libtpu: 0.0.40
codegen_flags: <defaults>
</compile_context>

<pallas_src>
import functools
import math

import jax
import jax.numpy as jnp
from jax import lax
from jax.experimental import pallas as pl
from jax.experimental.pallas import tpu as pltpu


# ----------------------------------------------------------------------------
# Fused Pallas kernel: whole decode_module forward, one image per grid step
# ----------------------------------------------------------------------------
def _fused_decode_kernel(
        lung_ref, inf_ref,            # (1, Cin, HW) f32 activations
        m1_ref, m5_ref,               # (9, HW) f32 tap-validity masks (d=1, d=5)
        rcw_ref, rcsb_ref,            # (Cout, 9*Cin) bf16, (Cout, 2) f32
        icw_ref, icsb_ref,            # (Cout, 9*Cin) bf16, (Cout, 2) f32
        regw_ref, regsb_ref,          # (8, 9*Cout) bf16 (row 0 live), (8, 2) f32
        a1w_ref, a1sb_ref,            # (Cout, 9*Cout) bf16, (Cout, 2) f32
        a3w_ref, a3sb_ref,            # (Cout, 9*Cout) bf16, (Cout, 2) f32
        fusw_ref, fussb_ref,          # (8, 18*Cout) bf16 (row 0 live), (8, 2) f32
        lung2_ref, fed_ref,           # outputs: (1, Cout, HW) f32
        padbuf_ref, col_ref,          # scratch: (Cmax, 2*pad+HW) f32, (18*Cout, HW) f32
        *, H, W, cin, cout, pad):
    HW = H * W

    # Zero the flat padded-row buffer once per image.  Only the interior
    # [pad, pad+HW) is ever written afterwards, so out-of-image taps read 0.
    padbuf_ref[...] = jnp.zeros_like(padbuf_ref)

    def build_cols(x, c, d, m_ref, base):
        """Realize the 9 dilation-d taps of x (c, HW) once into im2col rows
        [base, base + 9*c) of col_ref."""
        padbuf_ref[0:c, pad:pad + HW] = x
        t = 0
        for kh in range(3):
            for kw in range(3):
                s = (kh - 1) * d * W + (kw - 1) * d       # flat shift of this tap
                win = padbuf_ref[0:c, pad + s:pad + s + HW]   # (c, HW) shifted window
                col_ref[base + t * c:base + (t + 1) * c, :] = win * m_ref[t:t + 1, :]
                t += 1

    def conv(k, w_ref, sb_ref, act):
        """One 3x3 conv as a single (M, k) @ (k, HW) MXU matmul (bf16 operands,
        f32 accumulation) + folded-BN affine + activation (f32 epilogue)."""
        acc = jnp.dot(w_ref[...], col_ref[0:k, :].astype(jnp.bfloat16),
                      preferred_element_type=jnp.float32)
        y = acc * sb_ref[:, 0:1] + sb_ref[:, 1:2]
        if act == "relu":
            y = jnp.maximum(y, 0.0)
        elif act == "sigmoid":
            y = jax.nn.sigmoid(y)
        return y                                            # (M, HW) f32

    lung = lung_ref[0]                                      # (Cin, HW)
    infx = inf_ref[0]

    # convblock regionconv1 / infconv1 (conv + folded BN + ReLU)
    build_cols(lung, cin, 1, m1_ref, 0)
    lung2 = conv(9 * cin, rcw_ref, rcsb_ref, "relu")        # (Cout, HW)
    lung2_ref[...] = lung2.reshape(1, cout, HW).astype(lung2_ref.dtype)

    build_cols(infx, cin, 1, m1_ref, 0)
    inf2 = conv(9 * cin, icw_ref, icsb_ref, "relu")         # (Cout, HW)

    # regionattention: regconv + sigmoid gate (never leaves VMEM)
    build_cols(lung2, cout, 1, m1_ref, 0)
    lung_att = conv(9 * cout, regw_ref, regsb_ref, "sigmoid")[0:1, :]   # (1, HW)
    att_inf = lung_att * inf2                                           # (Cout, HW)

    # attconv1 (dilation 1) and attconv3+attbn2 (dilation 5, reused for branch 3)
    build_cols(att_inf, cout, 1, m1_ref, 0)
    att1 = conv(9 * cout, a1w_ref, a1sb_ref, "relu")
    build_cols(att_inf, cout, 5, m5_ref, 0)
    att2 = conv(9 * cout, a3w_ref, a3sb_ref, "relu")

    # fusion conv over cat(att1, att2, att2): concat eliminated algebraically,
    # one K = 18*Cout matmul over the stacked im2col of att1 and att2.
    build_cols(att1, cout, 1, m1_ref, 0)
    build_cols(att2, cout, 1, m1_ref, 9 * cout)
    att_map = conv(18 * cout, fusw_ref, fussb_ref, "none")[0:1, :]      # (1, HW)

    fed_ref[...] = (att_map * inf2).reshape(1, cout, HW).astype(fed_ref.dtype)


# ----------------------------------------------------------------------------
# Host-side parameter / constant preparation
# ----------------------------------------------------------------------------
def _w_to_mat(w):
    """(3, 3, Cin, Cout) HWIO -> (Cout, 9*Cin); column index = (kh*3+kw)*Cin + ci."""
    kh, kw, ci, co = w.shape
    return jnp.transpose(w.reshape(kh * kw, ci, co), (2, 0, 1)).reshape(co, kh * kw * ci)


def _pad_rows(a, rows):
    """Zero-pad the leading (row) dim to `rows` (avoids M=1 matmuls on the MXU)."""
    extra = rows - a.shape[0]
    if extra <= 0:
        return a
    return jnp.concatenate([a, jnp.zeros((extra,) + a.shape[1:], a.dtype)], axis=0)


def _sb(scale, bias, rows=None):
    sb = jnp.stack([scale.astype(jnp.float32), bias.astype(jnp.float32)], axis=1)
    return sb if rows is None else _pad_rows(sb, rows)


def _prep_kernel_params(p, cin, cout):
    fus = p["fus_w"]                                      # (3, 3, 3*cout, 1)
    fus_mat = jnp.concatenate(
        [_w_to_mat(fus[:, :, :cout, :]),
         _w_to_mat(fus[:, :, cout:2 * cout, :] + fus[:, :, 2 * cout:, :])],
        axis=1)                                           # (1, 18*cout)
    bf = jnp.bfloat16
    return dict(
        rc_w=_w_to_mat(p["rc_w"]).astype(bf), rc_sb=_sb(p["rc_scale"], p["rc_bias"]),
        ic_w=_w_to_mat(p["ic_w"]).astype(bf), ic_sb=_sb(p["ic_scale"], p["ic_bias"]),
        reg_w=_pad_rows(_w_to_mat(p["reg_w"]), 8).astype(bf),
        reg_sb=_sb(p["reg_scale"], p["reg_bias"], rows=8),
        a1_w=_w_to_mat(p["a1_w"]).astype(bf), a1_sb=_sb(p["a1_scale"], p["a1_bias"]),
        a3_w=_w_to_mat(p["a3_w"]).astype(bf), a3_sb=_sb(p["a3_scale"], p["a3_bias"]),
        fus_w=_pad_rows(fus_mat, 8).astype(bf),
        fus_sb=_sb(p["fus_scale"], p["fus_bias"], rows=8),
    )


def _make_masks(H, W, d):
    """(9, H*W) f32: 1 where the dilation-d tap reads an in-image pixel."""
    idx = jnp.arange(H * W, dtype=jnp.int32)
    hh, ww = idx // W, idx % W
    rows = []
    for kh in range(3):
        for kw in range(3):
            dh, dw = (kh - 1) * d, (kw - 1) * d
            ok = ((hh + dh >= 0) & (hh + dh < H) & (ww + dw >= 0) & (ww + dw < W))
            rows.append(ok.astype(jnp.float32))
    return jnp.stack(rows, axis=0)


# ----------------------------------------------------------------------------
# decode_module forward (single fused pallas_call)
# ----------------------------------------------------------------------------
def decode_module_forward(p, lung_flow, infection_flow):
    """lung_flow / infection_flow: (N, Cin, H, W) f32 (NCHW, PyTorch layout)."""
    N, Cin, H, W = lung_flow.shape
    Cout = p["rc_w"].shape[-1]
    HW = H * W
    PAD = ((5 * (W + 1) + 127) // 128) * 128          # covers |shift| <= 5*W + 5
    PADW = 2 * PAD + HW

    kp = _prep_kernel_params(p, Cin, Cout)
    m1 = _make_masks(H, W, 1)
    m5 = _make_masks(H, W, 5)

    lung = lung_flow.reshape(N, Cin, HW)              # free reshape, no pad/copy
    infx = infection_flow.reshape(N, Cin, HW)

    kernel = functools.partial(_fused_decode_kernel,
                               H=H, W=W, cin=Cin, cout=Cout, pad=PAD)

    def bcast(shape):                                  # whole-array, loaded once
        return pl.BlockSpec(shape, lambda n: tuple(0 for _ in shape))

    lung2, fed = pl.pallas_call(
        kernel,
        out_shape=(jax.ShapeDtypeStruct((N, Cout, HW), jnp.float32),
                   jax.ShapeDtypeStruct((N, Cout, HW), jnp.float32)),
        grid=(N,),
        in_specs=[
            pl.BlockSpec((1, Cin, HW), lambda n: (n, 0, 0)),
            pl.BlockSpec((1, Cin, HW), lambda n: (n, 0, 0)),
            bcast(m1.shape), bcast(m5.shape),
            bcast(kp["rc_w"].shape), bcast(kp["rc_sb"].shape),
            bcast(kp["ic_w"].shape), bcast(kp["ic_sb"].shape),
            bcast(kp["reg_w"].shape), bcast(kp["reg_sb"].shape),
            bcast(kp["a1_w"].shape), bcast(kp["a1_sb"].shape),
            bcast(kp["a3_w"].shape), bcast(kp["a3_sb"].shape),
            bcast(kp["fus_w"].shape), bcast(kp["fus_sb"].shape),
        ],
        out_specs=(
            pl.BlockSpec((1, Cout, HW), lambda n: (n, 0, 0)),
            pl.BlockSpec((1, Cout, HW), lambda n: (n, 0, 0)),
        ),
        scratch_shapes=[
            pltpu.VMEM((max(Cin, Cout), PADW), jnp.float32),      # padded flat rows
            pltpu.VMEM((max(9 * Cin, 18 * Cout), HW), jnp.float32),  # im2col
        ],
        compiler_params=pltpu.CompilerParams(
            dimension_semantics=("parallel",),        # megacore batch sharding (v7x)
            vmem_limit_bytes=32 * 1024 * 1024),
    )(lung, infx, m1, m5,
      kp["rc_w"], kp["rc_sb"], kp["ic_w"], kp["ic_sb"],
      kp["reg_w"], kp["reg_sb"], kp["a1_w"], kp["a1_sb"],
      kp["a3_w"], kp["a3_sb"], kp["fus_w"], kp["fus_sb"])

    return lung2.reshape(N, Cout, H, W), fed.reshape(N, Cout, H, W)


# ----------------------------------------------------------------------------
# Parameter construction (deterministic, synthetic)
# ----------------------------------------------------------------------------
_EPS = 1e-5


def _fold_bn(gamma, beta, mean, var, conv_bias):
    scale = gamma / jnp.sqrt(var + _EPS)
    bias = beta + scale * (conv_bias - mean)
    return scale, bias


def init_params(key, cin, cout):
    ks = iter(jax.random.split(key, 32))

    def conv_w(ci, co):
        return jax.random.normal(next(ks), (3, 3, ci, co),
                                 jnp.float32) / math.sqrt(9 * ci)

    def conv_b(co):
        return 0.05 * jax.random.normal(next(ks), (co,), jnp.float32)

    def bn(co):
        gamma = 1.0 + 0.1 * jax.random.normal(next(ks), (co,), jnp.float32)
        beta = 0.1 * jax.random.normal(next(ks), (co,), jnp.float32)
        mean = 0.1 * jax.random.normal(next(ks), (co,), jnp.float32)
        var = 1.0 + 0.1 * jnp.abs(jax.random.normal(next(ks), (co,), jnp.float32))
        return gamma, beta, mean, var

    p = {}
    w, b = conv_w(cin, cout), conv_b(cout)              # convblock regionconv1
    s, bb = _fold_bn(*bn(cout), b)
    p["rc_w"], p["rc_scale"], p["rc_bias"] = w, s, bb
    w, b = conv_w(cin, cout), conv_b(cout)              # convblock infconv1
    s, bb = _fold_bn(*bn(cout), b)
    p["ic_w"], p["ic_scale"], p["ic_bias"] = w, s, bb
    p["reg_w"], p["reg_bias"] = conv_w(cout, 1), conv_b(1)   # regconv (+sigmoid)
    p["reg_scale"] = jnp.ones((1,), jnp.float32)
    w, b = conv_w(cout, cout), conv_b(cout)             # attconv1 + attbn1 (d=1)
    s, bb = _fold_bn(*bn(cout), b)
    p["a1_w"], p["a1_scale"], p["a1_bias"] = w, s, bb
    w, b = conv_w(cout, cout), conv_b(cout)             # attconv3 + attbn2 (d=5)
    s, bb = _fold_bn(*bn(cout), b)
    p["a3_w"], p["a3_scale"], p["a3_bias"] = w, s, bb
    p["fus_w"], p["fus_bias"] = conv_w(3 * cout, 1), conv_b(1)  # fusionconv
    p["fus_scale"] = jnp.ones((1,), jnp.float32)
    # attconv2 / attbn3 / fusionsig exist in the PyTorch __init__ but are never
    # used in forward(); intentionally omitted.
    return p


# ----------------------------------------------------------------------------
# Pure-JAX reference (precision-matched: bf16 operands, f32 accumulation)
# ----------------------------------------------------------------------------
def _ref_conv(x, w, scale, bias, dilation, act):
    d = dilation
    y = lax.conv_general_dilated(
        x.astype(jnp.bfloat16), w.astype(jnp.bfloat16),
        window_strides=(1, 1), padding=[(d, d), (d, d)],
        rhs_dilation=(d, d), dimension_numbers=("NCHW", "HWIO", "NCHW"),
        preferred_element_type=jnp.float32)
    y = y * scale.reshape(1, -1, 1, 1) + bias.reshape(1, -1, 1, 1)
    if act == "relu":
        y = jnp.maximum(y, 0.0)
    elif act == "sigmoid":
        y = jax.nn.sigmoid(y)
    return y


def _ref_forward(p, lung, inf):
    lung2 = _ref_conv(lung, p["rc_w"], p["rc_scale"], p["rc_bias"], 1, "relu")
    inf2 = _ref_conv(inf, p["ic_w"], p["ic_scale"], p["ic_bias"], 1, "relu")
    lung_att = _ref_conv(lung2, p["reg_w"], p["reg_scale"], p["reg_bias"], 1, "sigmoid")
    a = lung_att * inf2
    att1 = _ref_conv(a, p["a1_w"], p["a1_scale"], p["a1_bias"], 1, "relu")
    att2 = _ref_conv(a, p["a3_w"], p["a3_scale"], p["a3_bias"], 5, "relu")
    fusion = jnp.concatenate([att1, att2, att2], axis=1)
    att_map = _ref_conv(fusion, p["fus_w"], p["fus_scale"], p["fus_bias"], 1, "none")
    return lung2, att_map * inf2


# ----------------------------------------------------------------------------
if __name__ == "__main__":
    N, Cin, Cout, H, W = 2, 4, 8, 16, 16

    kparam, kdata = jax.random.split(jax.random.PRNGKey(0))
    params = init_params(kparam, Cin, Cout)
    k1, k2 = jax.random.split(kdata)
    lung_flow = jax.random.normal(k1, (N, Cin, H, W), jnp.float32)
    infection_flow = jax.random.normal(k2, (N, Cin, H, W), jnp.float32)

    fwd = jax.jit(decode_module_forward)
    lung2, fed = fwd(params, lung_flow, infection_flow)
    jax.block_until_ready((lung2, fed))

    lung2_ref, fed_ref = _ref_forward(params, lung_flow, infection_flow)
    assert lung2.shape == (N, Cout, H, W) and fed.shape == (N, Cout, H, W)
    err1 = float(jnp.max(jnp.abs(lung2 - lung2_ref)))
    err2 = float(jnp.max(jnp.abs(fed - fed_ref)))
    assert jnp.allclose(lung2, lung2_ref, atol=2e-3, rtol=2e-3), err1
    # fusion weights are pre-added (concat eliminated), so allow a slightly
    # looser bf16-level tolerance on the final gated output.
    assert jnp.allclose(fed, fed_ref, atol=2e-2, rtol=2e-2), err2

    print("KERNEL_OK")
</pallas_src>

<mosaic_0001>
module attributes {stable_mosaic.version = 11 : i64} {
  func.func @_fused_decode_kernel(%arg0: i32, %arg1: memref<1x4x256xf32, #tpu.memory_space<vmem>>, %arg2: memref<1x4x256xf32, #tpu.memory_space<vmem>>, %arg3: memref<9x256xf32, #tpu.memory_space<vmem>>, %arg4: memref<9x256xf32, #tpu.memory_space<vmem>>, %arg5: memref<8x36xbf16, #tpu.memory_space<vmem>>, %arg6: memref<8x2xf32, #tpu.memory_space<vmem>>, %arg7: memref<8x36xbf16, #tpu.memory_space<vmem>>, %arg8: memref<8x2xf32, #tpu.memory_space<vmem>>, %arg9: memref<8x72xbf16, #tpu.memory_space<vmem>>, %arg10: memref<8x2xf32, #tpu.memory_space<vmem>>, %arg11: memref<8x72xbf16, #tpu.memory_space<vmem>>, %arg12: memref<8x2xf32, #tpu.memory_space<vmem>>, %arg13: memref<8x72xbf16, #tpu.memory_space<vmem>>, %arg14: memref<8x2xf32, #tpu.memory_space<vmem>>, %arg15: memref<8x144xbf16, #tpu.memory_space<vmem>>, %arg16: memref<8x2xf32, #tpu.memory_space<vmem>>, %arg17: memref<1x8x256xf32, #tpu.memory_space<vmem>>, %arg18: memref<1x8x256xf32, #tpu.memory_space<vmem>>, %arg19: memref<8x512xf32, #tpu.memory_space<vmem>>, %arg20: memref<144x256xf32, #tpu.memory_space<vmem>>) attributes {dimension_semantics = [#tpu.dimension_semantics<parallel>], iteration_bounds = array<i64: 2>, scalar_prefetch = 0 : i64, scratch_operands = 2 : i64, tpu.core_type = #tpu.core_type<tc>, window_params = [{transform_indices = @transform_0, window_bounds = array<i64: 1, 4, 256>}, {transform_indices = @transform_1, window_bounds = array<i64: 1, 4, 256>}, {pipeline_mode = #tpu.pipeline_mode<synchronous>, transform_indices = @transform_2, window_bounds = array<i64: 9, 256>}, {pipeline_mode = #tpu.pipeline_mode<synchronous>, transform_indices = @transform_3, window_bounds = array<i64: 9, 256>}, {pipeline_mode = #tpu.pipeline_mode<synchronous>, transform_indices = @transform_4, window_bounds = array<i64: 8, 36>}, {pipeline_mode = #tpu.pipeline_mode<synchronous>, transform_indices = @transform_5, window_bounds = array<i64: 8, 2>}, {pipeline_mode = #tpu.pipeline_mode<synchronous>, transform_indices = @transform_6, window_bounds = array<i64: 8, 36>}, {pipeline_mode = #tpu.pipeline_mode<synchronous>, transform_indices = @transform_7, window_bounds = array<i64: 8, 2>}, {pipeline_mode = #tpu.pipeline_mode<synchronous>, transform_indices = @transform_8, window_bounds = array<i64: 8, 72>}, {pipeline_mode = #tpu.pipeline_mode<synchronous>, transform_indices = @transform_9, window_bounds = array<i64: 8, 2>}, {pipeline_mode = #tpu.pipeline_mode<synchronous>, transform_indices = @transform_10, window_bounds = array<i64: 8, 72>}, {pipeline_mode = #tpu.pipeline_mode<synchronous>, transform_indices = @transform_11, window_bounds = array<i64: 8, 2>}, {pipeline_mode = #tpu.pipeline_mode<synchronous>, transform_indices = @transform_12, window_bounds = array<i64: 8, 72>}, {pipeline_mode = #tpu.pipeline_mode<synchronous>, transform_indices = @transform_13, window_bounds = array<i64: 8, 2>}, {pipeline_mode = #tpu.pipeline_mode<synchronous>, transform_indices = @transform_14, window_bounds = array<i64: 8, 144>}, {pipeline_mode = #tpu.pipeline_mode<synchronous>, transform_indices = @transform_15, window_bounds = array<i64: 8, 2>}, {transform_indices = @transform_16, window_bounds = array<i64: 1, 8, 256>}, {transform_indices = @transform_17, window_bounds = array<i64: 1, 8, 256>}]} {
    %cst = arith.constant 0.000000e+00 : f32
    %0 = vector.broadcast %cst : f32 to vector<8x512xf32>
    %c0 = arith.constant 0 : index
    %c0_0 = arith.constant 0 : index
    %1 = vector.load %arg19[%c0, %c0_0] : memref<8x512xf32, #tpu.memory_space<vmem>>, vector<8x512xf32>
    tpu.vector_store %arg19[%c0, %c0_0], %0 {strides = array<i32>} : memref<8x512xf32, #tpu.memory_space<vmem>>, vector<8x512xf32>,
    %c0_1 = arith.constant 0 : index
    %c0_2 = arith.constant 0 : index
    %c0_3 = arith.constant 0 : index
    %2 = vector.load %arg1[%c0_1, %c0_2, %c0_3] : memref<1x4x256xf32, #tpu.memory_space<vmem>>, vector<1x4x256xf32>
    %3 = vector.shape_cast %2 : vector<1x4x256xf32> to vector<4x256xf32>
    %c0_4 = arith.constant 0 : index
    %c0_5 = arith.constant 0 : index
    %c0_6 = arith.constant 0 : index
    %4 = vector.load %arg2[%c0_4, %c0_5, %c0_6] : memref<1x4x256xf32, #tpu.memory_space<vmem>>, vector<1x4x256xf32>
    %5 = vector.shape_cast %4 : vector<1x4x256xf32> to vector<4x256xf32>
    %c0_7 = arith.constant 0 : index
    %c128 = arith.constant 128 : index
    %6 = vector.load %arg19[%c0_7, %c128] : memref<8x512xf32, #tpu.memory_space<vmem>>, vector<4x256xf32>
    tpu.vector_store %arg19[%c0_7, %c128], %3 {strides = array<i32>} : memref<8x512xf32, #tpu.memory_space<vmem>>, vector<4x256xf32>,
    %c0_8 = arith.constant 0 : index
    %c111 = arith.constant 111 : index
    %7 = vector.load %arg19[%c0_8, %c111] : memref<8x512xf32, #tpu.memory_space<vmem>>, vector<4x256xf32>
    %c0_9 = arith.constant 0 : index
    %c0_10 = arith.constant 0 : index
    %8 = vector.load %arg3[%c0_9, %c0_10] : memref<9x256xf32, #tpu.memory_space<vmem>>, vector<1x256xf32>
    %9 = vector.broadcast %8 : vector<1x256xf32> to vector<4x256xf32>
    %10 = arith.mulf %7, %9 : vector<4x256xf32>
    %c0_11 = arith.constant 0 : index
    %c0_12 = arith.constant 0 : index
    %11 = vector.load %arg20[%c0_11, %c0_12] : memref<144x256xf32, #tpu.memory_space<vmem>>, vector<4x256xf32>
    tpu.vector_store %arg20[%c0_11, %c0_12], %10 {strides = array<i32>} : memref<144x256xf32, #tpu.memory_space<vmem>>, vector<4x256xf32>,
    %c0_13 = arith.constant 0 : index
    %c112 = arith.constant 112 : index
    %12 = vector.load %arg19[%c0_13, %c112] : memref<8x512xf32, #tpu.memory_space<vmem>>, vector<4x256xf32>
    %c1 = arith.constant 1 : index
    %c0_14 = arith.constant 0 : index
    %13 = vector.load %arg3[%c1, %c0_14] : memref<9x256xf32, #tpu.memory_space<vmem>>, vector<1x256xf32>
    %14 = vector.broadcast %13 : vector<1x256xf32> to vector<4x256xf32>
    %15 = arith.mulf %12, %14 : vector<4x256xf32>
    %c4 = arith.constant 4 : index
    %c0_15 = arith.constant 0 : index
    %16 = vector.load %arg20[%c4, %c0_15] : memref<144x256xf32, #tpu.memory_space<vmem>>, vector<4x256xf32>
    tpu.vector_store %arg20[%c4, %c0_15], %15 {strides = array<i32>} : memref<144x256xf32, #tpu.memory_space<vmem>>, vector<4x256xf32>,
    %c0_16 = arith.constant 0 : index
    %c113 = arith.constant 113 : index
    %17 = vector.load %arg19[%c0_16, %c113] : memref<8x512xf32, #tpu.memory_space<vmem>>, vector<4x256xf32>
    %c2 = arith.constant 2 : index
    %c0_17 = arith.constant 0 : index
    %18 = vector.load %arg3[%c2, %c0_17] : memref<9x256xf32, #tpu.memory_space<vmem>>, vector<1x256xf32>
    %19 = vector.broadcast %18 : vector<1x256xf32> to vector<4x256xf32>
    %20 = arith.mulf %17, %19 : vector<4x256xf32>
    %c8 = arith.constant 8 : index
    %c0_18 = arith.constant 0 : index
    %21 = vector.load %arg20[%c8, %c0_18] : memref<144x256xf32, #tpu.memory_space<vmem>>, vector<4x256xf32>
    tpu.vector_store %arg20[%c8, %c0_18], %20 {strides = array<i32>} : memref<144x256xf32, #tpu.memory_space<vmem>>, vector<4x256xf32>,
    %c0_19 = arith.constant 0 : index
    %c127 = arith.constant 127 : index
    %22 = vector.load %arg19[%c0_19, %c127] : memref<8x512xf32, #tpu.memory_space<vmem>>, vector<4x256xf32>
    %c3 = arith.constant 3 : index
    %c0_20 = arith.constant 0 : index
    %23 = vector.load %arg3[%c3, %c0_20] : memref<9x256xf32, #tpu.memory_space<vmem>>, vector<1x256xf32>
    %24 = vector.broadcast %23 : vector<1x256xf32> to vector<4x256xf32>
    %25 = arith.mulf %22, %24 : vector<4x256xf32>
    %c12 = arith.constant 12 : index
    %c0_21 = arith.constant 0 : index
    %26 = vector.load %arg20[%c12, %c0_21] : memref<144x256xf32, #tpu.memory_space<vmem>>, vector<4x256xf32>
    tpu.vector_store %arg20[%c12, %c0_21], %25 {strides = array<i32>} : memref<144x256xf32, #tpu.memory_space<vmem>>, vector<4x256xf32>,
    %c0_22 = arith.constant 0 : index
    %c128_23 = arith.constant 128 : index
    %27 = vector.load %arg19[%c0_22, %c128_23] : memref<8x512xf32, #tpu.memory_space<vmem>>, vector<4x256xf32>
    %c4_24 = arith.constant 4 : index
    %c0_25 = arith.constant 0 : index
    %28 = vector.load %arg3[%c4_24, %c0_25] : memref<9x256xf32, #tpu.memory_space<vmem>>, vector<1x256xf32>
    %29 = vector.broadcast %28 : vector<1x256xf32> to vector<4x256xf32>
    %30 = arith.mulf %27, %29 : vector<4x256xf32>
    %c16 = arith.constant 16 : index
    %c0_26 = arith.constant 0 : index
    %31 = vector.load %arg20[%c16, %c0_26] : memref<144x256xf32, #tpu.memory_space<vmem>>, vector<4x256xf32>
    tpu.vector_store %arg20[%c16, %c0_26], %30 {strides = array<i32>} : memref<144x256xf32, #tpu.memory_space<vmem>>, vector<4x256xf32>,
    %c0_27 = arith.constant 0 : index
    %c129 = arith.constant 129 : index
    %32 = vector.load %arg19[%c0_27, %c129] : memref<8x512xf32, #tpu.memory_space<vmem>>, vector<4x256xf32>
    %c5 = arith.constant 5 : index
    %c0_28 = arith.constant 0 : index
    %33 = vector.load %arg3[%c5, %c0_28] : memref<9x256xf32, #tpu.memory_space<vmem>>, vector<1x256xf32>
    %34 = vector.broadcast %33 : vector<1x256xf32> to vector<4x256xf32>
    %35 = arith.mulf %32, %34 : vector<4x256xf32>
    %c20 = arith.constant 20 : index
    %c0_29 = arith.constant 0 : index
    %36 = vector.load %arg20[%c20, %c0_29] : memref<144x256xf32, #tpu.memory_space<vmem>>, vector<4x256xf32>
    tpu.vector_store %arg20[%c20, %c0_29], %35 {strides = array<i32>} : memref<144x256xf32, #tpu.memory_space<vmem>>, vector<4x256xf32>,
    %c0_30 = arith.constant 0 : index
    %c143 = arith.constant 143 : index
    %37 = vector.load %arg19[%c0_30, %c143] : memref<8x512xf32, #tpu.memory_space<vmem>>, vector<4x256xf32>
    %c6 = arith.constant 6 : index
    %c0_31 = arith.constant 0 : index
    %38 = vector.load %arg3[%c6, %c0_31] : memref<9x256xf32, #tpu.memory_space<vmem>>, vector<1x256xf32>
    %39 = vector.broadcast %38 : vector<1x256xf32> to vector<4x256xf32>
    %40 = arith.mulf %37, %39 : vector<4x256xf32>
    %c24 = arith.constant 24 : index
    %c0_32 = arith.constant 0 : index
    %41 = vector.load %arg20[%c24, %c0_32] : memref<144x256xf32, #tpu.memory_space<vmem>>, vector<4x256xf32>
    tpu.vector_store %arg20[%c24, %c0_32], %40 {strides = array<i32>} : memref<144x256xf32, #tpu.memory_space<vmem>>, vector<4x256xf32>,
    %c0_33 = arith.constant 0 : index
    %c144 = arith.constant 144 : index
    %42 = vector.load %arg19[%c0_33, %c144] : memref<8x512xf32, #tpu.memory_space<vmem>>, vector<4x256xf32>
    %c7 = arith.constant 7 : index
    %c0_34 = arith.constant 0 : index
    %43 = vector.load %arg3[%c7, %c0_34] : memref<9x256xf32, #tpu.memory_space<vmem>>, vector<1x256xf32>
    %44 = vector.broadcast %43 : vector<1x256xf32> to vector<4x256xf32>
    %45 = arith.mulf %42, %44 : vector<4x256xf32>
    %c28 = arith.constant 28 : index
    %c0_35 = arith.constant 0 : index
    %46 = vector.load %arg20[%c28, %c0_35] : memref<144x256xf32, #tpu.memory_space<vmem>>, vector<4x256xf32>
    tpu.vector_store %arg20[%c28, %c0_35], %45 {strides = array<i32>} : memref<144x256xf32, #tpu.memory_space<vmem>>, vector<4x256xf32>,
    %c0_36 = arith.constant 0 : index
    %c145 = arith.constant 145 : index
    %47 = vector.load %arg19[%c0_36, %c145] : memref<8x512xf32, #tpu.memory_space<vmem>>, vector<4x256xf32>
    %c8_37 = arith.constant 8 : index
    %c0_38 = arith.constant 0 : index
    %48 = vector.load %arg3[%c8_37, %c0_38] : memref<9x256xf32, #tpu.memory_space<vmem>>, vector<1x256xf32>
    %49 = vector.broadcast %48 : vector<1x256xf32> to vector<4x256xf32>
    %50 = arith.mulf %47, %49 : vector<4x256xf32>
    %c32 = arith.constant 32 : index
    %c0_39 = arith.constant 0 : index
    %51 = vector.load %arg20[%c32, %c0_39] : memref<144x256xf32, #tpu.memory_space<vmem>>, vector<4x256xf32>
    tpu.vector_store %arg20[%c32, %c0_39], %50 {strides = array<i32>} : memref<144x256xf32, #tpu.memory_space<vmem>>, vector<4x256xf32>,
    %c0_40 = arith.constant 0 : index
    %c0_41 = arith.constant 0 : index
    %52 = vector.load %arg5[%c0_40, %c0_41] : memref<8x36xbf16, #tpu.memory_space<vmem>>, vector<8x36xbf16>
    %c0_42 = arith.constant 0 : index
    %c0_43 = arith.constant 0 : index
    %53 = vector.load %arg20[%c0_42, %c0_43] : memref<144x256xf32, #tpu.memory_space<vmem>>, vector<36x256xf32>
    %54 = arith.truncf %53 : vector<36x256xf32> to vector<36x256xbf16>
    %cst_44 = arith.constant dense<0.000000e+00> : vector<8x256xf32>
    %55 = tpu.matmul %52, %54, %cst_44 {dimension_numbers = #tpu.dot_dimension_numbers<[1], [0], [0], [1], [0, 0, 1, 1], [], []>} : vector<8x36xbf16>, vector<36x256xbf16>, vector<8x256xf32> -> vector<8x256xf32>
    %c0_45 = arith.constant 0 : index
    %c0_46 = arith.constant 0 : index
    %56 = vector.load %arg6[%c0_45, %c0_46] : memref<8x2xf32, #tpu.memory_space<vmem>>, vector<8x1xf32>
    %57 = vector.broadcast %56 : vector<8x1xf32> to vector<8x256xf32>
    %58 = arith.mulf %55, %57 : vector<8x256xf32>
    %c0_47 = arith.constant 0 : index
    %c1_48 = arith.constant 1 : index
    %59 = vector.load %arg6[%c0_47, %c1_48] : memref<8x2xf32, #tpu.memory_space<vmem>>, vector<8x1xf32>
    %60 = vector.broadcast %59 : vector<8x1xf32> to vector<8x256xf32>
    %61 = arith.addf %58, %60 : vector<8x256xf32>
    %cst_49 = arith.constant 0.000000e+00 : f32
    %62 = vector.broadcast %cst_49 : f32 to vector<8x256xf32>
    %63 = arith.maximumf %61, %62 : vector<8x256xf32>
    %64 = vector.shape_cast %63 : vector<8x256xf32> to vector<1x8x256xf32>
    %c0_50 = arith.constant 0 : index
    %c0_51 = arith.constant 0 : index
    %c0_52 = arith.constant 0 : index
    %65 = vector.load %arg17[%c0_50, %c0_51, %c0_52] : memref<1x8x256xf32, #tpu.memory_space<vmem>>, vector<1x8x256xf32>
    tpu.vector_store %arg17[%c0_50, %c0_51, %c0_52], %64 {strides = array<i32>} : memref<1x8x256xf32, #tpu.memory_space<vmem>>, vector<1x8x256xf32>,
    %c0_53 = arith.constant 0 : index
    %c128_54 = arith.constant 128 : index
    %66 = vector.load %arg19[%c0_53, %c128_54] : memref<8x512xf32, #tpu.memory_space<vmem>>, vector<4x256xf32>
    tpu.vector_store %arg19[%c0_53, %c128_54], %5 {strides = array<i32>} : memref<8x512xf32, #tpu.memory_space<vmem>>, vector<4x256xf32>,
    %c0_55 = arith.constant 0 : index
    %c111_56 = arith.constant 111 : index
    %67 = vector.load %arg19[%c0_55, %c111_56] : memref<8x512xf32, #tpu.memory_space<vmem>>, vector<4x256xf32>
    %c0_57 = arith.constant 0 : index
    %c0_58 = arith.constant 0 : index
    %68 = vector.load %arg3[%c0_57, %c0_58] : memref<9x256xf32, #tpu.memory_space<vmem>>, vector<1x256xf32>
    %69 = vector.broadcast %68 : vector<1x256xf32> to vector<4x256xf32>
    %70 = arith.mulf %67, %69 : vector<4x256xf32>
    %c0_59 = arith.constant 0 : index
    %c0_60 = arith.constant 0 : index
    %71 = vector.load %arg20[%c0_59, %c0_60] : memref<144x256xf32, #tpu.memory_space<vmem>>, vector<4x256xf32>
    tpu.vector_store %arg20[%c0_59, %c0_60], %70 {strides = array<i32>} : memref<144x256xf32, #tpu.memory_space<vmem>>, vector<4x256xf32>,
    %c0_61 = arith.constant 0 : index
    %c112_62 = arith.constant 112 : index
    %72 = vector.load %arg19[%c0_61, %c112_62] : memref<8x512xf32, #tpu.memory_space<vmem>>, vector<4x256xf32>
    %c1_63 = arith.constant 1 : index
    %c0_64 = arith.constant 0 : index
    %73 = vector.load %arg3[%c1_63, %c0_64] : memref<9x256xf32, #tpu.memory_space<vmem>>, vector<1x256xf32>
    %74 = vector.broadcast %73 : vector<1x256xf32> to vector<4x256xf32>
    %75 = arith.mulf %72, %74 : vector<4x256xf32>
    %c4_65 = arith.constant 4 : index
    %c0_66 = arith.constant 0 : index
    %76 = vector.load %arg20[%c4_65, %c0_66] : memref<144x256xf32, #tpu.memory_space<vmem>>, vector<4x256xf32>
    tpu.vector_store %arg20[%c4_65, %c0_66], %75 {strides = array<i32>} : memref<144x256xf32, #tpu.memory_space<vmem>>, vector<4x256xf32>,
    %c0_67 = arith.constant 0 : index
    %c113_68 = arith.constant 113 : index
    %77 = vector.load %arg19[%c0_67, %c113_68] : memref<8x512xf32, #tpu.memory_space<vmem>>, vector<4x256xf32>
    %c2_69 = arith.constant 2 : index
    %c0_70 = arith.constant 0 : index
    %78 = vector.load %arg3[%c2_69, %c0_70] : memref<9x256xf32, #tpu.memory_space<vmem>>, vector<1x256xf32>
    %79 = vector.broadcast %78 : vector<1x256xf32> to vector<4x256xf32>
    %80 = arith.mulf %77, %79 : vector<4x256xf32>
    %c8_71 = arith.constant 8 : index
    %c0_72 = arith.constant 0 : index
    %81 = vector.load %arg20[%c8_71, %c0_72] : memref<144x256xf32, #tpu.memory_space<vmem>>, vector<4x256xf32>
    tpu.vector_store %arg20[%c8_71, %c0_72], %80 {strides = array<i32>} : memref<144x256xf32, #tpu.memory_space<vmem>>, vector<4x256xf32>,
    %c0_73 = arith.constant 0 : index
    %c127_74 = arith.constant 127 : index
    %82 = vector.load %arg19[%c0_73, %c127_74] : memref<8x512xf32, #tpu.memory_space<vmem>>, vector<4x256xf32>
    %c3_75 = arith.constant 3 : index
    %c0_76 = arith.constant 0 : index
    %83 = vector.load %arg3[%c3_75, %c0_76] : memref<9x256xf32, #tpu.memory_space<vmem>>, vector<1x256xf32>
    %84 = vector.broadcast %83 : vector<1x256xf32> to vector<4x256xf32>
    %85 = arith.mulf %82, %84 : vector<4x256xf32>
    %c12_77 = arith.constant 12 : index
    %c0_78 = arith.constant 0 : index
    %86 = vector.load %arg20[%c12_77, %c0_78] : memref<144x256xf32, #tpu.memory_space<vmem>>, vector<4x256xf32>
    tpu.vector_store %arg20[%c12_77, %c0_78], %85 {strides = array<i32>} : memref<144x256xf32, #tpu.memory_space<vmem>>, vector<4x256xf32>,
    %c0_79 = arith.constant 0 : index
    %c128_80 = arith.constant 128 : index
    %87 = vector.load %arg19[%c0_79, %c128_80] : memref<8x512xf32, #tpu.memory_space<vmem>>, vector<4x256xf32>
    %c4_81 = arith.constant 4 : index
    %c0_82 = arith.constant 0 : index
    %88 = vector.load %arg3[%c4_81, %c0_82] : memref<9x256xf32, #tpu.memory_space<vmem>>, vector<1x256xf32>
    %89 = vector.broadcast %88 : vector<1x256xf32> to vector<4x256xf32>
    %90 = arith.mulf %87, %89 : vector<4x256xf32>
    %c16_83 = arith.constant 16 : index
    %c0_84 = arith.constant 0 : index
    %91 = vector.load %arg20[%c16_83, %c0_84] : memref<144x256xf32, #tpu.memory_space<vmem>>, vector<4x256xf32>
    tpu.vector_store %arg20[%c16_83, %c0_84], %90 {strides = array<i32>} : memref<144x256xf32, #tpu.memory_space<vmem>>, vector<4x256xf32>,
    %c0_85 = arith.constant 0 : index
    %c129_86 = arith.constant 129 : index
    %92 = vector.load %arg19[%c0_85, %c129_86] : memref<8x512xf32, #tpu.memory_space<vmem>>, vector<4x256xf32>
    %c5_87 = arith.constant 5 : index
    %c0_88 = arith.constant 0 : index
    %93 = vector.load %arg3[%c5_87, %c0_88] : memref<9x256xf32, #tpu.memory_space<vmem>>, vector<1x256xf32>
    %94 = vector.broadcast %93 : vector<1x256xf32> to vector<4x256xf32>
    %95 = arith.mulf %92, %94 : vector<4x256xf32>
    %c20_89 = arith.constant 20 : index
    %c0_90 = arith.constant 0 : index
    %96 = vector.load %arg20[%c20_89, %c0_90] : memref<144x256xf32, #tpu.memory_space<vmem>>, vector<4x256xf32>
    tpu.vector_store %arg20[%c20_89, %c0_90], %95 {strides = array<i32>} : memref<144x256xf32, #tpu.memory_space<vmem>>, vector<4x256xf32>,
    %c0_91 = arith.constant 0 : index
    %c143_92 = arith.constant 143 : index
    %97 = vector.load %arg19[%c0_91, %c143_92] : memref<8x512xf32, #tpu.memory_space<vmem>>, vector<4x256xf32>
    %c6_93 = arith.constant 6 : index
    %c0_94 = arith.constant 0 : index
    %98 = vector.load %arg3[%c6_93, %c0_94] : memref<9x256xf32, #tpu.memory_space<vmem>>, vector<1x256xf32>
    %99 = vector.broadcast %98 : vector<1x256xf32> to vector<4x256xf32>
    %100 = arith.mulf %97, %99 : vector<4x256xf32>
    %c24_95 = arith.constant 24 : index
    %c0_96 = arith.constant 0 : index
    %101 = vector.load %arg20[%c24_95, %c0_96] : memref<144x256xf32, #tpu.memory_space<vmem>>, vector<4x256xf32>
    tpu.vector_store %arg20[%c24_95, %c0_96], %100 {strides = array<i32>} : memref<144x256xf32, #tpu.memory_space<vmem>>, vector<4x256xf32>,
    %c0_97 = arith.constant 0 : index
    %c144_98 = arith.constant 144 : index
    %102 = vector.load %arg19[%c0_97, %c144_98] : memref<8x512xf32, #tpu.memory_space<vmem>>, vector<4x256xf32>
    %c7_99 = arith.constant 7 : index
    %c0_100 = arith.constant 0 : index
    %103 = vector.load %arg3[%c7_99, %c0_100] : memref<9x256xf32, #tpu.memory_space<vmem>>, vector<1x256xf32>
    %104 = vector.broadcast %103 : vector<1x256xf32> to vector<4x256xf32>
    %105 = arith.mulf %102, %104 : vector<4x256xf32>
    %c28_101 = arith.constant 28 : index
    %c0_102 = arith.constant 0 : index
    %106 = vector.load %arg20[%c28_101, %c0_102] : memref<144x256xf32, #tpu.memory_space<vmem>>, vector<4x256xf32>
    tpu.vector_store %arg20[%c28_101, %c0_102], %105 {strides = array<i32>} : memref<144x256xf32, #tpu.memory_space<vmem>>, vector<4x256xf32>,
    %c0_103 = arith.constant 0 : index
    %c145_104 = arith.constant 145 : index
    %107 = vector.load %arg19[%c0_103, %c145_104] : memref<8x512xf32, #tpu.memory_space<vmem>>, vector<4x256xf32>
    %c8_105 = arith.constant 8 : index
    %c0_106 = arith.constant 0 : index
    %108 = vector.load %arg3[%c8_105, %c0_106] : memref<9x256xf32, #tpu.memory_space<vmem>>, vector<1x256xf32>
    %109 = vector.broadcast %108 : vector<1x256xf32> to vector<4x256xf32>
    %110 = arith.mulf %107, %109 : vector<4x256xf32>
    %c32_107 = arith.constant 32 : index
    %c0_108 = arith.constant 0 : index
    %111 = vector.load %arg20[%c32_107, %c0_108] : memref<144x256xf32, #tpu.memory_space<vmem>>, vector<4x256xf32>
    tpu.vector_store %arg20[%c32_107, %c0_108], %110 {strides = array<i32>} : memref<144x256xf32, #tpu.memory_space<vmem>>, vector<4x256xf32>,
    %c0_109 = arith.constant 0 : index
    %c0_110 = arith.constant 0 : index
    %112 = vector.load %arg7[%c0_109, %c0_110] : memref<8x36xbf16, #tpu.memory_space<vmem>>, vector<8x36xbf16>
    %c0_111 = arith.constant 0 : index
    %c0_112 = arith.constant 0 : index
    %113 = vector.load %arg20[%c0_111, %c0_112] : memref<144x256xf32, #tpu.memory_space<vmem>>, vector<36x256xf32>
    %114 = arith.truncf %113 : vector<36x256xf32> to vector<36x256xbf16>
    %cst_113 = arith.constant dense<0.000000e+00> : vector<8x256xf32>
    %115 = tpu.matmul %112, %114, %cst_113 {dimension_numbers = #tpu.dot_dimension_numbers<[1], [0], [0], [1], [0, 0, 1, 1], [], []>} : vector<8x36xbf16>, vector<36x256xbf16>, vector<8x256xf32> -> vector<8x256xf32>
    %c0_114 = arith.constant 0 : index
    %c0_115 = arith.constant 0 : index
    %116 = vector.load %arg8[%c0_114, %c0_115] : memref<8x2xf32, #tpu.memory_space<vmem>>, vector<8x1xf32>
    %117 = vector.broadcast %116 : vector<8x1xf32> to vector<8x256xf32>
    %118 = arith.mulf %115, %117 : vector<8x256xf32>
    %c0_116 = arith.constant 0 : index
    %c1_117 = arith.constant 1 : index
    %119 = vector.load %arg8[%c0_116, %c1_117] : memref<8x2xf32, #tpu.memory_space<vmem>>, vector<8x1xf32>
    %120 = vector.broadcast %119 : vector<8x1xf32> to vector<8x256xf32>
    %121 = arith.addf %118, %120 : vector<8x256xf32>
    %cst_118 = arith.constant 0.000000e+00 : f32
    %122 = vector.broadcast %cst_118 : f32 to vector<8x256xf32>
    %123 = arith.maximumf %121, %122 : vector<8x256xf32>
    %c0_119 = arith.constant 0 : index
    %c128_120 = arith.constant 128 : index
    %124 = vector.load %arg19[%c0_119, %c128_120] : memref<8x512xf32, #tpu.memory_space<vmem>>, vector<8x256xf32>
    tpu.vector_store %arg19[%c0_119, %c128_120], %63 {strides = array<i32>} : memref<8x512xf32, #tpu.memory_space<vmem>>, vector<8x256xf32>,
    %c0_121 = arith.constant 0 : index
    %c111_122 = arith.constant 111 : index
    %125 = vector.load %arg19[%c0_121, %c111_122] : memref<8x512xf32, #tpu.memory_space<vmem>>, vector<8x256xf32>
    %c0_123 = arith.constant 0 : index
    %c0_124 = arith.constant 0 : index
    %126 = vector.load %arg3[%c0_123, %c0_124] : memref<9x256xf32, #tpu.memory_space<vmem>>, vector<1x256xf32>
    %127 = vector.broadcast %126 : vector<1x256xf32> to vector<8x256xf32>
    %128 = arith.mulf %125, %127 : vector<8x256xf32>
    %c0_125 = arith.constant 0 : index
    %c0_126 = arith.constant 0 : index
    %129 = vector.load %arg20[%c0_125, %c0_126] : memref<144x256xf32, #tpu.memory_space<vmem>>, vector<8x256xf32>
    tpu.vector_store %arg20[%c0_125, %c0_126], %128 {strides = array<i32>} : memref<144x256xf32, #tpu.memory_space<vmem>>, vector<8x256xf32>,
    %c0_127 = arith.constant 0 : index
    %c112_128 = arith.constant 112 : index
    %130 = vector.load %arg19[%c0_127, %c112_128] : memref<8x512xf32, #tpu.memory_space<vmem>>, vector<8x256xf32>
    %c1_129 = arith.constant 1 : index
    %c0_130 = arith.constant 0 : index
    %131 = vector.load %arg3[%c1_129, %c0_130] : memref<9x256xf32, #tpu.memory_space<vmem>>, vector<1x256xf32>
    %132 = vector.broadcast %131 : vector<1x256xf32> to vector<8x256xf32>
    %133 = arith.mulf %130, %132 : vector<8x256xf32>
    %c8_131 = arith.constant 8 : index
    %c0_132 = arith.constant 0 : index
    %134 = vector.load %arg20[%c8_131, %c0_132] : memref<144x256xf32, #tpu.memory_space<vmem>>, vector<8x256xf32>
    tpu.vector_store %arg20[%c8_131, %c0_132], %133 {strides = array<i32>} : memref<144x256xf32, #tpu.memory_space<vmem>>, vector<8x256xf32>,
    %c0_133 = arith.constant 0 : index
    %c113_134 = arith.constant 113 : index
    %135 = vector.load %arg19[%c0_133, %c113_134] : memref<8x512xf32, #tpu.memory_space<vmem>>, vector<8x256xf32>
    %c2_135 = arith.constant 2 : index
    %c0_136 = arith.constant 0 : index
    %136 = vector.load %arg3[%c2_135, %c0_136] : memref<9x256xf32, #tpu.memory_space<vmem>>, vector<1x256xf32>
    %137 = vector.broadcast %136 : vector<1x256xf32> to vector<8x256xf32>
    %138 = arith.mulf %135, %137 : vector<8x256xf32>
    %c16_137 = arith.constant 16 : index
    %c0_138 = arith.constant 0 : index
    %139 = vector.load %arg20[%c16_137, %c0_138] : memref<144x256xf32, #tpu.memory_space<vmem>>, vector<8x256xf32>
    tpu.vector_store %arg20[%c16_137, %c0_138], %138 {strides = array<i32>} : memref<144x256xf32, #tpu.memory_space<vmem>>, vector<8x256xf32>,
    %c0_139 = arith.constant 0 : index
    %c127_140 = arith.constant 127 : index
    %140 = vector.load %arg19[%c0_139, %c127_140] : memref<8x512xf32, #tpu.memory_space<vmem>>, vector<8x256xf32>
    %c3_141 = arith.constant 3 : index
    %c0_142 = arith.constant 0 : index
    %141 = vector.load %arg3[%c3_141, %c0_142] : memref<9x256xf32, #tpu.memory_space<vmem>>, vector<1x256xf32>
    %142 = vector.broadcast %141 : vector<1x256xf32> to vector<8x256xf32>
    %143 = arith.mulf %140, %142 : vector<8x256xf32>
    %c24_143 = arith.constant 24 : index
    %c0_144 = arith.constant 0 : index
    %144 = vector.load %arg20[%c24_143, %c0_144] : memref<144x256xf32, #tpu.memory_space<vmem>>, vector<8x256xf32>
    tpu.vector_store %arg20[%c24_143, %c0_144], %143 {strides = array<i32>} : memref<144x256xf32, #tpu.memory_space<vmem>>, vector<8x256xf32>,
    %c0_145 = arith.constant 0 : index
    %c128_146 = arith.constant 128 : index
    %145 = vector.load %arg19[%c0_145, %c128_146] : memref<8x512xf32, #tpu.memory_space<vmem>>, vector<8x256xf32>
    %c4_147 = arith.constant 4 : index
    %c0_148 = arith.constant 0 : index
    %146 = vector.load %arg3[%c4_147, %c0_148] : memref<9x256xf32, #tpu.memory_space<vmem>>, vector<1x256xf32>
    %147 = vector.broadcast %146 : vector<1x256xf32> to vector<8x256xf32>
    %148 = arith.mulf %145, %147 : vector<8x256xf32>
    %c32_149 = arith.constant 32 : index
    %c0_150 = arith.constant 0 : index
    %149 = vector.load %arg20[%c32_149, %c0_150] : memref<144x256xf32, #tpu.memory_space<vmem>>, vector<8x256xf32>
    tpu.vector_store %arg20[%c32_149, %c0_150], %148 {strides = array<i32>} : memref<144x256xf32, #tpu.memory_space<vmem>>, vector<8x256xf32>,
    %c0_151 = arith.constant 0 : index
    %c129_152 = arith.constant 129 : index
    %150 = vector.load %arg19[%c0_151, %c129_152] : memref<8x512xf32, #tpu.memory_space<vmem>>, vector<8x256xf32>
    %c5_153 = arith.constant 5 : index
    %c0_154 = arith.constant 0 : index
    %151 = vector.load %arg3[%c5_153, %c0_154] : memref<9x256xf32, #tpu.memory_space<vmem>>, vector<1x256xf32>
    %152 = vector.broadcast %151 : vector<1x256xf32> to vector<8x256xf32>
    %153 = arith.mulf %150, %152 : vector<8x256xf32>
    %c40 = arith.constant 40 : index
    %c0_155 = arith.constant 0 : index
    %154 = vector.load %arg20[%c40, %c0_155] : memref<144x256xf32, #tpu.memory_space<vmem>>, vector<8x256xf32>
    tpu.vector_store %arg20[%c40, %c0_155], %153 {strides = array<i32>} : memref<144x256xf32, #tpu.memory_space<vmem>>, vector<8x256xf32>,
    %c0_156 = arith.constant 0 : index
    %c143_157 = arith.constant 143 : index
    %155 = vector.load %arg19[%c0_156, %c143_157] : memref<8x512xf32, #tpu.memory_space<vmem>>, vector<8x256xf32>
    %c6_158 = arith.constant 6 : index
    %c0_159 = arith.constant 0 : index
    %156 = vector.load %arg3[%c6_158, %c0_159] : memref<9x256xf32, #tpu.memory_space<vmem>>, vector<1x256xf32>
    %157 = vector.broadcast %156 : vector<1x256xf32> to vector<8x256xf32>
    %158 = arith.mulf %155, %157 : vector<8x256xf32>
    %c48 = arith.constant 48 : index
    %c0_160 = arith.constant 0 : index
    %159 = vector.load %arg20[%c48, %c0_160] : memref<144x256xf32, #tpu.memory_space<vmem>>, vector<8x256xf32>
    tpu.vector_store %arg20[%c48, %c0_160], %158 {strides = array<i32>} : memref<144x256xf32, #tpu.memory_space<vmem>>, vector<8x256xf32>,
    %c0_161 = arith.constant 0 : index
    %c144_162 = arith.constant 144 : index
    %160 = vector.load %arg19[%c0_161, %c144_162] : memref<8x512xf32, #tpu.memory_space<vmem>>, vector<8x256xf32>
    %c7_163 = arith.constant 7 : index
    %c0_164 = arith.constant 0 : index
    %161 = vector.load %arg3[%c7_163, %c0_164] : memref<9x256xf32, #tpu.memory_space<vmem>>, vector<1x256xf32>
    %162 = vector.broadcast %161 : vector<1x256xf32> to vector<8x256xf32>
    %163 = arith.mulf %160, %162 : vector<8x256xf32>
    %c56 = arith.constant 56 : index
    %c0_165 = arith.constant 0 : index
    %164 = vector.load %arg20[%c56, %c0_165] : memref<144x256xf32, #tpu.memory_space<vmem>>, vector<8x256xf32>
    tpu.vector_store %arg20[%c56, %c0_165], %163 {strides = array<i32>} : memref<144x256xf32, #tpu.memory_space<vmem>>, vector<8x256xf32>,
    %c0_166 = arith.constant 0 : index
    %c145_167 = arith.constant 145 : index
    %165 = vector.load %arg19[%c0_166, %c145_167] : memref<8x512xf32, #tpu.memory_space<vmem>>, vector<8x256xf32>
    %c8_168 = arith.constant 8 : index
    %c0_169 = arith.constant 0 : index
    %166 = vector.load %arg3[%c8_168, %c0_169] : memref<9x256xf32, #tpu.memory_space<vmem>>, vector<1x256xf32>
    %167 = vector.broadcast %166 : vector<1x256xf32> to vector<8x256xf32>
    %168 = arith.mulf %165, %167 : vector<8x256xf32>
    %c64 = arith.constant 64 : index
    %c0_170 = arith.constant 0 : index
    %169 = vector.load %arg20[%c64, %c0_170] : memref<144x256xf32, #tpu.memory_space<vmem>>, vector<8x256xf32>
    tpu.vector_store %arg20[%c64, %c0_170], %168 {strides = array<i32>} : memref<144x256xf32, #tpu.memory_space<vmem>>, vector<8x256xf32>,
    %c0_171 = arith.constant 0 : index
    %c0_172 = arith.constant 0 : index
    %170 = vector.load %arg9[%c0_171, %c0_172] : memref<8x72xbf16, #tpu.memory_space<vmem>>, vector<8x72xbf16>
    %c0_173 = arith.constant 0 : index
    %c0_174 = arith.constant 0 : index
    %171 = vector.load %arg20[%c0_173, %c0_174] : memref<144x256xf32, #tpu.memory_space<vmem>>, vector<72x256xf32>
    %172 = arith.truncf %171 : vector<72x256xf32> to vector<72x256xbf16>
    %cst_175 = arith.constant dense<0.000000e+00> : vector<8x256xf32>
    %173 = tpu.matmul %170, %172, %cst_175 {dimension_numbers = #tpu.dot_dimension_numbers<[1], [0], [0], [1], [0, 0, 1, 1], [], []>} : vector<8x72xbf16>, vector<72x256xbf16>, vector<8x256xf32> -> vector<8x256xf32>
    %c0_176 = arith.constant 0 : index
    %c0_177 = arith.constant 0 : index
    %174 = vector.load %arg10[%c0_176, %c0_177] : memref<8x2xf32, #tpu.memory_space<vmem>>, vector<8x1xf32>
    %175 = vector.broadcast %174 : vector<8x1xf32> to vector<8x256xf32>
    %176 = arith.mulf %173, %175 : vector<8x256xf32>
    %c0_178 = arith.constant 0 : index
    %c1_179 = arith.constant 1 : index
    %177 = vector.load %arg10[%c0_178, %c1_179] : memref<8x2xf32, #tpu.memory_space<vmem>>, vector<8x1xf32>
    %178 = vector.broadcast %177 : vector<8x1xf32> to vector<8x256xf32>
    %179 = arith.addf %176, %178 : vector<8x256xf32>
    %180 = arith.negf %179 : vector<8x256xf32>
    %181 = math.exp %180 : vector<8x256xf32>
    %cst_180 = arith.constant 1.000000e+00 : f32
    %182 = vector.broadcast %cst_180 : f32 to vector<8x256xf32>
    %183 = arith.addf %182, %181 : vector<8x256xf32>
    %184 = arith.divf %182, %183 : vector<8x256xf32>
    %185 = vector.extract_strided_slice %184 {offsets = [0, 0], sizes = [1, 256], strides = [1, 1]} : vector<8x256xf32> to vector<1x256xf32>
    %186 = vector.broadcast %185 : vector<1x256xf32> to vector<8x256xf32>
    %187 = arith.mulf %186, %123 : vector<8x256xf32>
    %c0_181 = arith.constant 0 : index
    %c128_182 = arith.constant 128 : index
    %188 = vector.load %arg19[%c0_181, %c128_182] : memref<8x512xf32, #tpu.memory_space<vmem>>, vector<8x256xf32>
    tpu.vector_store %arg19[%c0_181, %c128_182], %187 {strides = array<i32>} : memref<8x512xf32, #tpu.memory_space<vmem>>, vector<8x256xf32>,
    %c0_183 = arith.constant 0 : index
    %c111_184 = arith.constant 111 : index
    %189 = vector.load %arg19[%c0_183, %c111_184] : memref<8x512xf32, #tpu.memory_space<vmem>>, vector<8x256xf32>
    %c0_185 = arith.constant 0 : index
    %c0_186 = arith.constant 0 : index
    %190 = vector.load %arg3[%c0_185, %c0_186] : memref<9x256xf32, #tpu.memory_space<vmem>>, vector<1x256xf32>
    %191 = vector.broadcast %190 : vector<1x256xf32> to vector<8x256xf32>
    %192 = arith.mulf %189, %191 : vector<8x256xf32>
    %c0_187 = arith.constant 0 : index
    %c0_188 = arith.constant 0 : index
    %193 = vector.load %arg20[%c0_187, %c0_188] : memref<144x256xf32, #tpu.memory_space<vmem>>, vector<8x256xf32>
    tpu.vector_store %arg20[%c0_187, %c0_188], %192 {strides = array<i32>} : memref<144x256xf32, #tpu.memory_space<vmem>>, vector<8x256xf32>,
    %c0_189 = arith.constant 0 : index
    %c112_190 = arith.constant 112 : index
    %194 = vector.load %arg19[%c0_189, %c112_190] : memref<8x512xf32, #tpu.memory_space<vmem>>, vector<8x256xf32>
    %c1_191 = arith.constant 1 : index
    %c0_192 = arith.constant 0 : index
    %195 = vector.load %arg3[%c1_191, %c0_192] : memref<9x256xf32, #tpu.memory_space<vmem>>, vector<1x256xf32>
    %196 = vector.broadcast %195 : vector<1x256xf32> to vector<8x256xf32>
    %197 = arith.mulf %194, %196 : vector<8x256xf32>
    %c8_193 = arith.constant 8 : index
    %c0_194 = arith.constant 0 : index
    %198 = vector.load %arg20[%c8_193, %c0_194] : memref<144x256xf32, #tpu.memory_space<vmem>>, vector<8x256xf32>
    tpu.vector_store %arg20[%c8_193, %c0_194], %197 {strides = array<i32>} : memref<144x256xf32, #tpu.memory_space<vmem>>, vector<8x256xf32>,
    %c0_195 = arith.constant 0 : index
    %c113_196 = arith.constant 113 : index
    %199 = vector.load %arg19[%c0_195, %c113_196] : memref<8x512xf32, #tpu.memory_space<vmem>>, vector<8x256xf32>
    %c2_197 = arith.constant 2 : index
    %c0_198 = arith.constant 0 : index
    %200 = vector.load %arg3[%c2_197, %c0_198] : memref<9x256xf32, #tpu.memory_space<vmem>>, vector<1x256xf32>
    %201 = vector.broadcast %200 : vector<1x256xf32> to vector<8x256xf32>
    %202 = arith.mulf %199, %201 : vector<8x256xf32>
    %c16_199 = arith.constant 16 : index
    %c0_200 = arith.constant 0 : index
    %203 = vector.load %arg20[%c16_199, %c0_200] : memref<144x256xf32, #tpu.memory_space<vmem>>, vector<8x256xf32>
    tpu.vector_store %arg20[%c16_199, %c0_200], %202 {strides = array<i32>} : memref<144x256xf32, #tpu.memory_space<vmem>>, vector<8x256xf32>,
    %c0_201 = arith.constant 0 : index
    %c127_202 = arith.constant 127 : index
    %204 = vector.load %arg19[%c0_201, %c127_202] : memref<8x512xf32, #tpu.memory_space<vmem>>, vector<8x256xf32>
    %c3_203 = arith.constant 3 : index
    %c0_204 = arith.constant 0 : index
    %205 = vector.load %arg3[%c3_203, %c0_204] : memref<9x256xf32, #tpu.memory_space<vmem>>, vector<1x256xf32>
    %206 = vector.broadcast %205 : vector<1x256xf32> to vector<8x256xf32>
    %207 = arith.mulf %204, %206 : vector<8x256xf32>
    %c24_205 = arith.constant 24 : index
    %c0_206 = arith.constant 0 : index
    %208 = vector.load %arg20[%c24_205, %c0_206] : memref<144x256xf32, #tpu.memory_space<vmem>>, vector<8x256xf32>
    tpu.vector_store %arg20[%c24_205, %c0_206], %207 {strides = array<i32>} : memref<144x256xf32, #tpu.memory_space<vmem>>, vector<8x256xf32>,
    %c0_207 = arith.constant 0 : index
    %c128_208 = arith.constant 128 : index
    %209 = vector.load %arg19[%c0_207, %c128_208] : memref<8x512xf32, #tpu.memory_space<vmem>>, vector<8x256xf32>
    %c4_209 = arith.constant 4 : index
    %c0_210 = arith.constant 0 : index
    %210 = vector.load %arg3[%c4_209, %c0_210] : memref<9x256xf32, #tpu.memory_space<vmem>>, vector<1x256xf32>
    %211 = vector.broadcast %210 : vector<1x256xf32> to vector<8x256xf32>
    %212 = arith.mulf %209, %211 : vector<8x256xf32>
    %c32_211 = arith.constant 32 : index
    %c0_212 = arith.constant 0 : index
    %213 = vector.load %arg20[%c32_211, %c0_212] : memref<144x256xf32, #tpu.memory_space<vmem>>, vector<8x256xf32>
    tpu.vector_store %arg20[%c32_211, %c0_212], %212 {strides = array<i32>} : memref<144x256xf32, #tpu.memory_space<vmem>>, vector<8x256xf32>,
    %c0_213 = arith.constant 0 : index
    %c129_214 = arith.constant 129 : index
    %214 = vector.load %arg19[%c0_213, %c129_214] : memref<8x512xf32, #tpu.memory_space<vmem>>, vector<8x256xf32>
    %c5_215 = arith.constant 5 : index
    %c0_216 = arith.constant 0 : index
    %215 = vector.load %arg3[%c5_215, %c0_216] : memref<9x256xf32, #tpu.memory_space<vmem>>, vector<1x256xf32>
    %216 = vector.broadcast %215 : vector<1x256xf32> to vector<8x256xf32>
    %217 = arith.mulf %214, %216 : vector<8x256xf32>
    %c40_217 = arith.constant 40 : index
    %c0_218 = arith.constant 0 : index
    %218 = vector.load %arg20[%c40_217, %c0_218] : memref<144x256xf32, #tpu.memory_space<vmem>>, vector<8x256xf32>
    tpu.vector_store %arg20[%c40_217, %c0_218], %217 {strides = array<i32>} : memref<144x256xf32, #tpu.memory_space<vmem>>, vector<8x256xf32>,
    %c0_219 = arith.constant 0 : index
    %c143_220 = arith.constant 143 : index
    %219 = vector.load %arg19[%c0_219, %c143_220] : memref<8x512xf32, #tpu.memory_space<vmem>>, vector<8x256xf32>
    %c6_221 = arith.constant 6 : index
    %c0_222 = arith.constant 0 : index
    %220 = vector.load %arg3[%c6_221, %c0_222] : memref<9x256xf32, #tpu.memory_space<vmem>>, vector<1x256xf32>
    %221 = vector.broadcast %220 : vector<1x256xf32> to vector<8x256xf32>
    %222 = arith.mulf %219, %221 : vector<8x256xf32>
    %c48_223 = arith.constant 48 : index
    %c0_224 = arith.constant 0 : index
    %223 = vector.load %arg20[%c48_223, %c0_224] : memref<144x256xf32, #tpu.memory_space<vmem>>, vector<8x256xf32>
    tpu.vector_store %arg20[%c48_223, %c0_224], %222 {strides = array<i32>} : memref<144x256xf32, #tpu.memory_space<vmem>>, vector<8x256xf32>,
    %c0_225 = arith.constant 0 : index
    %c144_226 = arith.constant 144 : index
    %224 = vector.load %arg19[%c0_225, %c144_226] : memref<8x512xf32, #tpu.memory_space<vmem>>, vector<8x256xf32>
    %c7_227 = arith.constant 7 : index
    %c0_228 = arith.constant 0 : index
    %225 = vector.load %arg3[%c7_227, %c0_228] : memref<9x256xf32, #tpu.memory_space<vmem>>, vector<1x256xf32>
    %226 = vector.broadcast %225 : vector<1x256xf32> to vector<8x256xf32>
    %227 = arith.mulf %224, %226 : vector<8x256xf32>
    %c56_229 = arith.constant 56 : index
    %c0_230 = arith.constant 0 : index
    %228 = vector.load %arg20[%c56_229, %c0_230] : memref<144x256xf32, #tpu.memory_space<vmem>>, vector<8x256xf32>
    tpu.vector_store %arg20[%c56_229, %c0_230], %227 {strides = array<i32>} : memref<144x256xf32, #tpu.memory_space<vmem>>, vector<8x256xf32>,
    %c0_231 = arith.constant 0 : index
    %c145_232 = arith.constant 145 : index
    %229 = vector.load %arg19[%c0_231, %c145_232] : memref<8x512xf32, #tpu.memory_space<vmem>>, vector<8x256xf32>
    %c8_233 = arith.constant 8 : index
    %c0_234 = arith.constant 0 : index
    %230 = vector.load %arg3[%c8_233, %c0_234] : memref<9x256xf32, #tpu.memory_space<vmem>>, vector<1x256xf32>
    %231 = vector.broadcast %230 : vector<1x256xf32> to vector<8x256xf32>
    %232 = arith.mulf %229, %231 : vector<8x256xf32>
    %c64_235 = arith.constant 64 : index
    %c0_236 = arith.constant 0 : index
    %233 = vector.load %arg20[%c64_235, %c0_236] : memref<144x256xf32, #tpu.memory_space<vmem>>, vector<8x256xf32>
    tpu.vector_store %arg20[%c64_235, %c0_236], %232 {strides = array<i32>} : memref<144x256xf32, #tpu.memory_space<vmem>>, vector<8x256xf32>,
    %c0_237 = arith.constant 0 : index
    %c0_238 = arith.constant 0 : index
    %234 = vector.load %arg11[%c0_237, %c0_238] : memref<8x72xbf16, #tpu.memory_space<vmem>>, vector<8x72xbf16>
    %c0_239 = arith.constant 0 : index
    %c0_240 = arith.constant 0 : index
    %235 = vector.load %arg20[%c0_239, %c0_240] : memref<144x256xf32, #tpu.memory_space<vmem>>, vector<72x256xf32>
    %236 = arith.truncf %235 : vector<72x256xf32> to vector<72x256xbf16>
    %cst_241 = arith.constant dense<0.000000e+00> : vector<8x256xf32>
    %237 = tpu.matmul %234, %236, %cst_241 {dimension_numbers = #tpu.dot_dimension_numbers<[1], [0], [0], [1], [0, 0, 1, 1], [], []>} : vector<8x72xbf16>, vector<72x256xbf16>, vector<8x256xf32> -> vector<8x256xf32>
    %c0_242 = arith.constant 0 : index
    %c0_243 = arith.constant 0 : index
    %238 = vector.load %arg12[%c0_242, %c0_243] : memref<8x2xf32, #tpu.memory_space<vmem>>, vector<8x1xf32>
    %239 = vector.broadcast %238 : vector<8x1xf32> to vector<8x256xf32>
    %240 = arith.mulf %237, %239 : vector<8x256xf32>
    %c0_244 = arith.constant 0 : index
    %c1_245 = arith.constant 1 : index
    %241 = vector.load %arg12[%c0_244, %c1_245] : memref<8x2xf32, #tpu.memory_space<vmem>>, vector<8x1xf32>
    %242 = vector.broadcast %241 : vector<8x1xf32> to vector<8x256xf32>
    %243 = arith.addf %240, %242 : vector<8x256xf32>
    %cst_246 = arith.constant 0.000000e+00 : f32
    %244 = vector.broadcast %cst_246 : f32 to vector<8x256xf32>
    %245 = arith.maximumf %243, %244 : vector<8x256xf32>
    %c0_247 = arith.constant 0 : index
    %c128_248 = arith.constant 128 : index
    %246 = vector.load %arg19[%c0_247, %c128_248] : memref<8x512xf32, #tpu.memory_space<vmem>>, vector<8x256xf32>
    tpu.vector_store %arg19[%c0_247, %c128_248], %187 {strides = array<i32>} : memref<8x512xf32, #tpu.memory_space<vmem>>, vector<8x256xf32>,
    %c0_249 = arith.constant 0 : index
    %c43 = arith.constant 43 : index
    %247 = vector.load %arg19[%c0_249, %c43] : memref<8x512xf32, #tpu.memory_space<vmem>>, vector<8x256xf32>
    %c0_250 = arith.constant 0 : index
    %c0_251 = arith.constant 0 : index
    %248 = vector.load %arg4[%c0_250, %c0_251] : memref<9x256xf32, #tpu.memory_space<vmem>>, vector<1x256xf32>
    %249 = vector.broadcast %248 : vector<1x256xf32> to vector<8x256xf32>
    %250 = arith.mulf %247, %249 : vector<8x256xf32>
    %c0_252 = arith.constant 0 : index
    %c0_253 = arith.constant 0 : index
    %251 = vector.load %arg20[%c0_252, %c0_253] : memref<144x256xf32, #tpu.memory_space<vmem>>, vector<8x256xf32>
    tpu.vector_store %arg20[%c0_252, %c0_253], %250 {strides = array<i32>} : memref<144x256xf32, #tpu.memory_space<vmem>>, vector<8x256xf32>,
    %c0_254 = arith.constant 0 : index
    %c48_255 = arith.constant 48 : index
    %252 = vector.load %arg19[%c0_254, %c48_255] : memref<8x512xf32, #tpu.memory_space<vmem>>, vector<8x256xf32>
    %c1_256 = arith.constant 1 : index
    %c0_257 = arith.constant 0 : index
    %253 = vector.load %arg4[%c1_256, %c0_257] : memref<9x256xf32, #tpu.memory_space<vmem>>, vector<1x256xf32>
    %254 = vector.broadcast %253 : vector<1x256xf32> to vector<8x256xf32>
    %255 = arith.mulf %252, %254 : vector<8x256xf32>
    %c8_258 = arith.constant 8 : index
    %c0_259 = arith.constant 0 : index
    %256 = vector.load %arg20[%c8_258, %c0_259] : memref<144x256xf32, #tpu.memory_space<vmem>>, vector<8x256xf32>
    tpu.vector_store %arg20[%c8_258, %c0_259], %255 {strides = array<i32>} : memref<144x256xf32, #tpu.memory_space<vmem>>, vector<8x256xf32>,
    %c0_260 = arith.constant 0 : index
    %c53 = arith.constant 53 : index
    %257 = vector.load %arg19[%c0_260, %c53] : memref<8x512xf32, #tpu.memory_space<vmem>>, vector<8x256xf32>
    %c2_261 = arith.constant 2 : index
    %c0_262 = arith.constant 0 : index
    %258 = vector.load %arg4[%c2_261, %c0_262] : memref<9x256xf32, #tpu.memory_space<vmem>>, vector<1x256xf32>
    %259 = vector.broadcast %258 : vector<1x256xf32> to vector<8x256xf32>
    %260 = arith.mulf %257, %259 : vector<8x256xf32>
    %c16_263 = arith.constant 16 : index
    %c0_264 = arith.constant 0 : index
    %261 = vector.load %arg20[%c16_263, %c0_264] : memref<144x256xf32, #tpu.memory_space<vmem>>, vector<8x256xf32>
    tpu.vector_store %arg20[%c16_263, %c0_264], %260 {strides = array<i32>} : memref<144x256xf32, #tpu.memory_space<vmem>>, vector<8x256xf32>,
    %c0_265 = arith.constant 0 : index
    %c123 = arith.constant 123 : index
    %262 = vector.load %arg19[%c0_265, %c123] : memref<8x512xf32, #tpu.memory_space<vmem>>, vector<8x256xf32>
    %c3_266 = arith.constant 3 : index
    %c0_267 = arith.constant 0 : index
    %263 = vector.load %arg4[%c3_266, %c0_267] : memref<9x256xf32, #tpu.memory_space<vmem>>, vector<1x256xf32>
    %264 = vector.broadcast %263 : vector<1x256xf32> to vector<8x256xf32>
    %265 = arith.mulf %262, %264 : vector<8x256xf32>
    %c24_268 = arith.constant 24 : index
    %c0_269 = arith.constant 0 : index
    %266 = vector.load %arg20[%c24_268, %c0_269] : memref<144x256xf32, #tpu.memory_space<vmem>>, vector<8x256xf32>
    tpu.vector_store %arg20[%c24_268, %c0_269], %265 {strides = array<i32>} : memref<144x256xf32, #tpu.memory_space<vmem>>, vector<8x256xf32>,
    %c0_270 = arith.constant 0 : index
    %c128_271 = arith.constant 128 : index
    %267 = vector.load %arg19[%c0_270, %c128_271] : memref<8x512xf32, #tpu.memory_space<vmem>>, vector<8x256xf32>
    %c4_272 = arith.constant 4 : index
    %c0_273 = arith.constant 0 : index
    %268 = vector.load %arg4[%c4_272, %c0_273] : memref<9x256xf32, #tpu.memory_space<vmem>>, vector<1x256xf32>
    %269 = vector.broadcast %268 : vector<1x256xf32> to vector<8x256xf32>
    %270 = arith.mulf %267, %269 : vector<8x256xf32>
    %c32_274 = arith.constant 32 : index
    %c0_275 = arith.constant 0 : index
    %271 = vector.load %arg20[%c32_274, %c0_275] : memref<144x256xf32, #tpu.memory_space<vmem>>, vector<8x256xf32>
    tpu.vector_store %arg20[%c32_274, %c0_275], %270 {strides = array<i32>} : memref<144x256xf32, #tpu.memory_space<vmem>>, vector<8x256xf32>,
    %c0_276 = arith.constant 0 : index
    %c133 = arith.constant 133 : index
    %272 = vector.load %arg19[%c0_276, %c133] : memref<8x512xf32, #tpu.memory_space<vmem>>, vector<8x256xf32>
    %c5_277 = arith.constant 5 : index
    %c0_278 = arith.constant 0 : index
    %273 = vector.load %arg4[%c5_277, %c0_278] : memref<9x256xf32, #tpu.memory_space<vmem>>, vector<1x256xf32>
    %274 = vector.broadcast %273 : vector<1x256xf32> to vector<8x256xf32>
    %275 = arith.mulf %272, %274 : vector<8x256xf32>
    %c40_279 = arith.constant 40 : index
    %c0_280 = arith.constant 0 : index
    %276 = vector.load %arg20[%c40_279, %c0_280] : memref<144x256xf32, #tpu.memory_space<vmem>>, vector<8x256xf32>
    tpu.vector_store %arg20[%c40_279, %c0_280], %275 {strides = array<i32>} : memref<144x256xf32, #tpu.memory_space<vmem>>, vector<8x256xf32>,
    %c0_281 = arith.constant 0 : index
    %c203 = arith.constant 203 : index
    %277 = vector.load %arg19[%c0_281, %c203] : memref<8x512xf32, #tpu.memory_space<vmem>>, vector<8x256xf32>
    %c6_282 = arith.constant 6 : index
    %c0_283 = arith.constant 0 : index
    %278 = vector.load %arg4[%c6_282, %c0_283] : memref<9x256xf32, #tpu.memory_space<vmem>>, vector<1x256xf32>
    %279 = vector.broadcast %278 : vector<1x256xf32> to vector<8x256xf32>
    %280 = arith.mulf %277, %279 : vector<8x256xf32>
    %c48_284 = arith.constant 48 : index
    %c0_285 = arith.constant 0 : index
    %281 = vector.load %arg20[%c48_284, %c0_285] : memref<144x256xf32, #tpu.memory_space<vmem>>, vector<8x256xf32>
    tpu.vector_store %arg20[%c48_284, %c0_285], %280 {strides = array<i32>} : memref<144x256xf32, #tpu.memory_space<vmem>>, vector<8x256xf32>,
    %c0_286 = arith.constant 0 : index
    %c208 = arith.constant 208 : index
    %282 = vector.load %arg19[%c0_286, %c208] : memref<8x512xf32, #tpu.memory_space<vmem>>, vector<8x256xf32>
    %c7_287 = arith.constant 7 : index
    %c0_288 = arith.constant 0 : index
    %283 = vector.load %arg4[%c7_287, %c0_288] : memref<9x256xf32, #tpu.memory_space<vmem>>, vector<1x256xf32>
    %284 = vector.broadcast %283 : vector<1x256xf32> to vector<8x256xf32>
    %285 = arith.mulf %282, %284 : vector<8x256xf32>
    %c56_289 = arith.constant 56 : index
    %c0_290 = arith.constant 0 : index
    %286 = vector.load %arg20[%c56_289, %c0_290] : memref<144x256xf32, #tpu.memory_space<vmem>>, vector<8x256xf32>
    tpu.vector_store %arg20[%c56_289, %c0_290], %285 {strides = array<i32>} : memref<144x256xf32, #tpu.memory_space<vmem>>, vector<8x256xf32>,
    %c0_291 = arith.constant 0 : index
    %c213 = arith.constant 213 : index
    %287 = vector.load %arg19[%c0_291, %c213] : memref<8x512xf32, #tpu.memory_space<vmem>>, vector<8x256xf32>
    %c8_292 = arith.constant 8 : index
    %c0_293 = arith.constant 0 : index
    %288 = vector.load %arg4[%c8_292, %c0_293] : memref<9x256xf32, #tpu.memory_space<vmem>>, vector<1x256xf32>
    %289 = vector.broadcast %288 : vector<1x256xf32> to vector<8x256xf32>
    %290 = arith.mulf %287, %289 : vector<8x256xf32>
    %c64_294 = arith.constant 64 : index
    %c0_295 = arith.constant 0 : index
    %291 = vector.load %arg20[%c64_294, %c0_295] : memref<144x256xf32, #tpu.memory_space<vmem>>, vector<8x256xf32>
    tpu.vector_store %arg20[%c64_294, %c0_295], %290 {strides = array<i32>} : memref<144x256xf32, #tpu.memory_space<vmem>>, vector<8x256xf32>,
    %c0_296 = arith.constant 0 : index
    %c0_297 = arith.constant 0 : index
    %292 = vector.load %arg13[%c0_296, %c0_297] : memref<8x72xbf16, #tpu.memory_space<vmem>>, vector<8x72xbf16>
    %c0_298 = arith.constant 0 : index
    %c0_299 = arith.constant 0 : index
    %293 = vector.load %arg20[%c0_298, %c0_299] : memref<144x256xf32, #tpu.memory_space<vmem>>, vector<72x256xf32>
    %294 = arith.truncf %293 : vector<72x256xf32> to vector<72x256xbf16>
    %cst_300 = arith.constant dense<0.000000e+00> : vector<8x256xf32>
    %295 = tpu.matmul %292, %294, %cst_300 {dimension_numbers = #tpu.dot_dimension_numbers<[1], [0], [0], [1], [0, 0, 1, 1], [], []>} : vector<8x72xbf16>, vector<72x256xbf16>, vector<8x256xf32> -> vector<8x256xf32>
    %c0_301 = arith.constant 0 : index
    %c0_302 = arith.constant 0 : index
    %296 = vector.load %arg14[%c0_301, %c0_302] : memref<8x2xf32, #tpu.memory_space<vmem>>, vector<8x1xf32>
    %297 = vector.broadcast %296 : vector<8x1xf32> to vector<8x256xf32>
    %298 = arith.mulf %295, %297 : vector<8x256xf32>
    %c0_303 = arith.constant 0 : index
    %c1_304 = arith.constant 1 : index
    %299 = vector.load %arg14[%c0_303, %c1_304] : memref<8x2xf32, #tpu.memory_space<vmem>>, vector<8x1xf32>
    %300 = vector.broadcast %299 : vector<8x1xf32> to vector<8x256xf32>
    %301 = arith.addf %298, %300 : vector<8x256xf32>
    %cst_305 = arith.constant 0.000000e+00 : f32
    %302 = vector.broadcast %cst_305 : f32 to vector<8x256xf32>
    %303 = arith.maximumf %301, %302 : vector<8x256xf32>
    %c0_306 = arith.constant 0 : index
    %c128_307 = arith.constant 128 : index
    %304 = vector.load %arg19[%c0_306, %c128_307] : memref<8x512xf32, #tpu.memory_space<vmem>>, vector<8x256xf32>
    tpu.vector_store %arg19[%c0_306, %c128_307], %245 {strides = array<i32>} : memref<8x512xf32, #tpu.memory_space<vmem>>, vector<8x256xf32>,
    %c0_308 = arith.constant 0 : index
    %c111_309 = arith.constant 111 : index
    %305 = vector.load %arg19[%c0_308, %c111_309] : memref<8x512xf32, #tpu.memory_space<vmem>>, vector<8x256xf32>
    %c0_310 = arith.constant 0 : index
    %c0_311 = arith.constant 0 : index
    %306 = vector.load %arg3[%c0_310, %c0_311] : memref<9x256xf32, #tpu.memory_space<vmem>>, vector<1x256xf32>
    %307 = vector.broadcast %306 : vector<1x256xf32> to vector<8x256xf32>
    %308 = arith.mulf %305, %307 : vector<8x256xf32>
    %c0_312 = arith.constant 0 : index
    %c0_313 = arith.constant 0 : index
    %309 = vector.load %arg20[%c0_312, %c0_313] : memref<144x256xf32, #tpu.memory_space<vmem>>, vector<8x256xf32>
    tpu.vector_store %arg20[%c0_312, %c0_313], %308 {strides = array<i32>} : memref<144x256xf32, #tpu.memory_space<vmem>>, vector<8x256xf32>,
    %c0_314 = arith.constant 0 : index
    %c112_315 = arith.constant 112 : index
    %310 = vector.load %arg19[%c0_314, %c112_315] : memref<8x512xf32, #tpu.memory_space<vmem>>, vector<8x256xf32>
    %c1_316 = arith.constant 1 : index
    %c0_317 = arith.constant 0 : index
    %311 = vector.load %arg3[%c1_316, %c0_317] : memref<9x256xf32, #tpu.memory_space<vmem>>, vector<1x256xf32>
    %312 = vector.broadcast %311 : vector<1x256xf32> to vector<8x256xf32>
    %313 = arith.mulf %310, %312 : vector<8x256xf32>
    %c8_318 = arith.constant 8 : index
    %c0_319 = arith.constant 0 : index
    %314 = vector.load %arg20[%c8_318, %c0_319] : memref<144x256xf32, #tpu.memory_space<vmem>>, vector<8x256xf32>
    tpu.vector_store %arg20[%c8_318, %c0_319], %313 {strides = array<i32>} : memref<144x256xf32, #tpu.memory_space<vmem>>, vector<8x256xf32>,
    %c0_320 = arith.constant 0 : index
    %c113_321 = arith.constant 113 : index
    %315 = vector.load %arg19[%c0_320, %c113_321] : memref<8x512xf32, #tpu.memory_space<vmem>>, vector<8x256xf32>
    %c2_322 = arith.constant 2 : index
    %c0_323 = arith.constant 0 : index
    %316 = vector.load %arg3[%c2_322, %c0_323] : memref<9x256xf32, #tpu.memory_space<vmem>>, vector<1x256xf32>
    %317 = vector.broadcast %316 : vector<1x256xf32> to vector<8x256xf32>
    %318 = arith.mulf %315, %317 : vector<8x256xf32>
    %c16_324 = arith.constant 16 : index
    %c0_325 = arith.constant 0 : index
    %319 = vector.load %arg20[%c16_324, %c0_325] : memref<144x256xf32, #tpu.memory_space<vmem>>, vector<8x256xf32>
    tpu.vector_store %arg20[%c16_324, %c0_325], %318 {strides = array<i32>} : memref<144x256xf32, #tpu.memory_space<vmem>>, vector<8x256xf32>,
    %c0_326 = arith.constant 0 : index
    %c127_327 = arith.constant 127 : index
    %320 = vector.load %arg19[%c0_326, %c127_327] : memref<8x512xf32, #tpu.memory_space<vmem>>, vector<8x256xf32>
    %c3_328 = arith.constant 3 : index
    %c0_329 = arith.constant 0 : index
    %321 = vector.load %arg3[%c3_328, %c0_329] : memref<9x256xf32, #tpu.memory_space<vmem>>, vector<1x256xf32>
    %322 = vector.broadcast %321 : vector<1x256xf32> to vector<8x256xf32>
    %323 = arith.mulf %320, %322 : vector<8x256xf32>
    %c24_330 = arith.constant 24 : index
    %c0_331 = arith.constant 0 : index
    %324 = vector.load %arg20[%c24_330, %c0_331] : memref<144x256xf32, #tpu.memory_space<vmem>>, vector<8x256xf32>
    tpu.vector_store %arg20[%c24_330, %c0_331], %323 {strides = array<i32>} : memref<144x256xf32, #tpu.memory_space<vmem>>, vector<8x256xf32>,
    %c0_332 = arith.constant 0 : index
    %c128_333 = arith.constant 128 : index
    %325 = vector.load %arg19[%c0_332, %c128_333] : memref<8x512xf32, #tpu.memory_space<vmem>>, vector<8x256xf32>
    %c4_334 = arith.constant 4 : index
    %c0_335 = arith.constant 0 : index
    %326 = vector.load %arg3[%c4_334, %c0_335] : memref<9x256xf32, #tpu.memory_space<vmem>>, vector<1x256xf32>
    %327 = vector.broadcast %326 : vector<1x256xf32> to vector<8x256xf32>
    %328 = arith.mulf %325, %327 : vector<8x256xf32>
    %c32_336 = arith.constant 32 : index
    %c0_337 = arith.constant 0 : index
    %329 = vector.load %arg20[%c32_336, %c0_337] : memref<144x256xf32, #tpu.memory_space<vmem>>, vector<8x256xf32>
    tpu.vector_store %arg20[%c32_336, %c0_337], %328 {strides = array<i32>} : memref<144x256xf32, #tpu.memory_space<vmem>>, vector<8x256xf32>,
    %c0_338 = arith.constant 0 : index
    %c129_339 = arith.constant 129 : index
    %330 = vector.load %arg19[%c0_338, %c129_339] : memref<8x512xf32, #tpu.memory_space<vmem>>, vector<8x256xf32>
    %c5_340 = arith.constant 5 : index
    %c0_341 = arith.constant 0 : index
    %331 = vector.load %arg3[%c5_340, %c0_341] : memref<9x256xf32, #tpu.memory_space<vmem>>, vector<1x256xf32>
    %332 = vector.broadcast %331 : vector<1x256xf32> to vector<8x256xf32>
    %333 = arith.mulf %330, %332 : vector<8x256xf32>
    %c40_342 = arith.constant 40 : index
    %c0_343 = arith.constant 0 : index
    %334 = vector.load %arg20[%c40_342, %c0_343] : memref<144x256xf32, #tpu.memory_space<vmem>>, vector<8x256xf32>
    tpu.vector_store %arg20[%c40_342, %c0_343], %333 {strides = array<i32>} : memref<144x256xf32, #tpu.memory_space<vmem>>, vector<8x256xf32>,
    %c0_344 = arith.constant 0 : index
    %c143_345 = arith.constant 143 : index
    %335 = vector.load %arg19[%c0_344, %c143_345] : memref<8x512xf32, #tpu.memory_space<vmem>>, vector<8x256xf32>
    %c6_346 = arith.constant 6 : index
    %c0_347 = arith.constant 0 : index
    %336 = vector.load %arg3[%c6_346, %c0_347] : memref<9x256xf32, #tpu.memory_space<vmem>>, vector<1x256xf32>
    %337 = vector.broadcast %336 : vector<1x256xf32> to vector<8x256xf32>
    %338 = arith.mulf %335, %337 : vector<8x256xf32>
    %c48_348 = arith.constant 48 : index
    %c0_349 = arith.constant 0 : index
    %339 = vector.load %arg20[%c48_348, %c0_349] : memref<144x256xf32, #tpu.memory_space<vmem>>, vector<8x256xf32>
    tpu.vector_store %arg20[%c48_348, %c0_349], %338 {strides = array<i32>} : memref<144x256xf32, #tpu.memory_space<vmem>>, vector<8x256xf32>,
    %c0_350 = arith.constant 0 : index
    %c144_351 = arith.constant 144 : index
    %340 = vector.load %arg19[%c0_350, %c144_351] : memref<8x512xf32, #tpu.memory_space<vmem>>, vector<8x256xf32>
    %c7_352 = arith.constant 7 : index
    %c0_353 = arith.constant 0 : index
    %341 = vector.load %arg3[%c7_352, %c0_353] : memref<9x256xf32, #tpu.memory_space<vmem>>, vector<1x256xf32>
    %342 = vector.broadcast %341 : vector<1x256xf32> to vector<8x256xf32>
    %343 = arith.mulf %340, %342 : vector<8x256xf32>
    %c56_354 = arith.constant 56 : index
    %c0_355 = arith.constant 0 : index
    %344 = vector.load %arg20[%c56_354, %c0_355] : memref<144x256xf32, #tpu.memory_space<vmem>>, vector<8x256xf32>
    tpu.vector_store %arg20[%c56_354, %c0_355], %343 {strides = array<i32>} : memref<144x256xf32, #tpu.memory_space<vmem>>, vector<8x256xf32>,
    %c0_356 = arith.constant 0 : index
    %c145_357 = arith.constant 145 : index
    %345 = vector.load %arg19[%c0_356, %c145_357] : memref<8x512xf32, #tpu.memory_space<vmem>>, vector<8x256xf32>
    %c8_358 = arith.constant 8 : index
    %c0_359 = arith.constant 0 : index
    %346 = vector.load %arg3[%c8_358, %c0_359] : memref<9x256xf32, #tpu.memory_space<vmem>>, vector<1x256xf32>
    %347 = vector.broadcast %346 : vector<1x256xf32> to vector<8x256xf32>
    %348 = arith.mulf %345, %347 : vector<8x256xf32>
    %c64_360 = arith.constant 64 : index
    %c0_361 = arith.constant 0 : index
    %349 = vector.load %arg20[%c64_360, %c0_361] : memref<144x256xf32, #tpu.memory_space<vmem>>, vector<8x256xf32>
    tpu.vector_store %arg20[%c64_360, %c0_361], %348 {strides = array<i32>} : memref<144x256xf32, #tpu.memory_space<vmem>>, vector<8x256xf32>,
    %c0_362 = arith.constant 0 : index
    %c128_363 = arith.constant 128 : index
    %350 = vector.load %arg19[%c0_362, %c128_363] : memref<8x512xf32, #tpu.memory_space<vmem>>, vector<8x256xf32>
    tpu.vector_store %arg19[%c0_362, %c128_363], %303 {strides = array<i32>} : memref<8x512xf32, #tpu.memory_space<vmem>>, vector<8x256xf32>,
    %c0_364 = arith.constant 0 : index
    %c111_365 = arith.constant 111 : index
    %351 = vector.load %arg19[%c0_364, %c111_365] : memref<8x512xf32, #tpu.memory_space<vmem>>, vector<8x256xf32>
    %c0_366 = arith.constant 0 : index
    %c0_367 = arith.constant 0 : index
    %352 = vector.load %arg3[%c0_366, %c0_367] : memref<9x256xf32, #tpu.memory_space<vmem>>, vector<1x256xf32>
    %353 = vector.broadcast %352 : vector<1x256xf32> to vector<8x256xf32>
    %354 = arith.mulf %351, %353 : vector<8x256xf32>
    %c72 = arith.constant 72 : index
    %c0_368 = arith.constant 0 : index
    %355 = vector.load %arg20[%c72, %c0_368] : memref<144x256xf32, #tpu.memory_space<vmem>>, vector<8x256xf32>
    tpu.vector_store %arg20[%c72, %c0_368], %354 {strides = array<i32>} : memref<144x256xf32, #tpu.memory_space<vmem>>, vector<8x256xf32>,
    %c0_369 = arith.constant 0 : index
    %c112_370 = arith.constant 112 : index
    %356 = vector.load %arg19[%c0_369, %c112_370] : memref<8x512xf32, #tpu.memory_space<vmem>>, vector<8x256xf32>
    %c1_371 = arith.constant 1 : index
    %c0_372 = arith.constant 0 : index
    %357 = vector.load %arg3[%c1_371, %c0_372] : memref<9x256xf32, #tpu.memory_space<vmem>>, vector<1x256xf32>
    %358 = vector.broadcast %357 : vector<1x256xf32> to vector<8x256xf32>
    %359 = arith.mulf %356, %358 : vector<8x256xf32>
    %c80 = arith.constant 80 : index
    %c0_373 = arith.constant 0 : index
    %360 = vector.load %arg20[%c80, %c0_373] : memref<144x256xf32, #tpu.memory_space<vmem>>, vector<8x256xf32>
    tpu.vector_store %arg20[%c80, %c0_373], %359 {strides = array<i32>} : memref<144x256xf32, #tpu.memory_space<vmem>>, vector<8x256xf32>,
    %c0_374 = arith.constant 0 : index
    %c113_375 = arith.constant 113 : index
    %361 = vector.load %arg19[%c0_374, %c113_375] : memref<8x512xf32, #tpu.memory_space<vmem>>, vector<8x256xf32>
    %c2_376 = arith.constant 2 : index
    %c0_377 = arith.constant 0 : index
    %362 = vector.load %arg3[%c2_376, %c0_377] : memref<9x256xf32, #tpu.memory_space<vmem>>, vector<1x256xf32>
    %363 = vector.broadcast %362 : vector<1x256xf32> to vector<8x256xf32>
    %364 = arith.mulf %361, %363 : vector<8x256xf32>
    %c88 = arith.constant 88 : index
    %c0_378 = arith.constant 0 : index
    %365 = vector.load %arg20[%c88, %c0_378] : memref<144x256xf32, #tpu.memory_space<vmem>>, vector<8x256xf32>
    tpu.vector_store %arg20[%c88, %c0_378], %364 {strides = array<i32>} : memref<144x256xf32, #tpu.memory_space<vmem>>, vector<8x256xf32>,
    %c0_379 = arith.constant 0 : index
    %c127_380 = arith.constant 127 : index
    %366 = vector.load %arg19[%c0_379, %c127_380] : memref<8x512xf32, #tpu.memory_space<vmem>>, vector<8x256xf32>
    %c3_381 = arith.constant 3 : index
    %c0_382 = arith.constant 0 : index
    %367 = vector.load %arg3[%c3_381, %c0_382] : memref<9x256xf32, #tpu.memory_space<vmem>>, vector<1x256xf32>
    %368 = vector.broadcast %367 : vector<1x256xf32> to vector<8x256xf32>
    %369 = arith.mulf %366, %368 : vector<8x256xf32>
    %c96 = arith.constant 96 : index
    %c0_383 = arith.constant 0 : index
    %370 = vector.load %arg20[%c96, %c0_383] : memref<144x256xf32, #tpu.memory_space<vmem>>, vector<8x256xf32>
    tpu.vector_store %arg20[%c96, %c0_383], %369 {strides = array<i32>} : memref<144x256xf32, #tpu.memory_space<vmem>>, vector<8x256xf32>,
    %c0_384 = arith.constant 0 : index
    %c128_385 = arith.constant 128 : index
    %371 = vector.load %arg19[%c0_384, %c128_385] : memref<8x512xf32, #tpu.memory_space<vmem>>, vector<8x256xf32>
    %c4_386 = arith.constant 4 : index
    %c0_387 = arith.constant 0 : index
    %372 = vector.load %arg3[%c4_386, %c0_387] : memref<9x256xf32, #tpu.memory_space<vmem>>, vector<1x256xf32>
    %373 = vector.broadcast %372 : vector<1x256xf32> to vector<8x256xf32>
    %374 = arith.mulf %371, %373 : vector<8x256xf32>
    %c104 = arith.constant 104 : index
    %c0_388 = arith.constant 0 : index
    %375 = vector.load %arg20[%c104, %c0_388] : memref<144x256xf32, #tpu.memory_space<vmem>>, vector<8x256xf32>
    tpu.vector_store %arg20[%c104, %c0_388], %374 {strides = array<i32>} : memref<144x256xf32, #tpu.memory_space<vmem>>, vector<8x256xf32>,
    %c0_389 = arith.constant 0 : index
    %c129_390 = arith.constant 129 : index
    %376 = vector.load %arg19[%c0_389, %c129_390] : memref<8x512xf32, #tpu.memory_space<vmem>>, vector<8x256xf32>
    %c5_391 = arith.constant 5 : index
    %c0_392 = arith.constant 0 : index
    %377 = vector.load %arg3[%c5_391, %c0_392] : memref<9x256xf32, #tpu.memory_space<vmem>>, vector<1x256xf32>
    %378 = vector.broadcast %377 : vector<1x256xf32> to vector<8x256xf32>
    %379 = arith.mulf %376, %378 : vector<8x256xf32>
    %c112_393 = arith.constant 112 : index
    %c0_394 = arith.constant 0 : index
    %380 = vector.load %arg20[%c112_393, %c0_394] : memref<144x256xf32, #tpu.memory_space<vmem>>, vector<8x256xf32>
    tpu.vector_store %arg20[%c112_393, %c0_394], %379 {strides = array<i32>} : memref<144x256xf32, #tpu.memory_space<vmem>>, vector<8x256xf32>,
    %c0_395 = arith.constant 0 : index
    %c143_396 = arith.constant 143 : index
    %381 = vector.load %arg19[%c0_395, %c143_396] : memref<8x512xf32, #tpu.memory_space<vmem>>, vector<8x256xf32>
    %c6_397 = arith.constant 6 : index
    %c0_398 = arith.constant 0 : index
    %382 = vector.load %arg3[%c6_397, %c0_398] : memref<9x256xf32, #tpu.memory_space<vmem>>, vector<1x256xf32>
    %383 = vector.broadcast %382 : vector<1x256xf32> to vector<8x256xf32>
    %384 = arith.mulf %381, %383 : vector<8x256xf32>
    %c120 = arith.constant 120 : index
    %c0_399 = arith.constant 0 : index
    %385 = vector.load %arg20[%c120, %c0_399] : memref<144x256xf32, #tpu.memory_space<vmem>>, vector<8x256xf32>
    tpu.vector_store %arg20[%c120, %c0_399], %384 {strides = array<i32>} : memref<144x256xf32, #tpu.memory_space<vmem>>, vector<8x256xf32>,
    %c0_400 = arith.constant 0 : index
    %c144_401 = arith.constant 144 : index
    %386 = vector.load %arg19[%c0_400, %c144_401] : memref<8x512xf32, #tpu.memory_space<vmem>>, vector<8x256xf32>
    %c7_402 = arith.constant 7 : index
    %c0_403 = arith.constant 0 : index
    %387 = vector.load %arg3[%c7_402, %c0_403] : memref<9x256xf32, #tpu.memory_space<vmem>>, vector<1x256xf32>
    %388 = vector.broadcast %387 : vector<1x256xf32> to vector<8x256xf32>
    %389 = arith.mulf %386, %388 : vector<8x256xf32>
    %c128_404 = arith.constant 128 : index
    %c0_405 = arith.constant 0 : index
    %390 = vector.load %arg20[%c128_404, %c0_405] : memref<144x256xf32, #tpu.memory_space<vmem>>, vector<8x256xf32>
    tpu.vector_store %arg20[%c128_404, %c0_405], %389 {strides = array<i32>} : memref<144x256xf32, #tpu.memory_space<vmem>>, vector<8x256xf32>,
    %c0_406 = arith.constant 0 : index
    %c145_407 = arith.constant 145 : index
    %391 = vector.load %arg19[%c0_406, %c145_407] : memref<8x512xf32, #tpu.memory_space<vmem>>, vector<8x256xf32>
    %c8_408 = arith.constant 8 : index
    %c0_409 = arith.constant 0 : index
    %392 = vector.load %arg3[%c8_408, %c0_409] : memref<9x256xf32, #tpu.memory_space<vmem>>, vector<1x256xf32>
    %393 = vector.broadcast %392 : vector<1x256xf32> to vector<8x256xf32>
    %394 = arith.mulf %391, %393 : vector<8x256xf32>
    %c136 = arith.constant 136 : index
    %c0_410 = arith.constant 0 : index
    %395 = vector.load %arg20[%c136, %c0_410] : memref<144x256xf32, #tpu.memory_space<vmem>>, vector<8x256xf32>
    tpu.vector_store %arg20[%c136, %c0_410], %394 {strides = array<i32>} : memref<144x256xf32, #tpu.memory_space<vmem>>, vector<8x256xf32>,
    %c0_411 = arith.constant 0 : index
    %c0_412 = arith.constant 0 : index
    %396 = vector.load %arg15[%c0_411, %c0_412] : memref<8x144xbf16, #tpu.memory_space<vmem>>, vector<8x144xbf16>
    %c0_413 = arith.constant 0 : index
    %c0_414 = arith.constant 0 : index
    %397 = vector.load %arg20[%c0_413, %c0_414] : memref<144x256xf32, #tpu.memory_space<vmem>>, vector<144x256xf32>
    %398 = arith.truncf %397 : vector<144x256xf32> to vector<144x256xbf16>
    %cst_415 = arith.constant dense<0.000000e+00> : vector<8x256xf32>
    %399 = tpu.matmul %396, %398, %cst_415 {dimension_numbers = #tpu.dot_dimension_numbers<[1], [0], [0], [1], [0, 0, 1, 1], [], []>} : vector<8x144xbf16>, vector<144x256xbf16>, vector<8x256xf32> -> vector<8x256xf32>
    %c0_416 = arith.constant 0 : index
    %c0_417 = arith.constant 0 : index
    %400 = vector.load %arg16[%c0_416, %c0_417] : memref<8x2xf32, #tpu.memory_space<vmem>>, vector<8x1xf32>
    %401 = vector.broadcast %400 : vector<8x1xf32> to vector<8x256xf32>
    %402 = arith.mulf %399, %401 : vector<8x256xf32>
    %c0_418 = arith.constant 0 : index
    %c1_419 = arith.constant 1 : index
    %403 = vector.load %arg16[%c0_418, %c1_419] : memref<8x2xf32, #tpu.memory_space<vmem>>, vector<8x1xf32>
    %404 = vector.broadcast %403 : vector<8x1xf32> to vector<8x256xf32>
    %405 = arith.addf %402, %404 : vector<8x256xf32>
    %406 = vector.extract_strided_slice %405 {offsets = [0, 0], sizes = [1, 256], strides = [1, 1]} : vector<8x256xf32> to vector<1x256xf32>
    %407 = vector.broadcast %406 : vector<1x256xf32> to vector<8x256xf32>
    %408 = arith.mulf %407, %123 : vector<8x256xf32>
    %409 = vector.shape_cast %408 : vector<8x256xf32> to vector<1x8x256xf32>
    %c0_420 = arith.constant 0 : index
    %c0_421 = arith.constant 0 : index
    %c0_422 = arith.constant 0 : index
    %410 = vector.load %arg18[%c0_420, %c0_421, %c0_422] : memref<1x8x256xf32, #tpu.memory_space<vmem>>, vector<1x8x256xf32>
    tpu.vector_store %arg18[%c0_420, %c0_421, %c0_422], %409 {strides = array<i32>} : memref<1x8x256xf32, #tpu.memory_space<vmem>>, vector<1x8x256xf32>,
    return
  }
  func.func @transform_0(%arg0: i32) -> (i32, i32, i32) {
    %c0_i32 = arith.constant 0 : i32
    %c0_i32_0 = arith.constant 0 : i32
    %c0_i32_1 = arith.constant 0 : i32
    return %arg0, %c0_i32, %c0_i32_0 : i32, i32, i32
  }
  func.func @transform_1(%arg0: i32) -> (i32, i32, i32) {
    %c0_i32 = arith.constant 0 : i32
    %c0_i32_0 = arith.constant 0 : i32
    %c0_i32_1 = arith.constant 0 : i32
    return %arg0, %c0_i32, %c0_i32_0 : i32, i32, i32
  }
  func.func @transform_2(%arg0: i32) -> (i32, i32) {
    %c0_i32 = arith.constant 0 : i32
    %c0_i32_0 = arith.constant 0 : i32
    %c0_i32_1 = arith.constant 0 : i32
    return %c0_i32, %c0_i32_0 : i32, i32
  }
  func.func @transform_3(%arg0: i32) -> (i32, i32) {
    %c0_i32 = arith.constant 0 : i32
    %c0_i32_0 = arith.constant 0 : i32
    %c0_i32_1 = arith.constant 0 : i32
    return %c0_i32, %c0_i32_0 : i32, i32
  }
  func.func @transform_4(%arg0: i32) -> (i32, i32) {
    %c0_i32 = arith.constant 0 : i32
    %c0_i32_0 = arith.constant 0 : i32
    %c0_i32_1 = arith.constant 0 : i32
    return %c0_i32, %c0_i32_0 : i32, i32
  }
  func.func @transform_5(%arg0: i32) -> (i32, i32) {
    %c0_i32 = arith.constant 0 : i32
    %c0_i32_0 = arith.constant 0 : i32
    %c0_i32_1 = arith.constant 0 : i32
    return %c0_i32, %c0_i32_0 : i32, i32
  }
  func.func @transform_6(%arg0: i32) -> (i32, i32) {
    %c0_i32 = arith.constant 0 : i32
    %c0_i32_0 = arith.constant 0 : i32
    %c0_i32_1 = arith.constant 0 : i32
    return %c0_i32, %c0_i32_0 : i32, i32
  }
  func.func @transform_7(%arg0: i32) -> (i32, i32) {
    %c0_i32 = arith.constant 0 : i32
    %c0_i32_0 = arith.constant 0 : i32
    %c0_i32_1 = arith.constant 0 : i32
    return %c0_i32, %c0_i32_0 : i32, i32
  }
  func.func @transform_8(%arg0: i32) -> (i32, i32) {
    %c0_i32 = arith.constant 0 : i32
    %c0_i32_0 = arith.constant 0 : i32
    %c0_i32_1 = arith.constant 0 : i32
    return %c0_i32, %c0_i32_0 : i32, i32
  }
  func.func @transform_9(%arg0: i32) -> (i32, i32) {
    %c0_i32 = arith.constant 0 : i32
    %c0_i32_0 = arith.constant 0 : i32
    %c0_i32_1 = arith.constant 0 : i32
    return %c0_i32, %c0_i32_0 : i32, i32
  }
  func.func @transform_10(%arg0: i32) -> (i32, i32) {
    %c0_i32 = arith.constant 0 : i32
    %c0_i32_0 = arith.constant 0 : i32
    %c0_i32_1 = arith.constant 0 : i32
    return %c0_i32, %c0_i32_0 : i32, i32
  }
  func.func @transform_11(%arg0: i32) -> (i32, i32) {
    %c0_i32 = arith.constant 0 : i32
    %c0_i32_0 = arith.constant 0 : i32
    %c0_i32_1 = arith.constant 0 : i32
    return %c0_i32, %c0_i32_0 : i32, i32
  }
  func.func @transform_12(%arg0: i32) -> (i32, i32) {
    %c0_i32 = arith.constant 0 : i32
    %c0_i32_0 = arith.constant 0 : i32
    %c0_i32_1 = arith.constant 0 : i32
    return %c0_i32, %c0_i32_0 : i32, i32
  }
  func.func @transform_13(%arg0: i32) -> (i32, i32) {
    %c0_i32 = arith.constant 0 : i32
    %c0_i32_0 = arith.constant 0 : i32
    %c0_i32_1 = arith.constant 0 : i32
    return %c0_i32, %c0_i32_0 : i32, i32
  }
  func.func @transform_14(%arg0: i32) -> (i32, i32) {
    %c0_i32 = arith.constant 0 : i32
    %c0_i32_0 = arith.constant 0 : i32
    %c0_i32_1 = arith.constant 0 : i32
    return %c0_i32, %c0_i32_0 : i32, i32
  }
  func.func @transform_15(%arg0: i32) -> (i32, i32) {
    %c0_i32 = arith.constant 0 : i32
    %c0_i32_0 = arith.constant 0 : i32
    %c0_i32_1 = arith.constant 0 : i32
    return %c0_i32, %c0_i32_0 : i32, i32
  }
  func.func @transform_16(%arg0: i32) -> (i32, i32, i32) {
    %c0_i32 = arith.constant 0 : i32
    %c0_i32_0 = arith.constant 0 : i32
    %c0_i32_1 = arith.constant 0 : i32
    return %arg0, %c0_i32, %c0_i32_0 : i32, i32, i32
  }
  func.func @transform_17(%arg0: i32) -> (i32, i32, i32) {
    %c0_i32 = arith.constant 0 : i32
    %c0_i32_0 = arith.constant 0 : i32
    %c0_i32_1 = arith.constant 0 : i32
    return %arg0, %c0_i32, %c0_i32_0 : i32, i32, i32
  }
}

</mosaic_0001>

<bundles_post_ra>
// kernel: decode_module_forward.1
= control target key start
LH: loop header
LB: loop body
LE: loop exit
PB: predicated region body
PF: predicated region fallthrough
CT: control target
= control target key end

     0   :  { %s3940_s24 = smov 0   ;;  %s5343_s0 = inlined_call_operand.vmem [shape: f32[2,4,256], index: 0, kind: input, shape index: {}]   ;;  %s5344_s1 = inlined_call_operand.vmem [shape: f32[2,4,256], index: 1, kind: input, shape index: {}]   ;;  %s5345_s2 = inlined_call_operand.vmem [shape: f32[9,256], index: 2, kind: input, shape index: {}]   ;;  %s5346_s3 = inlined_call_operand.vmem [shape: f32[9,256], index: 3, kind: input, shape index: {}]   ;;  %s5347_s4 = inlined_call_operand.vmem [shape: bf16[8,36], index: 4, kind: input, shape index: {}]   ;;  %s5348_s5 = inlined_call_operand.vmem [shape: f32[8,2], index: 5, kind: input, shape index: {}]   ;;  %s5349_s6 = inlined_call_operand.vmem [shape: bf16[8,36], index: 6, kind: input, shape index: {}]   ;;  %s5350_s7 = inlined_call_operand.vmem [shape: f32[8,2], index: 7, kind: input, shape index: {}]   ;;  %s5351_s8 = inlined_call_operand.vmem [shape: bf16[8,72], index: 8, kind: input, shape index: {}]   ;;  %s5352_s9 = inlined_call_operand.vmem [shape: f32[8,2], index: 9, kind: input, shape index: {}]   ;;  %s5353_s10 = inlined_call_operand.vmem [shape: bf16[8,72], index: 10, kind: input, shape index: {}]   ;;  %s5354_s11 = inlined_call_operand.vmem [shape: f32[8,2], index: 11, kind: input, shape index: {}]   ;;  %s5355_s12 = inlined_call_operand.vmem [shape: bf16[8,72], index: 12, kind: input, shape index: {}]   ;;  %s5356_s13 = inlined_call_operand.vmem [shape: f32[8,2], index: 13, kind: input, shape index: {}]   ;;  %s5357_s14 = inlined_call_operand.vmem [shape: bf16[8,144], index: 14, kind: input, shape index: {}]   ;;  %s5358_s15 = inlined_call_operand.vmem [shape: f32[8,2], index: 15, kind: input, shape index: {}]   ;;  %s5359_s16 = inlined_call_operand.vmem [shape: f32[2,8,256], index: 16, kind: output, shape index: {0}]   ;;  %s5360_s17 = inlined_call_operand.vmem [shape: f32[2,8,256], index: 17, kind: output, shape index: {1}]  }
   0x1   :  { %5394 = sst [smem:[#allocation4_spill]] %s5343_s0 }
   0x2   :  { %5395 = sst [smem:[#allocation5_spill]] %s5344_s1 }
   0x3   :  { %5396 = sst [smem:[#allocation6_spill]] %s5347_s4 }
   0x4   :  { %5397 = sst [smem:[#allocation7_spill]] %s5348_s5 }
   0x5   :  { %5398 = sst [smem:[#allocation8_spill]] %s5349_s6 }
   0x6   :  { %5399 = sst [smem:[#allocation9_spill]] %s5350_s7 }
   0x7 LB: > { %s3683_s25 = sadd.s32 4294967295, %s3829_s24   ;;  %p3687_p0 = scmp.ge.s32.totalorder %s3829_s24, 1  ;;  %s3829_s24 = sphi %s3940_s24, %s28_s24  }
   0x8   : > { %p500_p1 = scmp.lt.s32.totalorder %s3829_s24, 3 }
   0xa   : > { %p501_p2 = pnand %p3687_p0, %p500_p1 }
   0xb   : > { %v599_v0 = vlaneseq (!%p501_p2)  ;;  %v3831_v1 = vmov (!%p501_p2), 0.0   ;;  %v3698_v3 = vld [vmem:[%s5345_s2 + $0x3] ss:$8 sm:$0x3] (!%p501_p2)  ;;  %p562_p3 = scmp.lt.s32.totalorder (!%p501_p2), %s3683_s25, 1  ;;  %s5372_s0 = smov (!%p501_p2), 127  }
   0xc   : > { %504 = sbr.rel (%p501_p2) target bundleno = 1733 (0x6c5), region = 84  ;;  %583 = vst [vmem:[#allocation2] sm:$0xff] (!%p501_p2), %v3831_v1  ;;  %584 = vst [vmem:[#allocation2 + $0x8] sm:$0xff] (!%p501_p2), %v3831_v1  ;;  %v3696_v4 = vld [vmem:[%s5345_s2 + $0x1] ss:$8 sm:$0x3] (!%p501_p2) }
   0xd   : > { %585 = vst [vmem:[#allocation2 + $0x10] sm:$0xff] (!%p501_p2), %v3831_v1  ;;  %586 = vst [vmem:[#allocation2 + $0x18] sm:$0xff] (!%p501_p2), %v3831_v1  ;;  %v600_v2 = vshrl.u32 (!%p501_p2), %v599_v0, 7  ;;  %s5365_s30 = smov (!%p501_p2), 112   ;;  %s5400_s22 = sld [smem:[#allocation4_spill]] (!%p501_p2)  ;;  %v3840_v31 = vmov (!%p501_p2), 1  }
   0xe   : > { %v597_v11 = vld [vmem:[%s5345_s2] ss:$8 sm:$0x3] (!%p501_p2)  ;;  %v3697_v16 = vld [vmem:[%s5345_s2 + $0x2] ss:$8 sm:$0x3] (!%p501_p2)  ;;  %3801 = vset.pattern.permute.xlu1 (!%p501_p2), %v3840_v31 }
   0xf   : > { %v3954_v5 = vsub.s32 (!%p501_p2), 0, %v600_v2  ;;  %v3956_v6 = vsub.s32 (!%p501_p2), 1, %v600_v2  ;;  %s5374_s28 = smov (!%p501_p2), 111   ;;  %v3700_v19 = vld [vmem:[%s5345_s2 + $0x5] ss:$8 sm:$0x3] (!%p501_p2) }
  0x10   : > { %s5376_s19 = smov (!%p501_p2), 113   ;;  %v3702_v22 = vld [vmem:[%s5345_s2 + $0x7] ss:$8 sm:$0x3] (!%p501_p2)  ;;  %s5368_s27 = smov (!%p501_p2), 16   ;;  %v3841_v32 = vmov (!%p501_p2), 0  }
  0x11   : > { %v731_v7 = vrot.slane (!%p501_p2), %v3698_v3, %v3954_v5  ;;  %v644_v8 = vrot.slane (!%p501_p2), %v3696_v4, %v3954_v5  ;;  %v735_v9 = vrot.slane (!%p501_p2), %v3698_v3, %v3956_v6  ;;  %v648_v10 = vrot.slane (!%p501_p2), %v3696_v4, %v3956_v6  ;;  %v3701_v25 = vld [vmem:[%s5345_s2 + $0x6] ss:$8 sm:$0x3] (!%p501_p2)  ;;  %v3703_v28 = vld [vmem:[%s5345_s2 + $0x10] ss:$8 sm:$0x3] (!%p501_p2)  ;;  %3800 = vset.pattern.permute.xlu0 (!%p501_p2), %v3841_v32 }
  0x12   : > { %v606_v13 = vrot.slane (!%p501_p2), %v597_v11, %v3956_v6  ;;  %v602_v14 = vrot.slane (!%p501_p2), %v597_v11, %v3954_v5  ;;  %v693_v17 = vrot.slane (!%p501_p2), %v3697_v16, %v3956_v6  ;;  %v689_v18 = vrot.slane (!%p501_p2), %v3697_v16, %v3954_v5  ;;  %s5363_s20 = smov (!%p501_p2), 15   ;;  %s5361_s21 = smov (!%p501_p2), 17   ;;  %1012 = vmatprep.mubr.bf16.mxu0 (!%p501_p2), %v3841_v32 }
  0x13   : > { %s5427_s25 = smov (!%p562_p3, %s3683_s25), 1  ;;  %736 = vrot.lane.b32.xlu1 %v731_v7, %s5372_s0  ;;  %649 = vrot.lane.b32.xlu0 %v644_v8, %s5365_s30  ;;  %v799_v20 = vrot.slane %v3700_v19, %v3956_v6  ;;  %v795_v21 = vrot.slane %v3700_v19, %v3954_v5  ;;  %v882_v23 = vrot.slane %v3702_v22, %v3956_v6  ;;  %v594_v38 = vld [vmem:[#allocation2] sm:$0xf]  ;;  %vm611_vm0 = vcmask 908288   ;;  %s5401_s29 = sld [smem:[#allocation5_spill]] }
  0x14   : > { %s3769_s1 = sshll.u32 %s5427_s25, 3  ;;  %v878_v24 = vrot.slane %v3702_v22, %v3954_v5  ;;  %v842_v26 = vrot.slane %v3701_v25, %v3956_v6  ;;  %v838_v27 = vrot.slane %v3701_v25, %v3954_v5  ;;  %v925_v29 = vrot.slane %v3703_v28, %v3956_v6  ;;  %2320 = vmatprep.mubr.bf16.mxu1 %v3841_v32  ;;  %v680_v44 = vld [vmem:[#allocation2] sm:$0xf]  ;;  %v831_v59 = vld [vmem:[#allocation2 + $0x18] sm:$0xf]  ;;  %s5402_s5 = sld [smem:[#allocation7_spill]] }
  0x15   : > { %s566_s23 = scalar_lea.vmem %s5400_s22, %s3769_s1  ;;  %s5370_s22 = smov 1   ;;  %v921_v30 = vrot.slane %v3703_v28, %v3954_v5  ;;  %vm698_vm1 = vcmask 924672   ;;  %vm715_vm2 = vcmask 121856   ;;  %vm653_vm3 = vcmask 916480  }
  0x16   : > { %v587_v12 = vld [vmem:[%s566_s23] sm:$0xff]  ;;  %vm740_vm4 = vcmask 1039360   ;;  %vm760_vm5 = vcmask 7168   ;;  %vm673_vm6 = vcmask 130048   ;;  %vm628_vm7 = vcmask 138240   ;;  %s5403_s26 = smov 15  }
  0x17   : > { %738 = vrot.lane.b32.xlu1 %v735_v9, %s5372_s0  ;;  %651 = vrot.lane.b32.xlu0 %v648_v10, %s5365_s30  ;;  %v590_v15 = vcombine.high %v587_v12, %v587_v12  ;;  %592 = vst [vmem:[#allocation2 + $0x8] sm:$0xf] %v587_v12  ;;  %vm973_vm8 = vcmask 1041408   ;;  %s5405_s4 = sld [smem:[#allocation6_spill]]  ;;  %vm969_vm9 = vcmask 293888   ;;  %s5406_s6 = sld [smem:[#allocation8_spill]] }
  0x18   : > { %s5408_s7 = sld [smem:[#allocation9_spill]]  ;;  %s5411_s23 = smov 16   ;;  %vm1834_vm10 = vcmask 1043456   ;;  %vm1830_vm11 = vcmask 588800   ;;  %vm5392_vm12 = vcmask 351232   ;;  %vm5393_vm13 = vcmask 392192  }
  0x19   : > { %593 = vst [vmem:[#allocation2 + $0x10] sm:$0xf] %v590_v15  ;;  %s571_s18 = scalar_lea.vmem %s5401_s29, %s3769_s1  ;;  %s5404_s1 = smov 17   ;;  %vm2448_vm14 = vcmask 433152   ;;  %vm2490_vm15 = vcmask 1006592  }
  0x1a   : > { %v588_v19 = vld [vmem:[%s571_s18] sm:$0xff]  ;;  %s5367_s29 = sshll.u32 %s5427_s25, 4  ;;  %s3849_s18 = smov 85  }
  0x1b   : > { %609 = vrot.lane.b32.xlu1 %v606_v13, %s5374_s28  ;;  %607 = vrot.lane.b32.xlu0 %v602_v14, %s5374_s28 }
  0x1e   : > { %v595_v50 = vld [vmem:[#allocation2 + $0x8] sm:$0xf] }
  0x1f   : > { %696 = vrot.lane.b32.xlu1 %v693_v17, %s5376_s19  ;;  %694 = vrot.lane.b32.xlu0 %v689_v18, %s5376_s19  ;;  %v681_v55 = vld [vmem:[#allocation2 + $0x8] sm:$0xf]  ;;  %v3699_v17 = vld [vmem:[%s5345_s2 + $0x4] ss:$8 sm:$0x3] }
  0x20   : > { %v596_v37 = vld [vmem:[#allocation2 + $0x10] sm:$0xf]  ;;  %v786_v60 = vld [vmem:[#allocation2 + $0x8] sm:$0xf]  ;;  %v775_v18 = vrot.slane %v3699_v17, %v3954_v5 }
  0x21   : > { %v682_v43 = vld [vmem:[#allocation2 + $0x10] sm:$0xf]  ;;  %v829_v0 = vld [vmem:[#allocation2 + $0x8] sm:$0xf] }
  0x22   : > { %v830_v61 = vld [vmem:[#allocation2 + $0x10] sm:$0xf]  ;;  %v869_v7 = vld [vmem:[#allocation2 + $0x8] sm:$0xf] }
  0x23   : > { %802 = vrot.lane.b32.xlu1 %v799_v20, %s5370_s22  ;;  %800 = vrot.lane.b32.xlu0 %v795_v21, %s5370_s22  ;;  %v912_v10 = vld [vmem:[#allocation2 + $0x8] sm:$0xf]  ;;  %v637_v11 = vld [vmem:[#allocation2 + $0x10] sm:$0xf] }
  0x24   : > { %v636_v16 = vld [vmem:[#allocation2 + $0x8] sm:$0xf] }
  0x25   : > { %v723_v21 = vld [vmem:[#allocation2 + $0x8] sm:$0xf] }
  0x26   : > { %v767_v22 = vld [vmem:[#allocation2 + $0x8] sm:$0xf] }
  0x27   : > { %885 = vrot.lane.b32.xlu1 %v882_v23, %s5368_s27  ;;  %883 = vrot.lane.b32.xlu0 %v878_v24, %s5368_s27  ;;  %v724_v23 = vld [vmem:[#allocation2 + $0x10] sm:$0xf]  ;;  %1042 = vst [vmem:[#allocation2 + $0x8] sm:$0xf] %v588_v19 }
  0x2b   : > { %845 = vrot.lane.b32.xlu1 %v842_v26, %s5363_s20  ;;  %843 = vrot.lane.b32.xlu0 %v838_v27, %s5363_s20  ;;  %v782_v26 = vmul.f32 %v775_v18, %v767_v22  ;;  %v3712_v18 = vld [vmem:[%s5345_s2 + $0x7] ss:$8 sm:$0x3] }
  0x2d   : > { %784 = vst [vmem:[#allocation3 + $0x20] sm:$0xf] %v782_v26 }
  0x2f   : > { %928 = vrot.lane.b32.xlu1 %v925_v29, %s5361_s21  ;;  %926 = vrot.lane.b32.xlu0 %v921_v30, %s5361_s21  ;;  %v1040_v29 = vcombine.high %v588_v19, %v588_v19 }
  0x85   : > { %v4020_v33 = vpop.permute.xlu1 %736  ;;  %v4022_v34 = vpop.permute.xlu0 %649 }
  0x89   : > { %v4024_v35 = vpop.permute.xlu1 %738  ;;  %v652_v36 = vpop.permute.xlu0 %651 }
  0x8a   : > { %v654_v14 = vsel %vm653_vm3, %v4022_v34, %v652_v36  ;;  %v660_v20 = vmul.f32 %v652_v36, %v637_v11  ;;  %v741_v27 = vsel %vm740_vm4, %v4020_v33, %v4024_v35  ;;  %v747_v28 = vmul.f32 %v4024_v35, %v724_v23  ;;  %v635_v36 = vld [vmem:[#allocation2] sm:$0xf] }
  0x8b   : > { %v659_v25 = vmul.f32 %v654_v14, %v636_v16  ;;  %v658_v35 = vmul.f32 %v4022_v34, %v635_v36 }
  0x8c   : > { %v666_v30 = vrot.slane %v660_v20, 4  ;;  %v1317_v20 = vrot.slane %v3712_v18, %v3956_v6 }
  0x8d   : > { %v610_v39 = vpop.permute.xlu1 %609  ;;  %v608_v40 = vpop.permute.xlu0 %607 }
  0x8e   : > { %v618_v41 = vmul.f32 %v610_v39, %v596_v37  ;;  %v616_v42 = vmul.f32 %v608_v40, %v594_v38  ;;  %v612_v49 = vsel %vm611_vm0, %v608_v40, %v610_v39  ;;  %v665_v37 = vrot.slane %v659_v25, 4  ;;  %v787_v40 = vld [vmem:[#allocation2 + $0x10] sm:$0xf] }
  0x8f   : > { %v617_v53 = vmul.f32 %v612_v49, %v595_v50  ;;  %v746_v38 = vmul.f32 %v741_v27, %v723_v21  ;;  %v3711_v21 = vld [vmem:[%s5345_s2 + $0x6] ss:$8 sm:$0x3]  ;;  %v1313_v25 = vrot.slane %v3712_v18, %v3954_v5  ;;  %v1474_v27 = vld [vmem:[%s5345_s2] ss:$8 sm:$0x3] }
  0x90   : > { %622 = vrot.lane.b32.xlu0 %v616_v42, %s5361_s21  ;;  %626 = vrot.lane.b32.xlu1 %v618_v41, %s5361_s21  ;;  %v779_v41 = vrot.slane %v3699_v17, %v3956_v6  ;;  %v870_v42 = vld [vmem:[#allocation2 + $0x10] sm:$0xf]  ;;  %v1278_v23 = vrot.slane %v3711_v21, %v3956_v6  ;;  %v3709_v18 = vld [vmem:[%s5345_s2 + $0x4] ss:$8 sm:$0x3] }
  0x91   : > { %v697_v45 = vpop.permute.xlu1 %696  ;;  %v695_v46 = vpop.permute.xlu0 %694 }
  0x92   : > { %v705_v47 = vmul.f32 %v697_v45, %v682_v43  ;;  %v703_v48 = vmul.f32 %v695_v46, %v680_v44  ;;  %v699_v54 = vsel %vm698_vm1, %v695_v46, %v697_v45  ;;  %v913_v43 = vld [vmem:[#allocation2 + $0x10] sm:$0xf]  ;;  %v753_v45 = vrot.slane %v747_v28, 4 }
  0x93   : > { %v704_v58 = vmul.f32 %v699_v54, %v681_v55  ;;  %v768_v44 = vld [vmem:[#allocation2 + $0x10] sm:$0xf]  ;;  %v788_v54 = vld [vmem:[#allocation2 + $0x18] sm:$0xf]  ;;  %v1274_v28 = vrot.slane %v3711_v21, %v3954_v5 }
  0x94   : > { %709 = vrot.lane.b32.xlu0 %v703_v48, %s5363_s20  ;;  %713 = vrot.lane.b32.xlu1 %v705_v47, %s5363_s20  ;;  %v783_v46 = vmul.f32 %v779_v41, %v768_v44  ;;  %1043 = vst [vmem:[#allocation2 + $0x10] sm:$0xf] %v1040_v29  ;;  %v722_v47 = vld [vmem:[#allocation2] sm:$0xf]  ;;  %v752_v48 = vrot.slane %v746_v38, 4  ;;  %v1483_v29 = vrot.slane %v1474_v27, %v3956_v6 }
  0x95   : > { %v4031_v51 = vpop.permute.xlu1 %802  ;;  %v801_v52 = vpop.permute.xlu0 %800  ;;  %v3717_v38 = vld [vmem:[%s5345_s2 + $0x2] ss:$8 sm:$0x3]  ;;  %v3718_v41 = vld [vmem:[%s5345_s2 + $0x3] ss:$8 sm:$0x3] }
  0x96   : > { %v808_v3 = vmul.f32 %v801_v52, %v786_v60  ;;  %v804_v39 = vsel %vm760_vm5, %v801_v52, %v4031_v51  ;;  %785 = vst [vmem:[#allocation3 + $0x28] sm:$0xf] %v783_v46  ;;  %v745_v52 = vmul.f32 %v4020_v33, %v722_v47  ;;  %v871_v60 = vld [vmem:[#allocation2 + $0x18] sm:$0xf]  ;;  %v1596_v47 = vrot.slane %v3718_v41, %v3954_v5 }
  0x97   : > { %v809_v49 = vmul.f32 %v804_v39, %v787_v40  ;;  %v1479_v39 = vrot.slane %v1474_v27, %v3954_v5  ;;  %v1561_v40 = vrot.slane %v3717_v38, %v3956_v6  ;;  %v3720_v44 = vld [vmem:[%s5345_s2 + $0x5] ss:$8 sm:$0x3]  ;;  %v3721_v46 = vld [vmem:[%s5345_s2 + $0x6] ss:$8 sm:$0x3] }
  0x98   : > { %624 = vrot.lane.b32.xlu0 %v617_v53, %s5361_s21  ;;  %v814_v13 = vrot.slane %v808_v3, 4  ;;  %v664_v53 = vrot.slane %v658_v35, 4  ;;  %v3706_v3 = vld [vmem:[%s5345_s2 + $0x1] ss:$8 sm:$0x3]  ;;  %v1557_v35 = vrot.slane %v3717_v38, %v3954_v5  ;;  %s5409_s21 = smov 127  }
  0x99   : > { %v4035_v56 = vpop.permute.xlu1 %885  ;;  %v4037_v57 = vpop.permute.xlu0 %883  ;;  %v815_v34 = vrot.slane %v809_v49, 4  ;;  %v3722_v49 = vld [vmem:[%s5345_s2 + $0x7] ss:$8 sm:$0x3] }
  0x9a   : > { %v891_v12 = vmul.f32 %v4037_v57, %v869_v7  ;;  %v887_v50 = vsel %vm673_vm6, %v4037_v57, %v4035_v56  ;;  %v751_v57 = vrot.slane %v745_v52, 4  ;;  %v893_v33 = vmul.f32 %v4035_v56, %v871_v60  ;;  %v3708_v7 = vld [vmem:[%s5345_s2 + $0x3] ss:$8 sm:$0x3] }
  0x9b   : > { %v892_v55 = vmul.f32 %v887_v50, %v870_v42  ;;  %v1095_v56 = vrot.slane %v3706_v3, %v3956_v6  ;;  %v1653_v50 = vrot.slane %v3720_v44, %v3954_v5  ;;  %v1735_v52 = vrot.slane %v3722_v49, %v3956_v6 }
  0x9c   : > { %711 = vrot.lane.b32.xlu0 %v704_v58, %s5363_s20  ;;  %v897_v24 = vrot.slane %v891_v12, 4  ;;  %v3707_v12 = vld [vmem:[%s5345_s2 + $0x2] ss:$8 sm:$0x3]  ;;  %s5378_s20 = smov 43  }
  0x9d   : > { %v846_v62 = vpop.permute.xlu1 %845  ;;  %v844_v63 = vpop.permute.xlu0 %843  ;;  %v1137_v14 = vrot.slane %v3707_v12, %v3956_v6  ;;  %v1133_v19 = vrot.slane %v3707_v12, %v3954_v5 }
  0x9e   : > { %v853_v1 = vmul.f32 %v846_v62, %v831_v59  ;;  %v847_v2 = vsel %vm715_vm2, %v844_v63, %v846_v62  ;;  %v851_v8 = vmul.f32 %v844_v63, %v829_v0  ;;  %v810_v59 = vmul.f32 %v4031_v51, %v788_v54 }
  0x9f   : > { %v852_v4 = vmul.f32 %v847_v2, %v830_v61  ;;  %v898_v61 = vrot.slane %v892_v55, 4  ;;  %v899_v51 = vrot.slane %v893_v33, 4  ;;  %v1021_v2 = vld [vmem:[%s5402_s5] sm:$0xff]  ;;  %v1692_v54 = vrot.slane %v3721_v46, %v3954_v5 }
  0xa0   : > { %861 = vrot.lane.b32.xlu1 %v853_v1, %s5376_s19  ;;  %v816_v63 = vrot.slane %v810_v59, 4  ;;  %v914_v1 = vld [vmem:[#allocation2 + $0x18] sm:$0xf]  ;;  %v1731_v55 = vrot.slane %v3722_v49, %v3954_v5 }
  0xa1   : > { %859 = vrot.lane.b32.xlu0 %v852_v4, %s5376_s19  ;;  %v4043_v9 = vpop.permute.xlu0 %926  ;;  %v929_v58 = vpop.permute.xlu1 %928 }
  0xa2   : > { %v934_v15 = vmul.f32 %v4043_v9, %v912_v10  ;;  %v930_v62 = vsel %vm628_vm7, %v4043_v9, %v929_v58  ;;  %v936_v4 = vmul.f32 %v929_v58, %v914_v1  ;;  %v1047_v9 = vld [vmem:[%s5345_s2] ss:$8 sm:$0x3]  ;;  %v1091_v10 = vrot.slane %v3706_v3, %v3954_v5 }
  0xa3   : > { %v935_v0 = vmul.f32 %v930_v62, %v913_v43  ;;  %v1056_v11 = vrot.slane %v1047_v9, %v3956_v6  ;;  %v1052_v16 = vrot.slane %v1047_v9, %v3954_v5  ;;  %v1600_v43 = vrot.slane %v3718_v41, %v3956_v6 }
  0xa4   : > { %857 = vrot.lane.b32.xlu1 %v851_v8, %s5376_s19  ;;  %v1176_v8 = vrot.slane %v3708_v7, %v3956_v6  ;;  %v1217_v41 = vrot.slane %v3709_v18, %v3956_v6 }
  0xa5   : > { %817 = vrot.lane.b32.xlu0 %v814_v13, %s5372_s0  ;;  %v1172_v13 = vrot.slane %v3708_v7, %v3954_v5 }
  0xa8   : > { %940 = vrot.lane.b32.xlu1 %v934_v15, %s5374_s28  ;;  %v3710_v15 = vld [vmem:[%s5345_s2 + $0x5] ss:$8 sm:$0x3] }
  0xa9   : > { %900 = vrot.lane.b32.xlu0 %v897_v24, %s5365_s30  ;;  %v1236_v17 = vrot.slane %v3710_v15, %v3956_v6  ;;  %v1232_v22 = vrot.slane %v3710_v15, %v3954_v5  ;;  %v3713_v24 = vld [vmem:[%s5345_s2 + $0x10] ss:$8 sm:$0x3] }
  0xaa   : > { %v1359_v26 = vrot.slane %v3713_v24, %v3956_v6  ;;  %v1355_v36 = vrot.slane %v3713_v24, %v3954_v5  ;;  %v1206_v24 = vld [vmem:[#allocation2 + $0x8] sm:$0xf] }
  0xac   : > { %671 = vrot.lane.b32.xlu1 %v666_v30, %s5368_s27  ;;  %v3716_v30 = vld [vmem:[%s5345_s2 + $0x1] ss:$8 sm:$0x3] }
  0xad   : > { %669 = vrot.lane.b32.xlu0 %v665_v37, %s5368_s27  ;;  %v1522_v37 = vrot.slane %v3716_v30, %v3956_v6  ;;  %v1518_v42 = vrot.slane %v3716_v30, %v3954_v5 }
  0xb0   : > { %758 = vrot.lane.b32.xlu1 %v753_v45, %s5370_s22  ;;  %v1657_v45 = vrot.slane %v3720_v44, %v3956_v6 }
  0xb1   : > { %756 = vrot.lane.b32.xlu0 %v752_v48, %s5370_s22  ;;  %v1696_v48 = vrot.slane %v3721_v46, %v3956_v6 }
  0xb4   : > { %667 = vrot.lane.b32.xlu1 %v664_v53, %s5368_s27  ;;  %v3723_v53 = vld [vmem:[%s5345_s2 + $0x10] ss:$8 sm:$0x3] }
  0xb5   : > { %819 = vrot.lane.b32.xlu0 %v815_v34, %s5372_s0  ;;  %v1774_v34 = vrot.slane %v3723_v53, %v3956_v6  ;;  %v1770_v59 = vrot.slane %v3723_v53, %v3954_v5 }
  0xb8   : > { %754 = vrot.lane.b32.xlu1 %v751_v57, %s5370_s22 }
  0xb9   : > { %902 = vrot.lane.b32.xlu0 %v898_v61, %s5365_s30 }
  0xbc   : > { %821 = vrot.lane.b32.xlu1 %v816_v63, %s5372_s0 }
  0xbd   : > { %942 = vrot.lane.b32.xlu0 %v935_v0, %s5374_s28 }
  0xc0   : > { %904 = vrot.lane.b32.xlu1 %v899_v51, %s5365_s30 }
  0xc1   : > { %1024 = vperm.xlu0 %3800, %v1021_v2  }
  0xc4   : > { %944 = vrot.lane.b32.xlu1 %v936_v4, %s5374_s28 }
  0xc5   : > { %1098 = vrot.lane.b32.xlu0 %v1095_v56, %s5365_s30 }
  0xc6   : > { %3803 = vset.pattern.permute.xlu0 %v3840_v31 }
  0xc8   : > { %1030 = vperm.xlu1 %3801, %v1021_v2  }
  0xc9   : > { %1179 = vrot.lane.b32.xlu0 %v1176_v8, %s5372_s0 }
  0xcc   : > { %1096 = vrot.lane.b32.xlu1 %v1091_v10, %s5365_s30 }
  0xcd   : > { %1059 = vrot.lane.b32.xlu0 %v1056_v11, %s5374_s28  ;;  %3802 = vset.pattern.permute.xlu1 %v3841_v32 }
  0xd0   : > { %1177 = vrot.lane.b32.xlu1 %v1172_v13, %s5372_s0 }
  0xd1   : > { %1140 = vrot.lane.b32.xlu0 %v1137_v14, %s5376_s19 }
  0xd4   : > { %1057 = vrot.lane.b32.xlu1 %v1052_v16, %s5374_s28 }
  0xd5   : > { %1239 = vrot.lane.b32.xlu0 %v1236_v17, %s5370_s22 }
  0xd8   : > { %1138 = vrot.lane.b32.xlu1 %v1133_v19, %s5376_s19 }
  0xd9   : > { %1320 = vrot.lane.b32.xlu0 %v1317_v20, %s5368_s27 }
  0xdc   : > { %1237 = vrot.lane.b32.xlu1 %v1232_v22, %s5370_s22  ;;  %v1213_v22 = vrot.slane %v3709_v18, %v3954_v5 }
  0xdd   : > { %1281 = vrot.lane.b32.xlu0 %v1278_v23, %s5403_s26 }
  0xe0   : > { %1318 = vrot.lane.b32.xlu1 %v1313_v25, %s5368_s27 }
  0xe1   : > { %1362 = vrot.lane.b32.xlu0 %v1359_v26, %s5404_s1 }
  0xe4   : > { %1279 = vrot.lane.b32.xlu1 %v1274_v28, %s5403_s26 }
  0xe5   : > { %1486 = vrot.lane.b32.xlu0 %v1483_v29, %s5374_s28 }
  0xe8   : > { %1360 = vrot.lane.b32.xlu1 %v1355_v36, %s5404_s1  ;;  %v1220_v36 = vmul.f32 %v1213_v22, %v1206_v24 }
  0xe9   : > { %1525 = vrot.lane.b32.xlu0 %v1522_v37, %s5365_s30 }
  0xec   : > { %1484 = vrot.lane.b32.xlu1 %v1479_v39, %s5374_s28 }
  0xed   : > { %1564 = vrot.lane.b32.xlu0 %v1561_v40, %s5376_s19 }
  0xf0   : > { %1523 = vrot.lane.b32.xlu1 %v1518_v42, %s5365_s30 }
  0xf1   : > { %1603 = vrot.lane.b32.xlu0 %v1600_v43, %s5372_s0  ;;  %v1207_v43 = vld [vmem:[#allocation2 + $0x10] sm:$0xf] }
  0xf4   : > { %1562 = vrot.lane.b32.xlu1 %v1557_v35, %s5376_s19 }
  0xf5   : > { %1660 = vrot.lane.b32.xlu0 %v1657_v45, %s5370_s22 }
  0xf8   : > { %1601 = vrot.lane.b32.xlu1 %v1596_v47, %s5372_s0 }
  0xf9   : > { %1699 = vrot.lane.b32.xlu0 %v1696_v48, %s5403_s26  ;;  %v1221_v48 = vmul.f32 %v1217_v41, %v1207_v43 }
  0xfc   : > { %1658 = vrot.lane.b32.xlu1 %v1653_v50, %s5370_s22 }
  0xfd   : > { %1738 = vrot.lane.b32.xlu0 %v1735_v52, %s5368_s27 }
 0x100   : > { %1697 = vrot.lane.b32.xlu1 %v1692_v54, %s5403_s26 }
 0x101   : > { %1777 = vrot.lane.b32.xlu0 %v1774_v34, %s5404_s1 }
 0x102   : > { %v623_v58 = vpop.permute.xlu0 %622  ;;  %v627_v60 = vpop.permute.xlu1 %626 }
 0x104   : > { %1736 = vrot.lane.b32.xlu1 %v1731_v55, %s5368_s27 }
 0x106   : > { %v710_v57 = vpop.permute.xlu0 %709  ;;  %v714_v63 = vpop.permute.xlu1 %713 }
 0x108   : > { %1775 = vrot.lane.b32.xlu1 %v1770_v59, %s5404_s1 }
 0x10a   : > { %v625_v61 = vpop.permute.xlu0 %624 }
 0x10b   : > { %v629_v62 = vsel %vm628_vm7, %v623_v58, %v625_v61  ;;  %v630_v33 = vsel %vm628_vm7, %v625_v61, %v627_v60 }
 0x10c   : > { %633 = vst [vmem:[#allocation3] sm:$0xf] %v629_v62  ;;  %634 = vst [vmem:[#allocation3 + $0x8] sm:$0xf] %v630_v33  ;;  %v952_v33 = vld [vmem:[%s5405_s4] sm:$0xf] }
 0x10e   : > { %v712_v0 = vpop.permute.xlu0 %711 }
 0x10f   : > { %v716_v1 = vsel %vm715_vm2, %v710_v57, %v712_v0  ;;  %v717_v51 = vsel %vm715_vm2, %v712_v0, %v714_v63 }
 0x110   : > { %720 = vst [vmem:[#allocation3 + $0x10] sm:$0xf] %v716_v1  ;;  %721 = vst [vmem:[#allocation3 + $0x18] sm:$0xf] %v717_v51  ;;  %v1085_v1 = vld [vmem:[#allocation2 + $0x10] sm:$0xf] }
 0x112   : > { %v862_v2 = vpop.permute.xlu1 %861 }
 0x113   : > { %v860_v3 = vpop.permute.xlu0 %859 }
 0x114   : > { %v864_v4 = vsel %vm698_vm1, %v860_v3, %v862_v2  ;;  %v1046_v2 = vld [vmem:[#allocation2 + $0x10] sm:$0xf] }
 0x115   : > { %868 = vst [vmem:[#allocation3 + $0x38] sm:$0xf] %v864_v4 }
 0x116   : > { %v858_v56 = vpop.permute.xlu1 %857 }
 0x117   : > { %v863_v7 = vsel %vm698_vm1, %v858_v56, %v860_v3  ;;  %v818_v8 = vpop.permute.xlu0 %817 }
 0x118   : > { %867 = vst [vmem:[#allocation3 + $0x30] sm:$0xf] %v863_v7 }
 0x11a   : > { %v941_v9 = vpop.permute.xlu1 %940 }
 0x11b   : > { %v901_v10 = vpop.permute.xlu0 %900 }
 0x11e   : > { %v672_v11 = vpop.permute.xlu1 %671 }
 0x11f   : > { %v670_v12 = vpop.permute.xlu0 %669 }
 0x120   : > { %v675_v13 = vsel %vm673_vm6, %v670_v12, %v672_v11  ;;  %v1166_v11 = vld [vmem:[#allocation2 + $0x10] sm:$0xf] }
 0x121   : > { %679 = vst [vmem:[#allocation3 + $0x8] sm:$0xf0] %v675_v13  ;;  %v1127_v13 = vld [vmem:[#allocation2 + $0x10] sm:$0xf] }
 0x122   : > { %v759_v14 = vpop.permute.xlu1 %758 }
 0x123   : > { %v757_v15 = vpop.permute.xlu0 %756 }
 0x124   : > { %v762_v16 = vsel %vm760_vm5, %v757_v15, %v759_v14  ;;  %v1084_v14 = vld [vmem:[#allocation2 + $0x8] sm:$0xf] }
 0x125   : > { %766 = vst [vmem:[#allocation3 + $0x18] sm:$0xf0] %v762_v16 }
 0x126   : > { %v668_v17 = vpop.permute.xlu1 %667 }
 0x127   : > { %v674_v19 = vsel %vm673_vm6, %v668_v17, %v670_v12  ;;  %v820_v20 = vpop.permute.xlu0 %819 }
 0x128   : > { %678 = vst [vmem:[#allocation3] sm:$0xf0] %v674_v19  ;;  %v823_v21 = vsel %vm740_vm4, %v818_v8, %v820_v20  ;;  %v954_v28 = vld [vmem:[#allocation3 + $0x8] sm:$0xff] }
 0x129   : > { %827 = vst [vmem:[#allocation3 + $0x20] sm:$0xf0] %v823_v21 }
 0x12a   : > { %v755_v23 = vpop.permute.xlu1 %754 }
 0x12b   : > { %v761_v25 = vsel %vm760_vm5, %v755_v23, %v757_v15  ;;  %v903_v26 = vpop.permute.xlu0 %902  ;;  %v1045_v15 = vld [vmem:[#allocation2 + $0x8] sm:$0xf] }
 0x12c   : > { %765 = vst [vmem:[#allocation3 + $0x10] sm:$0xf0] %v761_v25  ;;  %v906_v27 = vsel %vm653_vm3, %v901_v10, %v903_v26  ;;  %v956_v29 = vld [vmem:[#allocation3 + $0x18] sm:$0xff] }
 0x12d   : > { %910 = vst [vmem:[#allocation3 + $0x30] sm:$0xf0] %v906_v27  ;;  %v964_v30 = vpack.c.bf16 %v956_v29, %v954_v28  ;;  %v1164_v28 = vld [vmem:[#allocation2] sm:$0xf] }
 0x12e   : > { %v822_v37 = vpop.permute.xlu1 %821 }
 0x12f   : > { %v824_v38 = vsel %vm740_vm4, %v820_v20, %v822_v37  ;;  %v943_v39 = vpop.permute.xlu0 %942  ;;  %980 = vmatprep.subr.bf16.mxu0 %v964_v30  ;;  %v953_v45 = vld [vmem:[#allocation3] sm:$0xff]  ;;  %v1165_v37 = vld [vmem:[#allocation2 + $0x8] sm:$0xf] }
 0x130   : > { %828 = vst [vmem:[#allocation3 + $0x28] sm:$0xf0] %v824_v38  ;;  %v946_v40 = vsel %vm611_vm0, %v941_v9, %v943_v39  ;;  %v957_v42 = vld [vmem:[#allocation3 + $0x20] sm:$0xff] }
 0x131   : > { %950 = vst [vmem:[#allocation3 + $0x40] sm:$0xf] %v946_v40  ;;  %1222 = vst [vmem:[#allocation3 + $0x20] sm:$0xf] %v1220_v36  ;;  %v1083_v20 = vld [vmem:[#allocation2] sm:$0xf] }
 0x132   : > { %v905_v44 = vpop.permute.xlu1 %904  ;;  %v1126_v36 = vld [vmem:[#allocation2 + $0x8] sm:$0xf] }
 0x133   : > { %v907_v35 = vsel %vm653_vm3, %v903_v26, %v905_v44  ;;  %v955_v46 = vld [vmem:[#allocation3 + $0x10] sm:$0xff]  ;;  %v1226_v44 = vld [vmem:[#allocation2 + $0x18] sm:$0xf] }
 0x134   : > { %911 = vst [vmem:[#allocation3 + $0x38] sm:$0xf0] %v907_v35  ;;  %v963_v47 = vpack.c.bf16 %v955_v46, %v953_v45  ;;  %v959_v53 = vld [vmem:[#allocation3 + $0x30] sm:$0xff] }
 0x135   : > { %v965_v58 = vpack.c.bf16 %v959_v53, %v957_v42  ;;  %v1125_v53 = vld [vmem:[#allocation2] sm:$0xf] }
 0x136   : > { %981 = vmatpush1.bf16.msra.mxu0 %v963_v47  ;;  %v945_v49 = vpop.permute.xlu1 %944 }
 0x137   : > { %v947_v50 = vsel %vm611_vm0, %v943_v39, %v945_v49  ;;  %v958_v52 = vld [vmem:[#allocation3 + $0x28] sm:$0xff]  ;;  %v1044_v49 = vld [vmem:[#allocation2] sm:$0xf] }
 0x138   : > { %951 = vst [vmem:[#allocation3 + $0x48] sm:$0xf] %v947_v50  ;;  %1223 = vst [vmem:[#allocation3 + $0x28] sm:$0xf] %v1221_v48  ;;  %v961_v34 = vld [vmem:[#allocation3 + $0x40] sm:$0xf] }
 0x139   : > { %v967_v59 = vpack.c.bf16 %v961_v34, %v961_v34 }
 0x13b   : > { %v960_v54 = vld [vmem:[#allocation3 + $0x38] sm:$0xff]  ;;  %v975_v62 = vsel %vm973_vm8, %v967_v59, 0 }
 0x13c   : > { %v966_v55 = vpack.c.bf16 %v960_v54, %v958_v52  ;;  %v1268_v59 = vld [vmem:[#allocation2 + $0x18] sm:$0xf] }
 0x13e   : > { %982 = vmatprep.subr.bf16.mxu0 %v966_v55 }
 0x13f   : > { %983 = vmatpush1.bf16.msra.mxu0 %v965_v58  ;;  %v962_v57 = vld [vmem:[#allocation3 + $0x48] sm:$0xf]  ;;  %v1307_v58 = vld [vmem:[#allocation2 + $0x18] sm:$0xf] }
 0x140   : > { %v968_v60 = vpack.c.bf16 %v962_v57, %v962_v57  ;;  %v4228_v61 = vpop.permute.xlu0 %1024  ;;  %v1225_v57 = vld [vmem:[#allocation2 + $0x10] sm:$0xf] }
 0x142   : > { %3704 = vmatprep.subr.msk.bf16.mxu0 %vm973_vm8, %v968_v60 }
 0x143   : > { %985 = vmatpush1.bf16.msra.mxu0 %v975_v62 }
 0x144   : > { %v1099_v63 = vpop.permute.xlu0 %1098 }
 0x145   : > { %v1106_v3 = vmul.f32 %v1099_v63, %v1085_v1 }
 0x146   : > { %3705 = vmatmul.mubr.msk.bf16.vlgmr.msra.gmra.mrb[0].mxu0 %vm969_vm9, %v952_v33 }
 0x147   : > { %v4236_v0 = vpop.permute.xlu1 %1030  ;;  %1444 = vmatprep.mubr.bf16.mxu0 %v3841_v32  ;;  %v1112_v9 = vrot.slane %v1106_v3, 4 }
 0x148   : > { %v1180_v51 = vpop.permute.xlu0 %1179 }
 0x149   : > { %v1187_v16 = vmul.f32 %v1180_v51, %v1166_v11 }
 0x14b   : > { %v1097_v4 = vpop.permute.xlu1 %1096  ;;  %v1193_v27 = vrot.slane %v1187_v16, 4  ;;  %v1347_v16 = vld [vmem:[#allocation2 + $0x8] sm:$0xf] }
 0x14c   : > { %v1060_v56 = vpop.permute.xlu0 %1059  ;;  %v1100_v10 = vsel %vm653_vm3, %v1097_v4, %v1099_v63  ;;  %v1104_v24 = vmul.f32 %v1097_v4, %v1083_v20 }
 0x14d   : > { %v1067_v7 = vmul.f32 %v1060_v56, %v1046_v2  ;;  %v1105_v19 = vmul.f32 %v1100_v10, %v1084_v14 }
 0x14e   : > { %v1110_v43 = vrot.slane %v1104_v24, 4 }
 0x14f   : > { %v1178_v8 = vpop.permute.xlu1 %1177  ;;  %1075 = vrot.lane.b32.xlu0 %v1067_v7, %s5404_s1  ;;  %v1111_v25 = vrot.slane %v1105_v19, 4 }
 0x150   : > { %v1141_v12 = vpop.permute.xlu0 %1140  ;;  %v1181_v29 = vsel %vm740_vm4, %v1178_v8, %v1180_v51  ;;  %v1185_v39 = vmul.f32 %v1178_v8, %v1164_v28  ;;  %v1267_v8 = vld [vmem:[#allocation2 + $0x10] sm:$0xf] }
 0x151   : > { %v1148_v18 = vmul.f32 %v1141_v12, %v1127_v13  ;;  %v1186_v41 = vmul.f32 %v1181_v29, %v1165_v37  ;;  %v1348_v37 = vld [vmem:[#allocation2 + $0x10] sm:$0xf] }
 0x152   : > { %v1191_v48 = vrot.slane %v1185_v39, 4 }
 0x153   : > { %v1058_v17 = vpop.permute.xlu1 %1057  ;;  %1117 = vrot.lane.b32.xlu0 %v1112_v9, %s5368_s27  ;;  %v1192_v45 = vrot.slane %v1186_v41, 4  ;;  %v1306_v9 = vld [vmem:[#allocation2 + $0x10] sm:$0xf] }
 0x154   : > { %v1061_v21 = vsel %vm611_vm0, %v1058_v17, %v1060_v56  ;;  %v1240_v22 = vpop.permute.xlu0 %1239  ;;  %v1065_v52 = vmul.f32 %v1058_v17, %v1044_v49  ;;  %v1266_v56 = vld [vmem:[#allocation2 + $0x8] sm:$0xf] }
 0x155   : > { %v1066_v23 = vmul.f32 %v1061_v21, %v1045_v15  ;;  %v1247_v46 = vmul.f32 %v1240_v22, %v1226_v44  ;;  %v1224_v15 = vld [vmem:[#allocation2 + $0x8] sm:$0xf] }
 0x156   : > { %v1305_v21 = vld [vmem:[#allocation2 + $0x8] sm:$0xf] }
 0x157   : > { %1073 = vrot.lane.b32.xlu1 %v1066_v23, %s5404_s1  ;;  %v1139_v26 = vpop.permute.xlu1 %1138  ;;  %1156 = vrot.lane.b32.xlu0 %v1148_v18, %s5403_s26  ;;  %v1253_v34 = vrot.slane %v1247_v46, 4 }
 0x158   : > { %v1142_v30 = vsel %vm698_vm1, %v1139_v26, %v1141_v12  ;;  %v1321_v38 = vpop.permute.xlu0 %1320  ;;  %v1146_v60 = vmul.f32 %v1139_v26, %v1125_v53 }
 0x159   : > { %v1147_v40 = vmul.f32 %v1142_v30, %v1126_v36  ;;  %v1328_v62 = vmul.f32 %v1321_v38, %v1307_v58 }
 0x15b   : > { %1115 = vrot.lane.b32.xlu1 %v1111_v25, %s5368_s27  ;;  %1198 = vrot.lane.b32.xlu0 %v1193_v27, %s5370_s22  ;;  %v1238_v42 = vpop.permute.xlu1 %1237  ;;  %v1334_v3 = vrot.slane %v1328_v62, 4 }
 0x15c   : > { %v1282_v35 = vpop.permute.xlu0 %1281  ;;  %v1241_v55 = vsel %vm760_vm5, %v1238_v42, %v1240_v22  ;;  %v1245_v18 = vmul.f32 %v1238_v42, %v1224_v15  ;;  %v1349_v22 = vld [vmem:[#allocation2 + $0x18] sm:$0xf] }
 0x15d   : > { %v1289_v33 = vmul.f32 %v1282_v35, %v1268_v59  ;;  %v1246_v63 = vmul.f32 %v1241_v55, %v1225_v57 }
 0x15e   : > { %v1251_v25 = vrot.slane %v1245_v18, 4 }
 0x15f   : > { %1154 = vrot.lane.b32.xlu1 %v1147_v40, %s5403_s26  ;;  %1113 = vrot.lane.b32.xlu0 %v1110_v43, %s5368_s27  ;;  %v1319_v47 = vpop.permute.xlu1 %1318  ;;  %v1252_v2 = vrot.slane %v1246_v63, 4 }
 0x160   : > { %v1363_v50 = vpop.permute.xlu0 %1362  ;;  %v1322_v4 = vsel %vm673_vm6, %v1319_v47, %v1321_v38  ;;  %v1326_v24 = vmul.f32 %v1319_v47, %v1305_v21 }
 0x161   : > { %v1327_v14 = vmul.f32 %v1322_v4, %v1306_v9  ;;  %v1370_v26 = vmul.f32 %v1363_v50, %v1349_v22 }
 0x162   : > { %v1332_v29 = vrot.slane %v1326_v24, 4 }
 0x163   : > { %1196 = vrot.lane.b32.xlu1 %v1192_v45, %s5370_s22  ;;  %1194 = vrot.lane.b32.xlu0 %v1191_v48, %s5370_s22  ;;  %v1280_v54 = vpop.permute.xlu1 %1279  ;;  %v1333_v19 = vrot.slane %v1327_v14, 4 }
 0x164   : > { %v4256_v51 = vpop.permute.xlu0 %1486  ;;  %v1283_v7 = vsel %vm715_vm2, %v1280_v54, %v1282_v35  ;;  %v1287_v12 = vmul.f32 %v1280_v54, %v1266_v56 }
 0x165   : > { %v1288_v13 = vmul.f32 %v1283_v7, %v1267_v8 }
 0x167   : > { %1071 = vrot.lane.b32.xlu1 %v1065_v52, %s5404_s1  ;;  %1258 = vrot.lane.b32.xlu0 %v1253_v34, %s5372_s0  ;;  %v1361_v1 = vpop.permute.xlu1 %1360 }
 0x168   : > { %v4264_v11 = vpop.permute.xlu0 %1525  ;;  %v1368_v20 = vmul.f32 %v1361_v1, %v1347_v16  ;;  %v1364_v36 = vsel %vm628_vm7, %v1361_v1, %v1363_v50 }
 0x169   : > { %v1369_v39 = vmul.f32 %v1364_v36, %v1348_v37 }
 0x16b   : > { %1152 = vrot.lane.b32.xlu1 %v1146_v60, %s5403_s26  ;;  %1297 = vrot.lane.b32.xlu0 %v1289_v33, %s5376_s19  ;;  %v4262_v10 = vpop.permute.xlu1 %1484 }
 0x16c   : > { %v4272_v23 = vpop.permute.xlu0 %1564  ;;  %v1492_v42 = vmul.f32 0.0, %v4262_v10 }
 0x16f   : > { %1256 = vrot.lane.b32.xlu1 %v1252_v2, %s5372_s0  ;;  %1339 = vrot.lane.b32.xlu0 %v1334_v3, %s5365_s30  ;;  %v4268_v17 = vpop.permute.xlu1 %1523 }
 0x170   : > { %v4278_v28 = vpop.permute.xlu0 %1603  ;;  %v1531_v30 = vmul.f32 0.0, %v4268_v17 }
 0x173   : > { %1295 = vrot.lane.b32.xlu1 %v1288_v13, %s5376_s19  ;;  %1293 = vrot.lane.b32.xlu0 %v1287_v12, %s5376_s19  ;;  %v4276_v27 = vpop.permute.xlu1 %1562 }
 0x174   : > { %v4289_v41 = vpop.permute.xlu0 %1660  ;;  %v1570_v35 = vmul.f32 0.0, %v4276_v27 }
 0x175   : > { %v1668_v43 = vmul.f32 0.0, %v4289_v41 }
 0x177   : > { %1337 = vrot.lane.b32.xlu1 %v1333_v19, %s5365_s30  ;;  %1374 = vrot.lane.b32.xlu0 %v1368_v20, %s5374_s28  ;;  %v4284_v38 = vpop.permute.xlu1 %1601 }
 0x178   : > { %v1609_v40 = vmul.f32 0.0, %v4284_v38  ;;  %v4295_v44 = vpop.permute.xlu0 %1699 }
 0x179   : > { %v1707_v45 = vmul.f32 0.0, %v4295_v44 }
 0x17b   : > { %1254 = vrot.lane.b32.xlu1 %v1251_v25, %s5372_s0  ;;  %1378 = vrot.lane.b32.xlu0 %v1370_v26, %s5374_s28  ;;  %v4307_v48 = vpop.permute.xlu1 %1658 }
 0x17c   : > { %v4302_v46 = vpop.permute.xlu0 %1738 }
 0x17d   : > { %v1746_v47 = vmul.f32 0.0, %v4302_v46 }
 0x17f   : > { %1335 = vrot.lane.b32.xlu1 %v1332_v29, %s5365_s30  ;;  %1537 = vrot.lane.b32.xlu0 %v1531_v30, %s5368_s27  ;;  %v4309_v49 = vpop.permute.xlu1 %1697 }
 0x180   : > { %v4311_v50 = vpop.permute.xlu0 %1777 }
 0x183   : > { %1376 = vrot.lane.b32.xlu1 %v1369_v39, %s5374_s28  ;;  %1615 = vrot.lane.b32.xlu0 %v1609_v40, %s5370_s22  ;;  %v4313_v52 = vpop.permute.xlu1 %1736 }
 0x187   : > { %1498 = vrot.lane.b32.xlu1 %v1492_v42, %s5404_s1  ;;  %1676 = vrot.lane.b32.xlu0 %v1668_v43, %s5372_s0  ;;  %v4315_v54 = vpop.permute.xlu1 %1775 }
 0x18b   : > { %1576 = vrot.lane.b32.xlu1 %v1570_v35, %s5403_s26 }
 0x18f   : > { %1715 = vrot.lane.b32.xlu1 %v1707_v45, %s5376_s19 }
 0x193   : > { %1754 = vrot.lane.b32.xlu1 %v1746_v47, %s5365_s30  ;;  %s576_s30 = scalar_lea.vmem %s5359_s16, %s5367_s29  ;;  %s5413_s29 = smov 111  }
 0x1c1   : > { %v1076_v53 = vpop.permute.xlu0 %1075 }
 0x1c5   : > { %v1118_v34 = vpop.permute.xlu0 %1117 }
 0x1c9   : > { %v1074_v55 = vpop.permute.xlu1 %1073  ;;  %v1157_v58 = vpop.permute.xlu0 %1156 }
 0x1ca   : > { %v1078_v59 = vsel %vm628_vm7, %v1074_v55, %v1076_v53 }
 0x1cb   : > { %1082 = vst [vmem:[#allocation3 + $0x8] sm:$0xf] %v1078_v59 }
 0x1cd   : > { %v1116_v57 = vpop.permute.xlu1 %1115  ;;  %v1199_v60 = vpop.permute.xlu0 %1198 }
 0x1ce   : > { %v1120_v62 = vsel %vm673_vm6, %v1116_v57, %v1118_v34 }
 0x1cf   : > { %1124 = vst [vmem:[#allocation3 + $0x8] sm:$0xf0] %v1120_v62 }
 0x1d1   : > { %v1155_v33 = vpop.permute.xlu1 %1154  ;;  %v1114_v63 = vpop.permute.xlu0 %1113 }
 0x1d2   : > { %v1159_v1 = vsel %vm715_vm2, %v1155_v33, %v1157_v58  ;;  %v1119_v2 = vsel %vm673_vm6, %v1114_v63, %v1116_v57 }
 0x1d3   : > { %1163 = vst [vmem:[#allocation3 + $0x18] sm:$0xf] %v1159_v1  ;;  %1123 = vst [vmem:[#allocation3] sm:$0xf0] %v1119_v2 }
 0x1d5   : > { %v1197_v3 = vpop.permute.xlu1 %1196  ;;  %v1195_v4 = vpop.permute.xlu0 %1194 }
 0x1d6   : > { %v1201_v56 = vsel %vm760_vm5, %v1197_v3, %v1199_v60  ;;  %v1200_v7 = vsel %vm760_vm5, %v1195_v4, %v1197_v3  ;;  %v1388_v13 = vld [vmem:[#allocation3 + $0x8] sm:$0xff] }
 0x1d7   : > { %1205 = vst [vmem:[#allocation3 + $0x18] sm:$0xf0] %v1201_v56  ;;  %1204 = vst [vmem:[#allocation3 + $0x10] sm:$0xf0] %v1200_v7 }
 0x1d9   : > { %v1072_v8 = vpop.permute.xlu1 %1071  ;;  %v1259_v9 = vpop.permute.xlu0 %1258 }
 0x1da   : > { %v1077_v12 = vsel %vm628_vm7, %v1072_v8, %v1074_v55 }
 0x1db   : > { %1081 = vst [vmem:[#allocation3] sm:$0xf] %v1077_v12 }
 0x1dd   : > { %v1153_v14 = vpop.permute.xlu1 %1152  ;;  %v1298_v15 = vpop.permute.xlu0 %1297 }
 0x1de   : > { %v1158_v16 = vsel %vm715_vm2, %v1153_v14, %v1155_v33  ;;  %v1390_v18 = vld [vmem:[#allocation3 + $0x18] sm:$0xff]  ;;  %v1386_v14 = vld [vmem:[%s5406_s6] sm:$0xf] }
 0x1df   : > { %1162 = vst [vmem:[#allocation3 + $0x10] sm:$0xf] %v1158_v16  ;;  %v1398_v19 = vpack.c.bf16 %v1390_v18, %v1388_v13 }
 0x1e1   : > { %v1257_v20 = vpop.permute.xlu1 %1256  ;;  %v1340_v21 = vpop.permute.xlu0 %1339  ;;  %1412 = vmatprep.subr.bf16.mxu0 %v1398_v19  ;;  %v1488_v19 = vsel %vm611_vm0, %v4262_v10, %v4256_v51 }
 0x1e2   : > { %v1261_v22 = vsel %vm740_vm4, %v1257_v20, %v1259_v9  ;;  %v1387_v24 = vld [vmem:[#allocation3] sm:$0xff] }
 0x1e3   : > { %1265 = vst [vmem:[#allocation3 + $0x28] sm:$0xf0] %v1261_v22 }
 0x1e5   : > { %v1296_v25 = vpop.permute.xlu1 %1295  ;;  %v1294_v26 = vpop.permute.xlu0 %1293 }
 0x1e6   : > { %v1300_v29 = vsel %vm698_vm1, %v1296_v25, %v1298_v15  ;;  %v1299_v30 = vsel %vm698_vm1, %v1294_v26, %v1296_v25  ;;  %v1389_v36 = vld [vmem:[#allocation3 + $0x10] sm:$0xff]  ;;  %v1566_v25 = vsel %vm698_vm1, %v4276_v27, %v4272_v23 }
 0x1e7   : > { %1304 = vst [vmem:[#allocation3 + $0x38] sm:$0xf] %v1300_v29  ;;  %1303 = vst [vmem:[#allocation3 + $0x30] sm:$0xf] %v1299_v30  ;;  %v1397_v37 = vpack.c.bf16 %v1389_v36, %v1387_v24 }
 0x1e9   : > { %v1338_v39 = vpop.permute.xlu1 %1337  ;;  %1413 = vmatpush1.bf16.msra.mxu0 %v1397_v37  ;;  %v1375_v43 = vpop.permute.xlu0 %1374 }
 0x1ea   : > { %v1342_v40 = vsel %vm653_vm3, %v1338_v39, %v1340_v21  ;;  %v1392_v45 = vld [vmem:[#allocation3 + $0x28] sm:$0xff] }
 0x1eb   : > { %1346 = vst [vmem:[#allocation3 + $0x38] sm:$0xf0] %v1342_v40 }
 0x1ed   : > { %v1255_v42 = vpop.permute.xlu1 %1254  ;;  %v1379_v55 = vpop.permute.xlu0 %1378 }
 0x1ee   : > { %v1260_v35 = vsel %vm740_vm4, %v1255_v42, %v1257_v20 }
 0x1ef   : > { %1264 = vst [vmem:[#allocation3 + $0x20] sm:$0xf0] %v1260_v35 }
 0x1f1   : > { %v1336_v47 = vpop.permute.xlu1 %1335 }
 0x1f2   : > { %v1341_v53 = vsel %vm653_vm3, %v1336_v47, %v1338_v39  ;;  %v1394_v34 = vld [vmem:[#allocation3 + $0x38] sm:$0xff]  ;;  %v3729_v47 = vld [vmem:[%s5345_s2 + $0x2] ss:$8 sm:$0x3] }
 0x1f3   : > { %1345 = vst [vmem:[#allocation3 + $0x30] sm:$0xf0] %v1341_v53  ;;  %v1400_v58 = vpack.c.bf16 %v1394_v34, %v1392_v45  ;;  %v2006_v53 = vrot.slane %v3729_v47, %v3954_v5 }
 0x1f5   : > { %v1377_v59 = vpop.permute.xlu1 %1376  ;;  %1414 = vmatprep.subr.bf16.mxu0 %v1400_v58 }
 0x1f6   : > { %v1380_v57 = vsel %vm611_vm0, %v1375_v43, %v1377_v59  ;;  %v1381_v60 = vsel %vm611_vm0, %v1377_v59, %v1379_v55  ;;  %v1391_v62 = vld [vmem:[#allocation3 + $0x20] sm:$0xff]  ;;  %v2010_v59 = vrot.slane %v3729_v47, %v3956_v6 }
 0x1f7   : > { %1384 = vst [vmem:[#allocation3 + $0x40] sm:$0xf] %v1380_v57  ;;  %1385 = vst [vmem:[#allocation3 + $0x48] sm:$0xf] %v1381_v60 }
 0x1f8   : > { %v3728_v43 = vld [vmem:[%s5345_s2 + $0x1] ss:$8 sm:$0x3]  ;;  %v3730_v55 = vld [vmem:[%s5345_s2 + $0x3] ss:$8 sm:$0x3] }
 0x1f9   : > { %v1967_v35 = vrot.slane %v3728_v43, %v3954_v5  ;;  %v1971_v34 = vrot.slane %v3728_v43, %v3956_v6  ;;  %v2045_v58 = vrot.slane %v3730_v55, %v3954_v5  ;;  %v3732_v57 = vld [vmem:[%s5345_s2 + $0x5] ss:$8 sm:$0x3] }
 0x1fa   : > { %v1393_v33 = vld [vmem:[#allocation3 + $0x30] sm:$0xff]  ;;  %v2102_v60 = vrot.slane %v3732_v57, %v3954_v5 }
 0x1fb   : > { %v1399_v63 = vpack.c.bf16 %v1393_v33, %v1391_v62  ;;  %v2049_v62 = vrot.slane %v3730_v55, %v3956_v6  ;;  %v3733_v33 = vld [vmem:[%s5345_s2 + $0x6] ss:$8 sm:$0x3] }
 0x1fd   : > { %1415 = vmatpush1.bf16.msra.mxu0 %v1399_v63  ;;  %v2141_v63 = vrot.slane %v3733_v33, %v3954_v5 }
 0x1fe   : > { %v1396_v1 = vld [vmem:[#allocation3 + $0x48] sm:$0xf]  ;;  %v1395_v2 = vld [vmem:[#allocation3 + $0x40] sm:$0xf] }
 0x1ff   : > { %v1402_v3 = vpack.c.bf16 %v1396_v1, %v1396_v1  ;;  %v1401_v4 = vpack.c.bf16 %v1395_v2, %v1395_v2  ;;  %v2106_v1 = vrot.slane %v3732_v57, %v3956_v6  ;;  %v3734_v2 = vld [vmem:[%s5345_s2 + $0x7] ss:$8 sm:$0x3] }
 0x201   : > { %3714 = vmatprep.subr.msk.bf16.mxu0 %vm973_vm8, %v1402_v3  ;;  %v1407_v56 = vsel %vm973_vm8, %v1401_v4, 0  ;;  %v2180_v3 = vrot.slane %v3734_v2, %v3954_v5  ;;  %v2145_v4 = vrot.slane %v3733_v33, %v3956_v6  ;;  %vm2465_vm8 = vcmask 613376  }
 0x202   : > { %1417 = vmatpush1.bf16.msra.mxu0 %v1407_v56  ;;  %v3735_v56 = vld [vmem:[%s5345_s2 + $0x10] ss:$8 sm:$0x3] }
 0x205   : > { %3715 = vmatmul.mubr.msk.bf16.vlgmr.msra.gmra.mrb[4].mxu0 %vm969_vm9, %v1386_v14  ;;  %v3738_v14 = vld [vmem:[%s5346_s3 + $0x1] ss:$8 sm:$0x3]  ;;  %vm2507_vm9 = vcmask 39936  }
 0x206   : > { %1873 = vmatprep.mubr.bf16.mxu0 %v3841_v32 }
 0x219   : > { %v1014_v7 = vpop.f32.mrb[0].mxu0 }
 0x21a   : > { %v1027_v8 = vmul.f32 %v4228_v61, %v1014_v7  ;;  %v1016_v9 = vpop.f32.mrb[1].mxu0  ;;  %v2219_v7 = vrot.slane %v3735_v56, %v3954_v5 }
 0x21b   : > { %v1028_v12 = vmul.f32 %v4228_v61, %v1016_v9  ;;  %v1018_v13 = vpop.f32.mrb[2].mxu0  ;;  %v2350_v9 = vld [vmem:[%s5346_s3] ss:$8 sm:$0x3] }
 0x21c   : > { %v1033_v15 = vadd.f32 %v4236_v0, %v1027_v8  ;;  %v1019_v16 = vpop.f32.mrb[3].mxu0  ;;  %v2184_v8 = vrot.slane %v3734_v2, %v3956_v6  ;;  %v2223_v13 = vrot.slane %v3735_v56, %v3956_v6 }
 0x21d   : > { %v1034_v18 = vadd.f32 %v4236_v0, %v1028_v12  ;;  %v1527_v0 = vsel %vm653_vm3, %v4268_v17, %v4264_v11  ;;  %v2355_v12 = vrot.slane %v2350_v9, %v3954_v5  ;;  %v2359_v16 = vrot.slane %v2350_v9, %v3956_v6 }
 0x21e   : > { %v4350_v61 = vmax.f32 %v1033_v15, 0.0  ;;  %v2397_v15 = vrot.slane %v3738_v14, %v3954_v5 }
 0x21f   : > { %v4355_v20 = vmax.f32 %v1034_v18, 0.0  ;;  %v3739_v18 = vld [vmem:[%s5346_s3 + $0x2] ss:$8 sm:$0x3] }
 0x220   : > { %1037 = vst [vmem:[%s576_s30] sm:$0xff] %v4350_v61  ;;  %v1493_v21 = vmul.f32 %v1488_v19, %v4350_v61  ;;  %v1705_v22 = vmul.f32 %v4309_v49, %v4350_v61  ;;  %v1532_v10 = vmul.f32 %v1527_v0, %v4350_v61  ;;  %v1571_v26 = vmul.f32 %v1566_v25, %v4350_v61 }
 0x221   : > { %1038 = vst [vmem:[%s576_s30 + $0x8] sm:$0xff] %v4355_v20  ;;  %v1494_v24 = vmul.f32 %v4256_v51, %v4355_v20  ;;  %v1533_v29 = vmul.f32 %v4264_v11, %v4355_v20  ;;  %v1605_v51 = vsel %vm740_vm4, %v4284_v38, %v4278_v28  ;;  %v1572_v30 = vmul.f32 %v4272_v23, %v4355_v20  ;;  %s5407_s30 = smov 112  }
 0x222   : > { %1500 = vrot.lane.b32.xlu1 %v1493_v21, %s5404_s1  ;;  %1711 = vrot.lane.b32.xlu0 %v1705_v22, %s5376_s19  ;;  %v1610_v17 = vmul.f32 %v1605_v51, %v4350_v61  ;;  %v1666_v11 = vmul.f32 %v4307_v48, %v4350_v61  ;;  %v1611_v27 = vmul.f32 %v4278_v28, %v4355_v20  ;;  %v3740_v22 = vld [vmem:[%s5346_s3 + $0x3] ss:$8 sm:$0x3] }
 0x223   : > { %v1662_v38 = vsel %vm760_vm5, %v4307_v48, %v4289_v41  ;;  %v1783_v36 = vmul.f32 %v4315_v54, %v4350_v61  ;;  %v1701_v28 = vsel %vm715_vm2, %v4309_v49, %v4295_v44  ;;  %v1744_v37 = vmul.f32 %v4313_v52, %v4350_v61  ;;  %v4418_v49 = vld [vmem:[#allocation2] sm:$0xff] }
 0x224   : > { %v1667_v23 = vmul.f32 %v1662_v38, %v4355_v20  ;;  %v1706_v39 = vmul.f32 %v1701_v28, %v4355_v20  ;;  %v1740_v41 = vsel %vm673_vm6, %v4313_v52, %v4302_v46  ;;  %v1779_v48 = vsel %vm628_vm7, %v4315_v54, %v4311_v50  ;;  %v1882_v46 = vld [vmem:[%s5352_s9] sm:$0xff] }
 0x225   : > { %v1745_v40 = vmul.f32 %v1740_v41, %v4355_v20  ;;  %v1784_v44 = vmul.f32 %v1779_v48, %v4355_v20  ;;  %v1785_v42 = vmul.f32 %v4418_v49, %v4311_v50  ;;  %v1453_v52 = vld [vmem:[%s5408_s7] sm:$0xff]  ;;  %v2439_v19 = vrot.slane %v3739_v18, %v3954_v5 }
 0x226   : > { %1539 = vrot.lane.b32.xlu1 %v1532_v10, %s5368_s27  ;;  %1502 = vrot.lane.b32.xlu0 %v1494_v24, %s5404_s1  ;;  %v1923_v54 = vld [vmem:[%s5345_s2] ss:$8 sm:$0x3]  ;;  %v2401_v21 = vrot.slane %v3738_v14, %v3956_v6  ;;  %v2481_v0 = vrot.slane %v3740_v22, %v3954_v5  ;;  %v2443_v10 = vrot.slane %v3739_v18, %v3956_v6  ;;  %v3742_v24 = vld [vmem:[%s5346_s3 + $0x5] ss:$8 sm:$0x3] }
 0x227   : > { %v1928_v50 = vrot.slane %v1923_v54, %v3954_v5  ;;  %v1932_v45 = vrot.slane %v1923_v54, %v3956_v6  ;;  %v2542_v25 = vrot.slane %v3742_v24, %v3954_v5 }
 0x22a   : > { %1578 = vrot.lane.b32.xlu1 %v1571_v26, %s5403_s26  ;;  %1541 = vrot.lane.b32.xlu0 %v1533_v29, %s5368_s27  ;;  %s5410_s27 = smov 1   ;;  %v2485_v26 = vrot.slane %v3740_v22, %v3956_v6  ;;  %v3743_v29 = vld [vmem:[%s5346_s3 + $0x6] ss:$8 sm:$0x3] }
 0x22b   : > { %v2582_v51 = vrot.slane %v3743_v29, %v3954_v5  ;;  %v2586_v38 = vrot.slane %v3743_v29, %v3956_v6 }
 0x22e   : > { %1617 = vrot.lane.b32.xlu1 %v1610_v17, %s5370_s22  ;;  %1580 = vrot.lane.b32.xlu0 %v1572_v30, %s5403_s26  ;;  %v2546_v17 = vrot.slane %v3742_v24, %v3956_v6  ;;  %v3744_v30 = vld [vmem:[%s5346_s3 + $0x7] ss:$8 sm:$0x3] }
 0x232   : > { %1672 = vrot.lane.b32.xlu1 %v1666_v11, %s5372_s0  ;;  %1619 = vrot.lane.b32.xlu0 %v1611_v27, %s5370_s22  ;;  %v1499_v11 = vpop.permute.xlu1 %1498  ;;  %v2622_v27 = vrot.slane %v3744_v30, %v3954_v5  ;;  %s5412_s22 = smov 113  }
 0x236   : > { %1674 = vrot.lane.b32.xlu1 %v1667_v23, %s5372_s0  ;;  %1789 = vrot.lane.b32.xlu0 %v1783_v36, %s5374_s28  ;;  %v3745_v23 = vld [vmem:[%s5346_s3 + $0x10] ss:$8 sm:$0x3]  ;;  %v1577_v36 = vpop.permute.xlu1 %1576  ;;  %s5414_s0 = smov 123  }
 0x237   : > { %v2662_v28 = vrot.slane %v3745_v23, %v3954_v5  ;;  %v2666_v41 = vrot.slane %v3745_v23, %v3956_v6  ;;  %v1801_v23 = vld [vmem:[%s5351_s8] sm:$0xf] }
 0x23a   : > { %1750 = vrot.lane.b32.xlu1 %v1744_v37, %s5407_s30  ;;  %1713 = vrot.lane.b32.xlu0 %v1706_v39, %s5376_s19  ;;  %v2626_v37 = vrot.slane %v3744_v30, %v3956_v6  ;;  %v1538_v39 = vpop.permute.xlu0 %1537  ;;  %v1716_v48 = vpop.permute.xlu1 %1715 }
 0x23e   : > { %1752 = vrot.lane.b32.xlu0 %v1745_v40, %s5407_s30  ;;  %1791 = vrot.lane.b32.xlu1 %v1784_v44, %s5374_s28  ;;  %v1616_v40 = vpop.permute.xlu0 %1615  ;;  %v1755_v44 = vpop.permute.xlu1 %1754 }
 0x242   : > { %1793 = vrot.lane.b32.xlu0 %v1785_v42, %s5374_s28  ;;  %1885 = vperm.xlu1 %3802, %v1882_v46   ;;  %v1677_v42 = vpop.permute.xlu0 %1676 }
 0x246   : > { %1456 = vperm.xlu1 %3802, %v1453_v52   ;;  %1891 = vperm.xlu0 %3803, %v1882_v46  }
 0x24a   : > { %3804 = vset.pattern.permute.xlu1 %v3840_v31  ;;  %1933 = vrot.lane.b32.xlu0 %v1928_v50, %s5374_s28 }
 0x24b   : > { %1462 = vperm.xlu1 %3804, %v1453_v52  }
 0x24e   : > { %1972 = vrot.lane.b32.xlu0 %v1967_v35, %s5407_s30 }
 0x24f   : > { %1935 = vrot.lane.b32.xlu1 %v1932_v45, %s5374_s28  ;;  %s5380_s28 = smov 48  }
 0x252   : > { %2011 = vrot.lane.b32.xlu0 %v2006_v53, %s5376_s19 }
 0x253   : > { %1974 = vrot.lane.b32.xlu1 %v1971_v34, %s5407_s30 }
 0x256   : > { %2050 = vrot.lane.b32.xlu0 %v2045_v58, %s5409_s21 }
 0x257   : > { %2013 = vrot.lane.b32.xlu1 %v2010_v59, %s5376_s19  ;;  %s5382_s19 = smov 53  }
 0x25a   : > { %2107 = vrot.lane.b32.xlu0 %v2102_v60, %s5410_s27  ;;  %v3719_v60 = vld [vmem:[%s5345_s2 + $0x4] ss:$8 sm:$0x3] }
 0x25b   : > { %2052 = vrot.lane.b32.xlu1 %v2049_v62, %s5409_s21  ;;  %v1634_v62 = vrot.slane %v3719_v60, %v3954_v5  ;;  %v1638_v33 = vrot.slane %v3719_v60, %v3956_v6 }
 0x25d   : > { %v1642_v9 = vmul.f32 %v1638_v33, %v4355_v20 }
 0x25e   : > { %2146 = vrot.lane.b32.xlu0 %v2141_v63, %s5403_s26 }
 0x25f   : > { %2109 = vrot.lane.b32.xlu1 %v2106_v1, %s5410_s27 }
 0x262   : > { %2185 = vrot.lane.b32.xlu0 %v2180_v3, %s5411_s23 }
 0x263   : > { %2148 = vrot.lane.b32.xlu1 %v2145_v4, %s5403_s26 }
 0x266   : > { %2224 = vrot.lane.b32.xlu0 %v2219_v7, %s5404_s1 }
 0x267   : > { %2187 = vrot.lane.b32.xlu1 %v2184_v8, %s5411_s23 }
 0x26a   : > { %2360 = vrot.lane.b32.xlu0 %v2355_v12, %s5378_s20  ;;  %v1641_v12 = vmul.f32 %v1634_v62, %v4350_v61 }
 0x26b   : > { %2226 = vrot.lane.b32.xlu1 %v2223_v13, %s5404_s1 }
 0x26e   : > { %2402 = vrot.lane.b32.xlu0 %v2397_v15, %s5380_s28 }
 0x26f   : > { %2362 = vrot.lane.b32.xlu1 %v2359_v16, %s5378_s20  ;;  %s5384_s20 = smov 123  }
 0x272   : > { %2444 = vrot.lane.b32.xlu0 %v2439_v19, %s5382_s19 }
 0x273   : > { %2404 = vrot.lane.b32.xlu1 %v2401_v21, %s5380_s28  ;;  %s5390_s28 = smov 5  }
 0x276   : > { %2486 = vrot.lane.b32.xlu0 %v2481_v0, %s5384_s20 }
 0x277   : > { %2446 = vrot.lane.b32.xlu1 %v2443_v10, %s5382_s19  ;;  %s5388_s19 = smov 75  }
 0x27a   : > { %2547 = vrot.lane.b32.xlu0 %v2542_v25, %s5390_s28 }
 0x27b   : > { %2488 = vrot.lane.b32.xlu1 %v2485_v26, %s5384_s20  ;;  %s5386_s20 = smov 80  }
 0x27e   : > { %2587 = vrot.lane.b32.xlu0 %v2582_v51, %s5388_s19 }
 0x27f   : > { %2549 = vrot.lane.b32.xlu1 %v2546_v17, %s5390_s28 }
 0x282   : > { %2627 = vrot.lane.b32.xlu0 %v2622_v27, %s5386_s20 }
 0x283   : > { %2589 = vrot.lane.b32.xlu1 %v2586_v38, %s5388_s19 }
 0x286   : > { %2667 = vrot.lane.b32.xlu0 %v2662_v28, %s3849_s18 }
 0x287   : > { %2629 = vrot.lane.b32.xlu1 %v2626_v37, %s5386_s20 }
 0x28b   : > { %2669 = vrot.lane.b32.xlu1 %v2666_v41, %s3849_s18 }
 0x294   : > { %v1712_v46 = vpop.permute.xlu0 %1711  ;;  %v1501_v52 = vpop.permute.xlu1 %1500 }
 0x295   : > { %v1504_v34 = vsel %vm628_vm7, %v1499_v11, %v1501_v52 }
 0x298   : > { %v1503_v54 = vpop.permute.xlu0 %1502  ;;  %v1540_v50 = vpop.permute.xlu1 %1539 }
 0x299   : > { %v1543_v43 = vsel %vm673_vm6, %v1538_v39, %v1540_v50  ;;  %v1505_v47 = vsel %vm628_vm7, %v1501_v52, %v1503_v54 }
 0x29a   : > { %v1820_v58 = vpack.c.bf16 %v1543_v43, %v1504_v34 }
 0x29c   : > { %v1542_v35 = vpop.permute.xlu0 %1541  ;;  %v1579_v45 = vpop.permute.xlu1 %1578 }
 0x29d   : > { %v1544_v53 = vsel %vm673_vm6, %v1540_v50, %v1542_v35  ;;  %v1582_v56 = vsel %vm715_vm2, %v1577_v36, %v1579_v45 }
 0x29e   : > { %v1821_v55 = vpack.c.bf16 %v1544_v53, %v1505_v47 }
 0x2a0   : > { %v1581_v59 = vpop.permute.xlu0 %1580  ;;  %v1618_v57 = vpop.permute.xlu1 %1617  ;;  %1841 = vmatprep.subr.bf16.mxu0 %v1821_v55 }
 0x2a1   : > { %1842 = vmatpush1.bf16.msra.mxu0 %v1820_v58  ;;  %v1621_v63 = vsel %vm760_vm5, %v1616_v40, %v1618_v57  ;;  %v1583_v3 = vsel %vm715_vm2, %v1579_v45, %v1581_v59 }
 0x2a2   : > { %v1822_v8 = vpack.c.bf16 %v1621_v63, %v1582_v56 }
 0x2a4   : > { %v1620_v1 = vpop.permute.xlu0 %1619  ;;  %v1673_v2 = vpop.permute.xlu1 %1672 }
 0x2a5   : > { %v1622_v4 = vsel %vm760_vm5, %v1618_v57, %v1620_v1 }
 0x2a6   : > { %v1823_v7 = vpack.c.bf16 %v1622_v4, %v1583_v3 }
 0x2a8   : > { %v1790_v13 = vpop.permute.xlu0 %1789  ;;  %v1675_v14 = vpop.permute.xlu1 %1674  ;;  %1843 = vmatprep.subr.bf16.mxu0 %v1823_v7 }
 0x2a9   : > { %v1678_v15 = vsel %vm740_vm4, %v1673_v2, %v1675_v14  ;;  %v1679_v16 = vsel %vm740_vm4, %v1675_v14, %v1677_v42  ;;  %1844 = vmatpush1.bf16.msra.mxu0 %v1822_v8 }
 0x2aa   : > { %v1825_v18 = vpack.c.bf16 %v1679_v16, %v1642_v9  ;;  %v1824_v19 = vpack.c.bf16 %v1678_v15, %v1641_v12 }
 0x2ac   : > { %v1714_v21 = vpop.permute.xlu0 %1713  ;;  %v1751_v22 = vpop.permute.xlu1 %1750  ;;  %1845 = vmatprep.subr.bf16.mxu0 %v1825_v18 }
 0x2ad   : > { %1846 = vmatpush1.bf16.msra.mxu0 %v1824_v19  ;;  %v1717_v0 = vsel %vm698_vm1, %v1712_v46, %v1714_v21  ;;  %v1718_v61 = vsel %vm698_vm1, %v1714_v21, %v1716_v48 }
 0x2b0   : > { %v1753_v10 = vpop.permute.xlu0 %1752  ;;  %v1792_v20 = vpop.permute.xlu1 %1791 }
 0x2b1   : > { %v1756_v24 = vsel %vm653_vm3, %v1751_v22, %v1753_v10  ;;  %v1757_v25 = vsel %vm653_vm3, %v1753_v10, %v1755_v44  ;;  %v1795_v26 = vsel %vm611_vm0, %v1790_v13, %v1792_v20 }
 0x2b2   : > { %v1827_v29 = vpack.c.bf16 %v1757_v25, %v1718_v61  ;;  %v1826_v51 = vpack.c.bf16 %v1756_v24, %v1717_v0  ;;  %v1828_v30 = vpack.c.bf16 %v1795_v26, %v1795_v26 }
 0x2b4   : > { %v1794_v17 = vpop.permute.xlu0 %1793  ;;  %1847 = vmatprep.subr.bf16.mxu0 %v1827_v29  ;;  %v1836_v38 = vsel %vm1834_vm10, %v1828_v30, 0 }
 0x2b5   : > { %v1796_v11 = vsel %vm611_vm0, %v1792_v20, %v1794_v17  ;;  %1848 = vmatpush1.bf16.msra.mxu0 %v1826_v51 }
 0x2b6   : > { %v1829_v27 = vpack.c.bf16 %v1796_v11, %v1796_v11 }
 0x2b8   : > { %3724 = vmatprep.subr.msk.bf16.mxu0 %vm1834_vm10, %v1829_v27 }
 0x2b9   : > { %1850 = vmatpush1.bf16.msra.mxu0 %v1836_v38 }
 0x2bc   : > { %3725 = vmatmul.mubr.msk.bf16.vlgmr.msra.gmra.mrb[8].mxu0 %vm1830_vm11, %v1801_v23 }
 0x2bd   : > { %2763 = vmatprep.mubr.bf16.mxu0 %v3841_v32 }
 0x2c1   : > { %v4574_v36 = vpop.permute.xlu1 %1885 }
 0x2c5   : > { %v4576_v28 = vpop.permute.xlu1 %1456  ;;  %v4578_v37 = vpop.permute.xlu0 %1891 }
 0x2c9   : > { %v4580_v39 = vpop.permute.xlu0 %1933 }
 0x2ca   : > { %v4582_v41 = vpop.permute.xlu1 %1462  ;;  %v1941_v48 = vmul.f32 %v4418_v49, %v4580_v39 }
 0x2cc   : > { %1947 = vrot.lane.b32.xlu0 %v1941_v48, %s5404_s1 }
 0x2cd   : > { %v4587_v40 = vpop.permute.xlu0 %1972 }
 0x2ce   : > { %v4589_v44 = vpop.permute.xlu1 %1935  ;;  %v1980_v42 = vmul.f32 %v4418_v49, %v4587_v40 }
 0x2d0   : > { %1986 = vrot.lane.b32.xlu1 %v1980_v42, %s5411_s23 }
 0x2d1   : > { %v4594_v46 = vpop.permute.xlu0 %2011 }
 0x2d2   : > { %v4596_v52 = vpop.permute.xlu1 %1974  ;;  %v2019_v54 = vmul.f32 %v4418_v49, %v4594_v46 }
 0x2d4   : > { %2025 = vrot.lane.b32.xlu0 %v2019_v54, %s5403_s26 }
 0x2d5   : > { %v4601_v50 = vpop.permute.xlu0 %2050 }
 0x2d6   : > { %v4603_v43 = vpop.permute.xlu1 %2013  ;;  %v2058_v35 = vmul.f32 %v4418_v49, %v4601_v50 }
 0x2d8   : > { %2064 = vrot.lane.b32.xlu1 %v2058_v35, %s5410_s27  ;;  %v1446_v34 = vpop.f32.mrb[4].mxu0 }
 0x2d9   : > { %v1448_v55 = vpop.f32.mrb[5].mxu0  ;;  %v4615_v57 = vpop.permute.xlu0 %2107 }
 0x2da   : > { %v4608_v45 = vpop.permute.xlu1 %2052  ;;  %v1450_v58 = vpop.f32.mrb[6].mxu0 }
 0x2db   : > { %v1451_v59 = vpop.f32.mrb[7].mxu0  ;;  %v1459_v58 = vmul.f32 %v4576_v28, %v1446_v34 }
 0x2dc   : > { %v1460_v59 = vmul.f32 %v4576_v28, %v1448_v55  ;;  %v1937_v55 = vsel %vm611_vm0, %v4580_v39, %v4589_v44 }
 0x2dd   : > { %v4619_v62 = vpop.permute.xlu0 %2146 }
 0x2de   : > { %v4610_v47 = vpop.permute.xlu1 %2109 }
 0x2df   : > { %v2117_v53 = vmul.f32 %v4418_v49, %v4610_v47 }
 0x2e1   : > { %2125 = vrot.lane.b32.xlu1 %v2117_v53, %s5409_s21  ;;  %v4623_v63 = vpop.permute.xlu0 %2185 }
 0x2e2   : > { %v4617_v60 = vpop.permute.xlu1 %2148 }
 0x2e3   : > { %v2156_v1 = vmul.f32 %v4418_v49, %v4617_v60 }
 0x2e5   : > { %2164 = vrot.lane.b32.xlu0 %v2156_v1, %s5412_s22  ;;  %v4630_v3 = vpop.permute.xlu0 %2224 }
 0x2e6   : > { %v4621_v33 = vpop.permute.xlu1 %2187 }
 0x2e7   : > { %v2195_v4 = vmul.f32 %v4418_v49, %v4621_v33 }
 0x2e9   : > { %2203 = vrot.lane.b32.xlu0 %v2195_v4, %s5407_s30  ;;  %v4637_v7 = vpop.permute.xlu0 %2360 }
 0x2ea   : > { %v4628_v2 = vpop.permute.xlu1 %2226  ;;  %v2369_v14 = vmul.f32 %v4418_v49, %v4637_v7 }
 0x2eb   : > { %v2234_v8 = vmul.f32 %v4418_v49, %v4628_v2 }
 0x2ed   : > { %2242 = vrot.lane.b32.xlu1 %v2234_v8, %s5413_s29  ;;  %v4644_v12 = vpop.permute.xlu0 %2402  ;;  %2375 = vrot.lane.b32.xlu0 %v2369_v14, %s3849_s18  ;;  %v4693_v14 = vadd.f32 %v4582_v41, %v1460_v59 }
 0x2ee   : > { %v4635_v56 = vpop.permute.xlu1 %2362  ;;  %v2411_v18 = vmul.f32 %v4418_v49, %v4644_v12 }
 0x2ef   : > { %v1468_v28 = vmax.f32 %v4693_v14, 0.0 }
 0x2f1   : > { %v4650_v15 = vpop.permute.xlu0 %2444  ;;  %2417 = vrot.lane.b32.xlu1 %v2411_v18, %s5386_s20  ;;  %s5415_s20 = smov 53  }
 0x2f2   : > { %v4642_v9 = vpop.permute.xlu1 %2404  ;;  %v2453_v22 = vmul.f32 %v4418_v49, %v4650_v15 }
 0x2f4   : > { %2459 = vrot.lane.b32.xlu0 %v2453_v22, %s5388_s19  ;;  %s5416_s19 = smov 48  }
 0x2f5   : > { %v4658_v19 = vpop.permute.xlu0 %2486 }
 0x2f6   : > { %v4646_v13 = vpop.permute.xlu1 %2446  ;;  %v2495_v0 = vmul.f32 %v4418_v49, %v4658_v19 }
 0x2f8   : > { %2501 = vrot.lane.b32.xlu1 %v2495_v0, %s5390_s28  ;;  %s5417_s28 = smov 80  }
 0x2fa   : > { %v4653_v16 = vpop.permute.xlu1 %2488 }
 0x2fe   : > { %v4660_v21 = vpop.permute.xlu1 %2549 }
 0x2ff   : > { %v2557_v20 = vmul.f32 %v4418_v49, %v4660_v21 }
 0x301   : > { %2565 = vrot.lane.b32.xlu1 %v2557_v20, %s5414_s0 }
 0x302   : > { %v4668_v10 = vpop.permute.xlu1 %2589 }
 0x303   : > { %v2597_v61 = vmul.f32 %v4418_v49, %v4668_v10 }
 0x305   : > { %2605 = vrot.lane.b32.xlu0 %v2597_v61, %s5415_s20  ;;  %v1976_v61 = vsel %vm653_vm3, %v4587_v40, %v4596_v52  ;;  %v2054_v40 = vsel %vm740_vm4, %v4601_v50, %v4608_v45  ;;  %v2150_v50 = vsel %vm715_vm2, %v4619_v62, %v4617_v60  ;;  %v2111_v60 = vsel %vm760_vm5, %v4615_v57, %v4610_v47 }
 0x306   : > { %v4676_v24 = vpop.permute.xlu1 %2629 }
 0x307   : > { %v2637_v25 = vmul.f32 %v4418_v49, %v4676_v24 }
 0x309   : > { %2645 = vrot.lane.b32.xlu0 %v2637_v25, %s5416_s19 }
 0x38f   : > { %v1875_v26 = vpop.f32.mrb[8].mxu0 }
 0x390   : > { %v1888_v29 = vmul.f32 %v4574_v36, %v1875_v26  ;;  %v1877_v51 = vpop.f32.mrb[9].mxu0  ;;  %v2015_v26 = vsel %vm698_vm1, %v4594_v46, %v4603_v43 }
 0x391   : > { %v1889_v17 = vmul.f32 %v4574_v36, %v1877_v51  ;;  %v1879_v30 = vpop.f32.mrb[10].mxu0  ;;  %v4687_v36 = vadd.f32 %v4582_v41, %v1459_v58 }
 0x392   : > { %v1894_v11 = vadd.f32 %v4578_v37, %v1888_v29  ;;  %v1880_v27 = vpop.f32.mrb[11].mxu0 }
 0x393   : > { %v1895_v38 = vadd.f32 %v4578_v37, %v1889_v17  ;;  %v1467_v37 = vmax.f32 %v4687_v36, 0.0 }
 0x394   : > { %v3726_v23 = vmul.f32 -1.442695, %v1894_v11  ;;  %v2548_v11 = vpop.permute.xlu0 %2547 }
 0x395   : > { %v3727_v48 = vmul.f32 -1.442695, %v1895_v38 }
 0x396   : > { %3813 = vpow2.f32 %v3726_v23  ;;  %v2228_v23 = vsel %vm628_vm7, %v4630_v3, %v4628_v2 }
 0x397   : > { %3815 = vpow2.f32 %v3727_v48 }
 0x398   : > { %v2588_v38 = vpop.permute.xlu0 %2587 }
 0x399   : > { %v2591_v59 = vsel %vm2465_vm8, %v2588_v38, %v4668_v10 }
 0x3a0   : > { %v3814_v42 = vpop.eup %3813 }
 0x3a1   : > { %v3816_v54 = vpop.eup %3815  ;;  %v1902_v35 = vadd.f32 1.0, %v3814_v42 }
 0x3a2   : > { %v1903_v53 = vadd.f32 1.0, %v3816_v54  ;;  %v2449_v54 = vsel %vm2448_vm14, %v4650_v15, %v4646_v13 }
 0x3a3   : > { %3817 = vrcp.f32 %v1902_v35 }
 0x3a4   : > { %3819 = vrcp.f32 %v1903_v53 }
 0x3ad   : > { %v3818_v1 = vpop.eup %3817 }
 0x3ae   : > { %v1911_v4 = vrot.slane %v3818_v1, %v3954_v5  ;;  %v3820_v8 = vpop.eup %3819 }
 0x3af   : > { %v1915_v34 = vrot.slane %v3820_v8, %v3954_v5  ;;  %v2670_v8 = vpop.permute.xlu1 %2669 }
 0x3b0   : > { %v4697_v18 = vmul.f32 %v1911_v4, %v1467_v37 }
 0x3b1   : > { %v4709_v41 = vmul.f32 %v1915_v34, %v1468_v28 }
 0x3b2   : > { %v2154_v22 = vmul.f32 %v4619_v62, %v4697_v18  ;;  %v2232_v0 = vmul.f32 %v4630_v3, %v4697_v18  ;;  %v1942_v20 = vmul.f32 %v1937_v55, %v4697_v18  ;;  %v1981_v25 = vmul.f32 %v1976_v61, %v4697_v18  ;;  %v2329_v55 = vld [vmem:[%s5354_s11] sm:$0xff] }
 0x3b3   : > { %v1943_v39 = vmul.f32 %v4589_v44, %v4709_v41  ;;  %v1982_v29 = vmul.f32 %v4596_v52, %v4709_v41  ;;  %v2020_v51 = vmul.f32 %v2015_v26, %v4697_v18  ;;  %v2021_v44 = vmul.f32 %v4603_v43, %v4709_v41 }
 0x3b4   : > { %2160 = vrot.lane.b32.xlu1 %v2154_v22, %s5412_s22  ;;  %1949 = vrot.lane.b32.xlu0 %v1942_v20, %s5404_s1  ;;  %v2059_v17 = vmul.f32 %v2054_v40, %v4697_v18  ;;  %v2060_v46 = vmul.f32 %v4608_v45, %v4709_v41  ;;  %v2115_v52 = vmul.f32 %v4615_v57, %v4697_v18  ;;  %v3748_v20 = vld [vmem:[%s5345_s2 + $0x1] ss:$8 sm:$0x3]  ;;  %v3750_v40 = vld [vmem:[%s5345_s2 + $0x3] ss:$8 sm:$0x3] }
 0x3b5   : > { %v2155_v43 = vmul.f32 %v2150_v50, %v4709_v41  ;;  %v2193_v30 = vmul.f32 %v4623_v63, %v4697_v18  ;;  %v2189_v45 = vsel %vm673_vm6, %v4623_v63, %v4621_v33  ;;  %v2116_v27 = vmul.f32 %v2111_v60, %v4709_v41 }
 0x3b6   : > { %v2194_v62 = vmul.f32 %v2189_v45, %v4709_v41  ;;  %v2595_v33 = vmul.f32 %v2588_v38, %v4697_v18  ;;  %v2233_v63 = vmul.f32 %v2228_v23, %v4709_v41  ;;  %v2371_v47 = vmul.f32 %v4635_v56, %v4709_v41  ;;  %v3753_v45 = vld [vmem:[%s5345_s2 + $0x6] ss:$8 sm:$0x3]  ;;  %v3754_v38 = vld [vmem:[%s5345_s2 + $0x7] ss:$8 sm:$0x3] }
 0x3b7   : > { %v2365_v57 = vsel %vm5392_vm12, %v4637_v7, %v4635_v56  ;;  %v2413_v2 = vmul.f32 %v4642_v9, %v4709_v41  ;;  %v2407_v3 = vsel %vm5393_vm13, %v4644_v12, %v4642_v9  ;;  %v2628_v56 = vpop.permute.xlu0 %2627  ;;  %v2455_v7 = vmul.f32 %v4646_v13, %v4709_v41 }
 0x3b8   : > { %2238 = vrot.lane.b32.xlu1 %v2232_v0, %s5413_s29  ;;  %1988 = vrot.lane.b32.xlu0 %v1981_v25, %s5411_s23  ;;  %v2370_v48 = vmul.f32 %v2365_v57, %v4697_v18  ;;  %v2412_v42 = vmul.f32 %v2407_v3, %v4697_v18  ;;  %v2454_v35 = vmul.f32 %v2449_v54, %v4697_v18  ;;  %vm2423_vm12 = vcmask 654336   ;;  %v2772_v0 = vld [vmem:[%s5356_s13] sm:$0xff]  ;;  %v3755_v57 = vld [vmem:[%s5345_s2 + $0x10] ss:$8 sm:$0x3] }
 0x3b9   : > { %v2497_v9 = vmul.f32 %v4653_v16, %v4709_v41  ;;  %v2491_v12 = vsel %vm2490_vm15, %v4658_v19, %v4653_v16  ;;  %v2555_v15 = vmul.f32 %v2548_v11, %v4697_v18  ;;  %v2551_v16 = vsel %vm2507_vm9, %v2548_v11, %v4660_v21  ;;  %v3749_v25 = vld [vmem:[%s5345_s2 + $0x2] ss:$8 sm:$0x3] }
 0x3ba   : > { %v2496_v53 = vmul.f32 %v2491_v12, %v4697_v18  ;;  %v2596_v19 = vmul.f32 %v2591_v59, %v4709_v41  ;;  %v2556_v1 = vmul.f32 %v2551_v16, %v4709_v41  ;;  %v2631_v4 = vsel %vm2423_vm12, %v2628_v56, %v4676_v24 }
 0x3bb   : > { %v2668_v58 = vpop.permute.xlu0 %2667  ;;  %vm2381_vm13 = vcmask 695296   ;;  %v2636_v10 = vmul.f32 %v2631_v4, %v4709_v41  ;;  %v2635_v34 = vmul.f32 %v2628_v56, %v4697_v18  ;;  %v2677_v21 = vmul.f32 %v4418_v49, %v2670_v8  ;;  %v2793_v49 = vld [vmem:[%s5345_s2] ss:$8 sm:$0x3] }
 0x3bc   : > { %1951 = vrot.lane.b32.xlu1 %v1943_v39, %s5404_s1  ;;  %2027 = vrot.lane.b32.xlu0 %v2020_v51, %s5403_s26  ;;  %v2675_v13 = vmul.f32 %v2668_v58, %v4697_v18  ;;  %v2671_v22 = vsel %vm2381_vm13, %v2668_v58, %v2670_v8  ;;  %v2798_v61 = vrot.slane %v2793_v49, %v3954_v5  ;;  %v3125_v56 = vld [vmem:[%s5345_s2] ss:$8 sm:$0x3] }
 0x3bd   : > { %v2676_v24 = vmul.f32 %v2671_v22, %v4709_v41  ;;  %v2837_v39 = vrot.slane %v3748_v20, %v3954_v5  ;;  %v2802_v26 = vrot.slane %v2793_v49, %v3956_v6  ;;  %v2876_v51 = vrot.slane %v3749_v25, %v3954_v5 }
 0x3be   : > { %v2919_v60 = vrot.slane %v3750_v40, %v3956_v6  ;;  %v3054_v54 = vrot.slane %v3754_v38, %v3956_v6  ;;  %v3134_v59 = vrot.slane %v3125_v56, %v3956_v6 }
 0x3c0   : > { %1990 = vrot.lane.b32.xlu1 %v1982_v29, %s5411_s23  ;;  %2066 = vrot.lane.b32.xlu0 %v2059_v17, %s5410_s27  ;;  %v4847_v29 = vpop.permute.xlu1 %1986  ;;  %v2915_v17 = vrot.slane %v3750_v40, %v3954_v5 }
 0x3c4   : > { %2029 = vrot.lane.b32.xlu1 %v2021_v44, %s5403_s26  ;;  %2121 = vrot.lane.b32.xlu0 %v2115_v52, %s5409_s21  ;;  %v2841_v44 = vrot.slane %v3748_v20, %v3956_v6  ;;  %v3752_v52 = vld [vmem:[%s5345_s2 + $0x5] ss:$8 sm:$0x3]  ;;  %v4866_v50 = vpop.permute.xlu1 %2064  ;;  %v3761_v20 = vld [vmem:[%s5345_s2 + $0x6] ss:$8 sm:$0x3] }
 0x3c8   : > { %2068 = vrot.lane.b32.xlu1 %v2060_v46, %s5410_s27  ;;  %2199 = vrot.lane.b32.xlu0 %v2193_v30, %s5407_s30  ;;  %v2972_v30 = vrot.slane %v3752_v52, %v3954_v5 }
 0x3cc   : > { %2162 = vrot.lane.b32.xlu1 %v2155_v43, %s5412_s22  ;;  %2123 = vrot.lane.b32.xlu0 %v2116_v27, %s5409_s21  ;;  %v2880_v43 = vrot.slane %v3749_v25, %v3956_v6  ;;  %v3011_v27 = vrot.slane %v3753_v45, %v3954_v5 }
 0x3d0   : > { %2201 = vrot.lane.b32.xlu1 %v2194_v62, %s5407_s30  ;;  %2240 = vrot.lane.b32.xlu0 %v2233_v63, %s5413_s29  ;;  %v4879_v62 = vpop.permute.xlu1 %2125 }
 0x3d4   : > { %2601 = vrot.lane.b32.xlu1 %v2595_v33, %s5415_s20  ;;  %2377 = vrot.lane.b32.xlu0 %v2370_v48, %s3849_s18  ;;  %v2976_v33 = vrot.slane %v3752_v52, %v3956_v6  ;;  %v4890_v63 = vpop.permute.xlu1 %2242 }
 0x3d8   : > { %2379 = vrot.lane.b32.xlu1 %v2371_v47, %s3849_s18  ;;  %2419 = vrot.lane.b32.xlu0 %v2412_v42, %s5417_s28  ;;  %s5418_s18 = smov 75   ;;  %v3050_v47 = vrot.slane %v3754_v38, %v3954_v5  ;;  %v4901_v3 = vpop.permute.xlu1 %2417  ;;  %v3089_v42 = vrot.slane %v3755_v57, %v3954_v5 }
 0x3dc   : > { %2421 = vrot.lane.b32.xlu1 %v2413_v2, %s5417_s28  ;;  %2461 = vrot.lane.b32.xlu0 %v2454_v35, %s5418_s18  ;;  %s5419_s28 = smov 5   ;;  %v3015_v2 = vrot.slane %v3753_v45, %v3956_v6  ;;  %v3130_v35 = vrot.slane %v3125_v56, %v3954_v5  ;;  %v4917_v12 = vpop.permute.xlu1 %2501  ;;  %v3763_v45 = vld [vmem:[%s5345_s2 + $0x10] ss:$8 sm:$0x3] }
 0x3e0   : > { %2463 = vrot.lane.b32.xlu1 %v2455_v7, %s5418_s18  ;;  %2503 = vrot.lane.b32.xlu0 %v2496_v53, %s5419_s28  ;;  %s5420_s18 = smov 43   ;;  %v3093_v53 = vrot.slane %v3755_v57, %v3956_v6  ;;  %v4930_v16 = vpop.permute.xlu1 %2565 }
 0x3e4   : > { %2505 = vrot.lane.b32.xlu1 %v2497_v9, %s5419_s28  ;;  %2561 = vrot.lane.b32.xlu0 %v2555_v15, %s5414_s0  ;;  %v3756_v9 = vld [vmem:[%s5345_s2 + $0x1] ss:$8 sm:$0x3]  ;;  %v3757_v15 = vld [vmem:[%s5345_s2 + $0x2] ss:$8 sm:$0x3] }
 0x3e5   : > { %v3169_v58 = vrot.slane %v3756_v9, %v3954_v5  ;;  %v3173_v8 = vrot.slane %v3756_v9, %v3956_v6  ;;  %v3212_v22 = vrot.slane %v3757_v15, %v3956_v6 }
 0x3e8   : > { %2681 = vrot.lane.b32.xlu1 %v2675_v13, %s5420_s18  ;;  %2563 = vrot.lane.b32.xlu0 %v2556_v1, %s5414_s0  ;;  %v3758_v1 = vld [vmem:[%s5345_s2 + $0x3] ss:$8 sm:$0x3] }
 0x3e9   : > { %v3251_v49 = vrot.slane %v3758_v1, %v3956_v6 }
 0x3ec   : > { %2603 = vrot.lane.b32.xlu1 %v2596_v19, %s5415_s20  ;;  %2641 = vrot.lane.b32.xlu0 %v2635_v34, %s5416_s19  ;;  %v3208_v19 = vrot.slane %v3757_v15, %v3954_v5  ;;  %v3247_v34 = vrot.slane %v3758_v1, %v3954_v5 }
 0x3f0   : > { %2643 = vrot.lane.b32.xlu1 %v2636_v10, %s5416_s19  ;;  %2683 = vrot.lane.b32.xlu0 %v2676_v24, %s5420_s18 }
 0x3f4   : > { %2685 = vrot.lane.b32.xlu1 %v2677_v21, %s5420_s18  ;;  %2781 = vperm.xlu0 %3803, %v2772_v0   ;;  %v3760_v21 = vld [vmem:[%s5345_s2 + $0x5] ss:$8 sm:$0x3] }
 0x3f8   : > { %2338 = vperm.xlu1 %3804, %v2329_v55   ;;  %3806 = vset.pattern.permute.xlu0 %v3841_v32 }
 0x3f9   : > { %2332 = vperm.xlu0 %3806, %v2329_v55   ;;  %v3304_v55 = vrot.slane %v3760_v21, %v3954_v5 }
 0x3fc   : > { %3805 = vset.pattern.permute.xlu1 %v3841_v32  ;;  %v4852_v32 = vpop.permute.xlu0 %1947 }
 0x3fd   : > { %2775 = vperm.xlu1 %3805, %v2772_v0   ;;  %2842 = vrot.lane.b32.xlu0 %v2837_v39, %s5407_s30  ;;  %v3343_v39 = vrot.slane %v3761_v20, %v3954_v5 }
 0x400   : > { %v4861_v46 = vpop.permute.xlu0 %2025 }
 0x401   : > { %2803 = vrot.lane.b32.xlu1 %v2798_v61, %s5413_s29  ;;  %2881 = vrot.lane.b32.xlu0 %v2876_v51, %s5412_s22  ;;  %v3762_v51 = vld [vmem:[%s5345_s2 + $0x7] ss:$8 sm:$0x3] }
 0x402   : > { %3807 = vset.pattern.permute.xlu1 %v3840_v31 }
 0x404   : > { %v4872_v11 = vpop.permute.xlu0 %2164 }
 0x405   : > { %2805 = vrot.lane.b32.xlu1 %v2802_v26, %s5413_s29  ;;  %2920 = vrot.lane.b32.xlu0 %v2915_v17, %s5409_s21  ;;  %v3308_v26 = vrot.slane %v3760_v21, %v3956_v6  ;;  %v3382_v17 = vrot.slane %v3762_v51, %v3954_v5 }
 0x408   : > { %v4886_v23 = vpop.permute.xlu0 %2203 }
 0x409   : > { %2844 = vrot.lane.b32.xlu1 %v2841_v44, %s5407_s30  ;;  %2977 = vrot.lane.b32.xlu0 %v2972_v30, %s5410_s27 }
 0x40c   : > { %v4897_v48 = vpop.permute.xlu0 %2375 }
 0x40d   : > { %2883 = vrot.lane.b32.xlu1 %v2880_v43, %s5412_s22  ;;  %3016 = vrot.lane.b32.xlu0 %v3011_v27, %s5403_s26 }
 0x410   : > { %v4908_v7 = vpop.permute.xlu0 %2459 }
 0x411   : > { %2922 = vrot.lane.b32.xlu1 %v2919_v60, %s5409_s21  ;;  %3055 = vrot.lane.b32.xlu0 %v3050_v47, %s5411_s23  ;;  %v3421_v47 = vrot.slane %v3763_v45, %v3954_v5 }
 0x414   : > { %v4923_v13 = vpop.permute.xlu0 %2605 }
 0x415   : > { %2979 = vrot.lane.b32.xlu1 %v2976_v33, %s5410_s27  ;;  %3094 = vrot.lane.b32.xlu0 %v3089_v42, %s5404_s1 }
 0x418   : > { %v4937_v4 = vpop.permute.xlu0 %2645 }
 0x419   : > { %3018 = vrot.lane.b32.xlu1 %v3015_v2, %s5403_s26  ;;  %3135 = vrot.lane.b32.xlu0 %v3130_v35, %s5413_s29  ;;  %v3386_v2 = vrot.slane %v3762_v51, %v3956_v6 }
 0x41d   : > { %3057 = vrot.lane.b32.xlu1 %v3054_v54, %s5411_s23  ;;  %3174 = vrot.lane.b32.xlu0 %v3169_v58, %s5407_s30  ;;  %v3731_v58 = vld [vmem:[%s5345_s2 + $0x4] ss:$8 sm:$0x3] }
 0x41e   : > { %v2087_v1 = vrot.slane %v3731_v58, %v3956_v6 }
 0x420   : > { %v2091_v21 = vmul.f32 %v2087_v1, %v4709_v41 }
 0x421   : > { %3096 = vrot.lane.b32.xlu1 %v3093_v53, %s5404_s1  ;;  %3213 = vrot.lane.b32.xlu0 %v3208_v19, %s5412_s22 }
 0x425   : > { %3137 = vrot.lane.b32.xlu1 %v3134_v59, %s5413_s29  ;;  %3252 = vrot.lane.b32.xlu0 %v3247_v34, %s5409_s21 }
 0x426   : > { %v4941_v10 = vpop.permute.xlu1 %2160  ;;  %v1950_v0 = vpop.permute.xlu0 %1949 }
 0x427   : > { %v1953_v60 = vsel %vm628_vm7, %v4852_v32, %v1950_v0 }
 0x429   : > { %3176 = vrot.lane.b32.xlu1 %v3173_v8, %s5407_s30  ;;  %3309 = vrot.lane.b32.xlu0 %v3304_v55, %s5410_s27  ;;  %v2083_v8 = vrot.slane %v3731_v58, %v3954_v5 }
 0x42a   : > { %v4950_v24 = vpop.permute.xlu1 %2238  ;;  %v1989_v25 = vpop.permute.xlu0 %1988 }
 0x42b   : > { %v1992_v40 = vsel %vm673_vm6, %v4847_v29, %v1989_v25  ;;  %v3347_v29 = vrot.slane %v3761_v20, %v3956_v6  ;;  %v2090_v55 = vmul.f32 %v2083_v8, %v4697_v18 }
 0x42c   : > { %v2269_v38 = vpack.c.bf16 %v1992_v40, %v1953_v60 }
 0x42d   : > { %3215 = vrot.lane.b32.xlu1 %v3212_v22, %s5412_s22  ;;  %3348 = vrot.lane.b32.xlu0 %v3343_v39, %s5403_s26 }
 0x42e   : > { %v1952_v61 = vpop.permute.xlu1 %1951  ;;  %v2028_v52 = vpop.permute.xlu0 %2027 }
 0x42f   : > { %v1954_v43 = vsel %vm628_vm7, %v1950_v0, %v1952_v61  ;;  %v2031_v9 = vsel %vm715_vm2, %v4861_v46, %v2028_v52 }
 0x431   : > { %3254 = vrot.lane.b32.xlu1 %v3251_v49, %s5409_s21  ;;  %3387 = vrot.lane.b32.xlu0 %v3382_v17, %s5411_s23 }
 0x432   : > { %v1991_v44 = vpop.permute.xlu1 %1990  ;;  %v2067_v57 = vpop.permute.xlu0 %2066 }
 0x433   : > { %v1993_v30 = vsel %vm673_vm6, %v1989_v25, %v1991_v44  ;;  %v2070_v32 = vsel %vm760_vm5, %v4866_v50, %v2067_v57  ;;  %v3425_v50 = vrot.slane %v3763_v45, %v3956_v6 }
 0x434   : > { %v2270_v27 = vpack.c.bf16 %v1993_v30, %v1954_v43  ;;  %v2271_v15 = vpack.c.bf16 %v2070_v32, %v2031_v9 }
 0x435   : > { %3311 = vrot.lane.b32.xlu1 %v3308_v26, %s5410_s27  ;;  %3426 = vrot.lane.b32.xlu0 %v3421_v47, %s5404_s1 }
 0x436   : > { %v2030_v33 = vpop.permute.xlu1 %2029  ;;  %2288 = vmatprep.subr.bf16.mxu1 %v2270_v27  ;;  %v2122_v56 = vpop.permute.xlu0 %2121 }
 0x437   : > { %2289 = vmatpush1.bf16.msra.mxu1 %v2269_v38  ;;  %v2032_v54 = vsel %vm715_vm2, %v2028_v52, %v2030_v33  ;;  %v2250_v38 = vld [vmem:[%s5353_s10] sm:$0xf] }
 0x439   : > { %3350 = vrot.lane.b32.xlu1 %v3347_v29, %s5403_s26 }
 0x43a   : > { %v2069_v42 = vpop.permute.xlu1 %2068  ;;  %v2200_v19 = vpop.permute.xlu0 %2199 }
 0x43b   : > { %v2071_v35 = vsel %vm760_vm5, %v2067_v57, %v2069_v42  ;;  %v3741_v42 = vld [vmem:[%s5346_s3 + $0x4] ss:$8 sm:$0x3] }
 0x43c   : > { %v2272_v53 = vpack.c.bf16 %v2071_v35, %v2032_v54 }
 0x43d   : > { %3389 = vrot.lane.b32.xlu1 %v3386_v2, %s5411_s23 }
 0x43e   : > { %v2163_v59 = vpop.permute.xlu1 %2162  ;;  %2290 = vmatprep.subr.bf16.mxu1 %v2272_v53  ;;  %v2124_v34 = vpop.permute.xlu0 %2123 }
 0x43f   : > { %2291 = vmatpush1.bf16.msra.mxu1 %v2271_v15  ;;  %v2127_v0 = vsel %vm740_vm4, %v2122_v56, %v2124_v34  ;;  %v2128_v49 = vsel %vm740_vm4, %v2124_v34, %v4879_v62  ;;  %v2167_v20 = vsel %vm698_vm1, %v2163_v59, %v4872_v11  ;;  %v2526_v15 = vrot.slane %v3741_v42, %v3956_v6 }
 0x440   : > { %v2274_v39 = vpack.c.bf16 %v2128_v49, %v2091_v21  ;;  %v2273_v25 = vpack.c.bf16 %v2127_v0, %v2090_v55 }
 0x441   : > { %3428 = vrot.lane.b32.xlu1 %v3425_v50, %s5404_s1  ;;  %v2522_v50 = vrot.slane %v3741_v42, %v3954_v5 }
 0x442   : > { %v2202_v46 = vpop.permute.xlu1 %2201  ;;  %v2241_v40 = vpop.permute.xlu0 %2240  ;;  %2292 = vmatprep.subr.bf16.mxu1 %v2274_v39 }
 0x443   : > { %v2206_v22 = vsel %vm653_vm3, %v2202_v46, %v4886_v23  ;;  %v2205_v61 = vsel %vm653_vm3, %v2200_v19, %v2202_v46  ;;  %v2166_v23 = vsel %vm698_vm1, %v4941_v10, %v2163_v59  ;;  %v2244_v44 = vsel %vm611_vm0, %v4950_v24, %v2241_v40  ;;  %2293 = vmatpush1.bf16.msra.mxu1 %v2273_v25 }
 0x444   : > { %v2276_v26 = vpack.c.bf16 %v2206_v22, %v2167_v20  ;;  %v2245_v62 = vsel %vm611_vm0, %v2241_v40, %v4890_v63  ;;  %v2275_v17 = vpack.c.bf16 %v2205_v61, %v2166_v23  ;;  %v2277_v30 = vpack.c.bf16 %v2244_v44, %v2244_v44 }
 0x445   : > { %v2278_v43 = vpack.c.bf16 %v2245_v62, %v2245_v62  ;;  %v2529_v1 = vmul.f32 %v2522_v50, %v4697_v18 }
 0x446   : > { %v2602_v51 = vpop.permute.xlu1 %2601  ;;  %2294 = vmatprep.subr.bf16.mxu1 %v2276_v26  ;;  %v2378_v52 = vpop.permute.xlu0 %2377  ;;  %v2283_v60 = vsel %vm1834_vm10, %v2277_v30, 0 }
 0x447   : > { %2295 = vmatpush1.bf16.msra.mxu1 %v2275_v17  ;;  %v2382_v29 = vsel %vm2381_vm13, %v4897_v48, %v2378_v52 }
 0x448   : > { %3736 = vmatprep.subr.msk.bf16.mxu1 %vm1834_vm10, %v2278_v43 }
 0x44a   : > { %v2380_v11 = vpop.permute.xlu1 %2379  ;;  %v2420_v10 = vpop.permute.xlu0 %2419 }
 0x44b   : > { %v2424_v24 = vsel %vm2423_vm12, %v4901_v3, %v2420_v10  ;;  %v2383_v27 = vsel %vm2381_vm13, %v2378_v52, %v2380_v11  ;;  %2297 = vmatpush1.bf16.msra.mxu1 %v2283_v60  ;;  %v5064_v52 = vld [vmem:[#allocation2] sm:$0xff] }
 0x44c   : > { %v2712_v57 = vpack.c.bf16 %v2424_v24, %v2382_v29 }
 0x44e   : > { %v2422_v45 = vpop.permute.xlu1 %2421  ;;  %v2462_v2 = vpop.permute.xlu0 %2461  ;;  %3737 = vmatmul.mubr.msk.bf16.vlgmr.msra.gmra.mrb[0].mxu1 %vm1830_vm11, %v2250_v38 }
 0x44f   : > { %v2425_v63 = vsel %vm2423_vm12, %v2420_v10, %v2422_v45  ;;  %v2466_v35 = vsel %vm2465_vm8, %v4908_v7, %v2462_v2  ;;  %vm5421_vm12 = vcmask 392192  }
 0x450   : > { %v2713_v33 = vpack.c.bf16 %v2425_v63, %v2383_v27  ;;  %vm5422_vm13 = vmmov %vm5421_vm12 }
 0x452   : > { %v2464_v47 = vpop.permute.xlu1 %2463  ;;  %2731 = vmatprep.subr.bf16.mxu0 %v2713_v33  ;;  %v2504_v32 = vpop.permute.xlu0 %2503 }
 0x453   : > { %2732 = vmatpush1.bf16.msra.mxu0 %v2712_v57  ;;  %v2508_v56 = vsel %vm2507_vm9, %v4917_v12, %v2504_v32  ;;  %v2467_v54 = vsel %vm2465_vm8, %v2462_v2, %v2464_v47  ;;  %v2530_v12 = vmul.f32 %v2526_v15, %v4709_v41 }
 0x454   : > { %v2714_v58 = vpack.c.bf16 %v2508_v56, %v2466_v35 }
 0x456   : > { %v2506_v3 = vpop.permute.xlu1 %2505  ;;  %v2562_v59 = vpop.permute.xlu0 %2561 }
 0x457   : > { %v2509_v48 = vsel %vm2507_vm9, %v2504_v32, %v2506_v3 }
 0x458   : > { %v2715_v9 = vpack.c.bf16 %v2509_v48, %v2467_v54 }
 0x45a   : > { %v2682_v53 = vpop.permute.xlu1 %2681  ;;  %2733 = vmatprep.subr.bf16.mxu0 %v2715_v9  ;;  %v2564_v8 = vpop.permute.xlu0 %2563 }
 0x45b   : > { %2734 = vmatpush1.bf16.msra.mxu0 %v2714_v58  ;;  %v2567_v46 = vsel %vm2490_vm15, %v2562_v59, %v2564_v8  ;;  %v2568_v7 = vsel %vm2490_vm15, %v2564_v8, %v4930_v16  ;;  %vm5423_vm15 = vcmask 351232  }
 0x45c   : > { %v2717_v34 = vpack.c.bf16 %v2568_v7, %v2530_v12  ;;  %v2716_v22 = vpack.c.bf16 %v2567_v46, %v2529_v1  ;;  %vm5424_vm8 = vmmov %vm5423_vm15 }
 0x45e   : > { %v2604_v19 = vpop.permute.xlu1 %2603  ;;  %v2642_v55 = vpop.permute.xlu0 %2641  ;;  %2735 = vmatprep.subr.bf16.mxu0 %v2717_v34 }
 0x45f   : > { %v2608_v0 = vsel %vm2448_vm14, %v2604_v19, %v4923_v13  ;;  %v2607_v41 = vsel %vm2448_vm14, %v2602_v51, %v2604_v19  ;;  %2736 = vmatpush1.bf16.msra.mxu0 %v2716_v22  ;;  %v2693_v51 = vld [vmem:[%s5355_s12] sm:$0xf] }
 0x462   : > { %v2644_v21 = vpop.permute.xlu1 %2643  ;;  %v2684_v16 = vpop.permute.xlu0 %2683 }
 0x463   : > { %v2648_v49 = vsel %vm5421_vm12, %v2644_v21, %v4937_v4  ;;  %v2647_v18 = vsel %vm5422_vm13, %v2642_v55, %v2644_v21  ;;  %v2687_v25 = vsel %vm5423_vm15, %v2682_v53, %v2684_v16 }
 0x464   : > { %v2719_v20 = vpack.c.bf16 %v2648_v49, %v2608_v0  ;;  %v2718_v61 = vpack.c.bf16 %v2647_v18, %v2607_v41  ;;  %v2720_v23 = vpack.c.bf16 %v2687_v25, %v2687_v25 }
 0x466   : > { %v2686_v39 = vpop.permute.xlu1 %2685  ;;  %2737 = vmatprep.subr.bf16.mxu0 %v2719_v20  ;;  %v2726_v4 = vsel %vm1834_vm10, %v2720_v23, 0  ;;  %v3751_v23 = vld [vmem:[%s5345_s2 + $0x4] ss:$8 sm:$0x3] }
 0x467   : > { %v2688_v26 = vsel %vm5424_vm8, %v2684_v16, %v2686_v39  ;;  %2738 = vmatpush1.bf16.msra.mxu0 %v2718_v61 }
 0x468   : > { %v2721_v13 = vpack.c.bf16 %v2688_v26, %v2688_v26 }
 0x46a   : > { %3746 = vmatprep.subr.msk.bf16.mxu0 %vm1834_vm10, %v2721_v13 }
 0x46b   : > { %2740 = vmatpush1.bf16.msra.mxu0 %v2726_v4 }
 0x46e   : > { %3747 = vmatmul.mubr.msk.bf16.vlgmr.msra.gmra.mrb[12].mxu0 %vm1830_vm11, %v2693_v51 }
 0x473   : > { %v5058_v44 = vpop.permute.xlu0 %2781 }
 0x477   : > { %v5056_v40 = vpop.permute.xlu1 %2338 }
 0x478   : > { %v2333_v17 = vpop.permute.xlu0 %2332 }
 0x47c   : > { %v5060_v62 = vpop.permute.xlu1 %2775  ;;  %v5068_v30 = vpop.permute.xlu0 %2842 }
 0x47d   : > { %v2850_v45 = vmul.f32 %v5064_v52, %v5068_v30 }
 0x47f   : > { %2856 = vrot.lane.b32.xlu1 %v2850_v45, %s5411_s23 }
 0x480   : > { %v5062_v11 = vpop.permute.xlu1 %2803  ;;  %v5076_v60 = vpop.permute.xlu0 %2881 }
 0x481   : > { %v2811_v43 = vmul.f32 %v5064_v52, %v5062_v11  ;;  %v2889_v24 = vmul.f32 %v5064_v52, %v5076_v60 }
 0x483   : > { %2817 = vrot.lane.b32.xlu0 %v2811_v43, %s5404_s1 }
 0x484   : > { %v5073_v10 = vpop.permute.xlu1 %2805  ;;  %v2921_v63 = vpop.permute.xlu0 %2920 }
 0x485   : > { %v2928_v38 = vmul.f32 %v5064_v52, %v2921_v63  ;;  %v2807_v51 = vsel %vm611_vm0, %v5062_v11, %v5073_v10  ;;  %v2957_v11 = vrot.slane %v3751_v23, %v3956_v6 }
 0x487   : > { %2895 = vrot.lane.b32.xlu0 %v2889_v24, %s5403_s26  ;;  %2934 = vrot.lane.b32.xlu1 %v2928_v38, %s5410_s27 }
 0x488   : > { %v5080_v27 = vpop.permute.xlu1 %2844  ;;  %v5087_v33 = vpop.permute.xlu0 %2977 }
 0x489   : > { %v2846_v43 = vsel %vm653_vm3, %v5068_v30, %v5080_v27 }
 0x48c   : > { %v5084_v29 = vpop.permute.xlu1 %2883  ;;  %v5091_v57 = vpop.permute.xlu0 %3016 }
 0x490   : > { %v5089_v47 = vpop.permute.xlu1 %2922  ;;  %v5094_v32 = vpop.permute.xlu0 %3055 }
 0x491   : > { %v2924_v24 = vsel %vm740_vm4, %v2921_v63, %v5089_v47 }
 0x494   : > { %v2980_v2 = vpop.permute.xlu1 %2979  ;;  %v5098_v54 = vpop.permute.xlu0 %3094 }
 0x495   : > { %v2987_v3 = vmul.f32 %v5064_v52, %v2980_v2  ;;  %v2981_v30 = vsel %vm760_vm5, %v5087_v33, %v2980_v2 }
 0x497   : > { %2995 = vrot.lane.b32.xlu1 %v2987_v3, %s5409_s21  ;;  %v2953_v3 = vrot.slane %v3751_v23, %v3954_v5 }
 0x498   : > { %v3019_v42 = vpop.permute.xlu1 %3018  ;;  %v5102_v9 = vpop.permute.xlu0 %3135 }
 0x499   : > { %v3026_v56 = vmul.f32 %v5064_v52, %v3019_v42  ;;  %v3143_v59 = vmul.f32 %v5064_v52, %v5102_v9 }
 0x49b   : > { %3034 = vrot.lane.b32.xlu0 %v3026_v56, %s5412_s22 }
 0x49c   : > { %v3058_v48 = vpop.permute.xlu1 %3057  ;;  %v5106_v15 = vpop.permute.xlu0 %3174 }
 0x49d   : > { %v3065_v35 = vmul.f32 %v5064_v52, %v3058_v48  ;;  %v3182_v50 = vmul.f32 %v5064_v52, %v5106_v15  ;;  %v3059_v63 = vsel %vm673_vm6, %v5094_v32, %v3058_v48 }
 0x49f   : > { %3073 = vrot.lane.b32.xlu0 %v3065_v35, %s5407_s30  ;;  %3188 = vrot.lane.b32.xlu1 %v3182_v50, %s5411_s23 }
 0x4a0   : > { %v3097_v53 = vpop.permute.xlu1 %3096  ;;  %v5116_v12 = vpop.permute.xlu0 %3213 }
 0x4a1   : > { %v3104_v58 = vmul.f32 %v5064_v52, %v3097_v53  ;;  %v3221_v1 = vmul.f32 %v5064_v52, %v5116_v12 }
 0x4a3   : > { %3112 = vrot.lane.b32.xlu0 %v3104_v58, %s5413_s29 }
 0x4a4   : > { %v5113_v19 = vpop.permute.xlu1 %3137  ;;  %v5123_v46 = vpop.permute.xlu0 %3252 }
 0x4a5   : > { %v3260_v7 = vmul.f32 %v5064_v52, %v5123_v46 }
 0x4a7   : > { %3149 = vrot.lane.b32.xlu0 %v3143_v59, %s5404_s1  ;;  %3266 = vrot.lane.b32.xlu1 %v3260_v7, %s5410_s27  ;;  %v3098_v59 = vsel %vm628_vm7, %v5098_v54, %v3097_v53 }
 0x4a8   : > { %v5121_v8 = vpop.permute.xlu1 %3176 }
 0x4ab   : > { %3227 = vrot.lane.b32.xlu0 %v3221_v1, %s5403_s26 }
 0x4ac   : > { %v5128_v34 = vpop.permute.xlu1 %3215 }
 0x4b0   : > { %v5131_v22 = vpop.permute.xlu1 %3254 }
 0x4b4   : > { %v5133_v21 = vpop.permute.xlu1 %3311 }
 0x4b5   : > { %v3319_v55 = vmul.f32 %v5064_v52, %v5133_v21 }
 0x4b7   : > { %3327 = vrot.lane.b32.xlu1 %v3319_v55, %s5409_s21 }
 0x4b8   : > { %v5138_v0 = vpop.permute.xlu1 %3350 }
 0x4b9   : > { %v3358_v49 = vmul.f32 %v5064_v52, %v5138_v0 }
 0x4bb   : > { %3366 = vrot.lane.b32.xlu1 %v3358_v49, %s5412_s22 }
 0x4bc   : > { %v5143_v41 = vpop.permute.xlu1 %3389 }
 0x4bd   : > { %v3397_v18 = vmul.f32 %v5064_v52, %v5143_v41 }
 0x4bf   : > { %3405 = vrot.lane.b32.xlu1 %v3397_v18, %s5407_s30 }
 0x521   : > { %v2322_v20 = vpop.f32.mrb[0].mxu1 }
 0x522   : > { %v2335_v61 = vmul.f32 %v2333_v17, %v2322_v20  ;;  %v2324_v39 = vpop.f32.mrb[1].mxu1 }
 0x523   : > { %v2336_v16 = vmul.f32 %v2333_v17, %v2324_v39  ;;  %v2326_v25 = vpop.f32.mrb[2].mxu1  ;;  %v2885_v17 = vsel %vm698_vm1, %v5076_v60, %v5084_v29  ;;  %v3020_v60 = vsel %vm715_vm2, %v5091_v57, %v3019_v42 }
 0x524   : > { %v2341_v26 = vadd.f32 %v5056_v40, %v2335_v61  ;;  %v2327_v13 = vpop.f32.mrb[3].mxu1 }
 0x525   : > { %v2342_v4 = vadd.f32 %v5056_v40, %v2336_v16 }
 0x526   : > { %v2343_v45 = vmax.f32 %v2341_v26, 0.0 }
 0x527   : > { %v2344_v38 = vmax.f32 %v2342_v4, 0.0  ;;  %v3139_v4 = vsel %vm611_vm0, %v5102_v9, %v5113_v19  ;;  %v3256_v9 = vsel %vm740_vm4, %v5123_v46, %v5131_v22 }
 0x528   : > { %v2812_v40 = vmul.f32 %v2807_v51, %v2343_v45  ;;  %v3024_v56 = vmul.f32 %v5091_v57, %v2343_v45  ;;  %v2851_v35 = vmul.f32 %v2846_v43, %v2343_v45  ;;  %v2890_v58 = vmul.f32 %v2885_v17, %v2343_v45 }
 0x529   : > { %v2929_v50 = vmul.f32 %v2924_v24, %v2343_v45  ;;  %v2986_v1 = vmul.f32 %v2981_v30, %v2344_v38  ;;  %v3025_v7 = vmul.f32 %v3020_v60, %v2344_v38  ;;  %v3064_v55 = vmul.f32 %v3059_v63, %v2344_v38  ;;  %v3429_v30 = vpop.permute.xlu1 %3428 }
 0x52a   : > { %2819 = vrot.lane.b32.xlu0 %v2812_v40, %s5404_s1  ;;  %3030 = vrot.lane.b32.xlu1 %v3024_v56, %s5412_s22  ;;  %v3102_v49 = vmul.f32 %v5098_v54, %v2343_v45  ;;  %v3103_v18 = vmul.f32 %v3098_v59, %v2344_v38  ;;  %v5178_v2 = vmul.f32 %v2957_v11, %v2344_v38  ;;  %v3310_v54 = vpop.permute.xlu0 %3309 }
 0x52b   : > { %v5180_v20 = vmul.f32 %v2953_v3, %v2343_v45  ;;  %v2813_v57 = vmul.f32 %v5073_v10, %v2344_v38  ;;  %v2852_v42 = vmul.f32 %v5080_v27, %v2344_v38  ;;  %v2985_v48 = vmul.f32 %v5087_v33, %v2343_v45 }
 0x52c   : > { %2963 = vst [vmem:[#allocation3 + $0x48] sm:$0xff] %v5178_v2  ;;  %v2891_v53 = vmul.f32 %v5084_v29, %v2344_v38  ;;  %v3063_v10 = vmul.f32 %v5094_v32, %v2343_v45  ;;  %v2930_v61 = vmul.f32 %v5089_v47, %v2344_v38  ;;  %v3759_v32 = vld [vmem:[%s5345_s2 + $0x4] ss:$8 sm:$0x3]  ;;  %v3217_v3 = vsel %vm698_vm1, %v5116_v12, %v5128_v34 }
 0x52d   : > { %2962 = vst [vmem:[#allocation3 + $0x40] sm:$0xff] %v5180_v20  ;;  %v3285_v45 = vrot.slane %v3759_v32, %v3954_v5  ;;  %v3289_v38 = vrot.slane %v3759_v32, %v3956_v6  ;;  %v3436_v60 = vmul.f32 %v5064_v52, %v3429_v30 }
 0x52e   : > { %2858 = vrot.lane.b32.xlu0 %v2851_v35, %s5411_s23  ;;  %3108 = vrot.lane.b32.xlu1 %v3102_v49, %s5413_s29  ;;  %v3349_v39 = vpop.permute.xlu0 %3348  ;;  %v2857_v49 = vpop.permute.xlu1 %2856 }
 0x52f   : > { %v3352_v40 = vsel %vm715_vm2, %v3349_v39, %v5138_v0 }
 0x532   : > { %2897 = vrot.lane.b32.xlu0 %v2890_v58, %s5403_s26  ;;  %2821 = vrot.lane.b32.xlu1 %v2813_v57, %s5404_s1  ;;  %v3388_v51 = vpop.permute.xlu0 %3387 }
 0x533   : > { %v3391_v56 = vsel %vm673_vm6, %v3388_v51, %v5143_v41 }
 0x536   : > { %2936 = vrot.lane.b32.xlu0 %v2929_v50, %s5410_s27  ;;  %2860 = vrot.lane.b32.xlu1 %v2852_v42, %s5411_s23 }
 0x53a   : > { %2991 = vrot.lane.b32.xlu0 %v2985_v48, %s5409_s21  ;;  %2899 = vrot.lane.b32.xlu1 %v2891_v53, %s5403_s26 }
 0x53e   : > { %3069 = vrot.lane.b32.xlu0 %v3063_v10, %s5407_s30  ;;  %2938 = vrot.lane.b32.xlu1 %v2930_v61, %s5410_s27 }
 0x541   : > { %v2765_v16 = vpop.f32.mrb[12].mxu0 }
 0x542   : > { %v2778_v27 = vmul.f32 %v5060_v62, %v2765_v16  ;;  %v2767_v25 = vpop.f32.mrb[13].mxu0  ;;  %2993 = vrot.lane.b32.xlu0 %v2986_v1, %s5409_s21  ;;  %3032 = vrot.lane.b32.xlu1 %v3025_v7, %s5412_s22 }
 0x543   : > { %v2779_v33 = vmul.f32 %v5060_v62, %v2767_v25  ;;  %v2769_v29 = vpop.f32.mrb[14].mxu0  ;;  %v3178_v62 = vsel %vm653_vm3, %v5106_v15, %v5121_v8  ;;  %v3313_v15 = vsel %vm760_vm5, %v3310_v54, %v5133_v21 }
 0x544   : > { %v2784_v26 = vadd.f32 %v5058_v44, %v2778_v27  ;;  %v2770_v13 = vpop.f32.mrb[15].mxu0 }
 0x545   : > { %v2785_v47 = vadd.f32 %v5058_v44, %v2779_v33 }
 0x546   : > { %v2786_v23 = vmax.f32 %v2784_v26, 0.0  ;;  %3071 = vrot.lane.b32.xlu1 %v3064_v55, %s5407_s30  ;;  %v3557_v55 = vld [vmem:[%s5358_s15] sm:$0xff] }
 0x547   : > { %v2787_v43 = vmax.f32 %v2785_v47, 0.0 }
 0x548   : > { %3120 = vst [vmem:[#allocation2 + $0x8] sm:$0xff] %v2786_v23  ;;  %v3317_v17 = vmul.f32 %v3310_v54, %v2786_v23  ;;  %v3144_v44 = vmul.f32 %v3139_v4, %v2786_v23  ;;  %v3183_v24 = vmul.f32 %v3178_v62, %v2786_v23  ;;  %v3222_v6 = vmul.f32 %v3217_v3, %v2786_v23 }
 0x549   : > { %3121 = vst [vmem:[#allocation2 + $0x10] sm:$0xff] %v2787_v43  ;;  %v3261_v12 = vmul.f32 %v3256_v9, %v2786_v23  ;;  %v3318_v35 = vmul.f32 %v3313_v15, %v2787_v43  ;;  %v3357_v11 = vmul.f32 %v3352_v40, %v2787_v43  ;;  %v3396_v58 = vmul.f32 %v3391_v56, %v2787_v43 }
 0x54a   : > { %3323 = vrot.lane.b32.xlu0 %v3317_v17, %s5409_s21  ;;  %v3145_v46 = vmul.f32 %v5113_v19, %v2787_v43  ;;  %v5232_v50 = vmul.f32 %v3289_v38, %v2787_v43  ;;  %v5234_v21 = vmul.f32 %v3285_v45, %v2786_v23  ;;  %3110 = vrot.lane.b32.xlu1 %v3103_v18, %s5413_s29  ;;  %v2935_v18 = vpop.permute.xlu1 %2934 }
 0x54b   : > { %v3184_v0 = vmul.f32 %v5121_v8, %v2787_v43  ;;  %v3223_v41 = vmul.f32 %v5128_v34, %v2787_v43  ;;  %v3262_v19 = vmul.f32 %v5131_v22, %v2787_v43  ;;  %v3427_v8 = vpop.permute.xlu0 %3426  ;;  %v3356_v34 = vmul.f32 %v3349_v39, %v2786_v23  ;;  %v5255_v22 = vld [vmem:[%s5357_s14] sm:$0xff] }
 0x54c   : > { %v3430_v63 = vsel %vm628_vm7, %v3427_v8, %v3429_v30  ;;  %v3765_v52 = vcombine.high %v5255_v22, %v5255_v22  ;;  %v3434_v59 = vmul.f32 %v3427_v8, %v2786_v23  ;;  %v3395_v7 = vmul.f32 %v3388_v51, %v2786_v23 }
 0x54d   : > { %v3435_v1 = vmul.f32 %v3430_v63, %v2787_v43 }
 0x54e   : > { %3153 = vrot.lane.b32.xlu0 %v3145_v46, %s5404_s1  ;;  %3151 = vrot.lane.b32.xlu1 %v3144_v44, %s5404_s1  ;;  %v2996_v42 = vpop.permute.xlu1 %2995 }
 0x54f   : > { %3766 = vmatprep.mubr.msk.bf16.mxu1 %vm673_vm6, %v3765_v52  ;;  %v2818_v57 = vpop.permute.xlu0 %2817 }
 0x552   : > { %3192 = vrot.lane.b32.xlu0 %v3184_v0, %s5411_s23  ;;  %3190 = vrot.lane.b32.xlu1 %v3183_v24, %s5411_s23  ;;  %v5270_v48 = vpop.permute.xlu1 %3188 }
 0x553   : > { %v2896_v54 = vpop.permute.xlu0 %2895 }
 0x556   : > { %3231 = vrot.lane.b32.xlu0 %v3223_v41, %s5403_s26  ;;  %3229 = vrot.lane.b32.xlu1 %v3222_v6, %s5403_s26  ;;  %v5272_v10 = vpop.permute.xlu1 %3266 }
 0x557   : > { %v3035_v53 = vpop.permute.xlu0 %3034 }
 0x55a   : > { %3270 = vrot.lane.b32.xlu0 %v3262_v19, %s5410_s27  ;;  %3268 = vrot.lane.b32.xlu1 %v3261_v12, %s5410_s27  ;;  %v5274_v39 = vpop.permute.xlu1 %3327 }
 0x55b   : > { %v3074_v61 = vpop.permute.xlu0 %3073 }
 0x55e   : > { %3325 = vrot.lane.b32.xlu0 %v3318_v35, %s5409_s21  ;;  %3444 = vrot.lane.b32.xlu1 %v3436_v60, %s5413_s29  ;;  %v5276_v27 = vpop.permute.xlu1 %3366 }
 0x55f   : > { %v3113_v16 = vpop.permute.xlu0 %3112 }
 0x562   : > { %3364 = vrot.lane.b32.xlu0 %v3357_v11, %s5412_s22  ;;  %3362 = vrot.lane.b32.xlu1 %v3356_v34, %s5412_s22  ;;  %v5280_v33 = vpop.permute.xlu1 %3405 }
 0x563   : > { %v5278_v25 = vpop.permute.xlu0 %3149 }
 0x566   : > { %3403 = vrot.lane.b32.xlu0 %v3396_v58, %s5407_s30  ;;  %3440 = vrot.lane.b32.xlu1 %v3434_v59, %s5413_s29 }
 0x56a   : > { %3442 = vrot.lane.b32.xlu0 %v3435_v1, %s5413_s29  ;;  %3566 = vperm.xlu1 %3807, %v3557_v55  }
 0x56e   : > { %3401 = vrot.lane.b32.xlu0 %v3395_v7, %s5407_s30  ;;  %s5425_s30 = sshll.u32 %s5427_s25, 4 }
 0x56f   : > { %s581_s29 = scalar_lea.vmem %s5360_s17, %s5425_s30 }
 0x572   : > { %3560 = vperm.xlu0 %3806, %v3557_v55  }
 0x576   : > { %3808 = vset.pattern.permute.xlu0 %v3840_v31  ;;  %v5282_v31 = vpop.permute.xlu0 %3227 }
 0x59c   : > { %v2820_v29 = vpop.permute.xlu0 %2819  ;;  %v3031_v26 = vpop.permute.xlu1 %3030 }
 0x59d   : > { %v2823_v13 = vsel %vm628_vm7, %v2818_v57, %v2820_v29 }
 0x59e   : > { %2827 = vst [vmem:[#allocation3] sm:$0xff] %v2823_v13 }
 0x5a0   : > { %v2859_v32 = vpop.permute.xlu0 %2858  ;;  %v3109_v47 = vpop.permute.xlu1 %3108 }
 0x5a1   : > { %v2862_v23 = vsel %vm673_vm6, %v2857_v49, %v2859_v32 }
 0x5a2   : > { %2866 = vst [vmem:[#allocation3 + $0x10] sm:$0xff] %v2862_v23  ;;  %v3489_v3 = vpack.c.bf16 %v2862_v23, %v2823_v13 }
 0x5a4   : > { %v2898_v4 = vpop.permute.xlu0 %2897  ;;  %v2822_v62 = vpop.permute.xlu1 %2821 }
 0x5a5   : > { %v2901_v51 = vsel %vm715_vm2, %v2896_v54, %v2898_v4  ;;  %v2824_v43 = vsel %vm628_vm7, %v2820_v29, %v2822_v62 }
 0x5a6   : > { %2905 = vst [vmem:[#allocation3 + $0x20] sm:$0xff] %v2901_v51  ;;  %2828 = vst [vmem:[#allocation3 + $0x8] sm:$0xff] %v2824_v43 }
 0x5a8   : > { %v2937_v45 = vpop.permute.xlu0 %2936  ;;  %v2861_v17 = vpop.permute.xlu1 %2860 }
 0x5a9   : > { %v2940_v44 = vsel %vm760_vm5, %v2935_v18, %v2937_v45  ;;  %v2863_v24 = vsel %vm673_vm6, %v2859_v32, %v2861_v17 }
 0x5aa   : > { %2944 = vst [vmem:[#allocation3 + $0x30] sm:$0xff] %v2940_v44  ;;  %2867 = vst [vmem:[#allocation3 + $0x18] sm:$0xff] %v2863_v24  ;;  %v3490_v38 = vpack.c.bf16 %v2863_v24, %v2824_v43  ;;  %v3491_v11 = vpack.c.bf16 %v2940_v44, %v2901_v51 }
 0x5ac   : > { %v2992_v9 = vpop.permute.xlu0 %2991  ;;  %v2900_v15 = vpop.permute.xlu1 %2899  ;;  %3516 = vmatprep.subr.bf16.mxu1 %v3490_v38 }
 0x5ad   : > { %v2902_v40 = vsel %vm715_vm2, %v2898_v4, %v2900_v15  ;;  %3517 = vmatpush1.bf16.msra.mxu1 %v3489_v3 }
 0x5ae   : > { %2906 = vst [vmem:[#allocation3 + $0x28] sm:$0xff] %v2902_v40 }
 0x5b0   : > { %v3070_v56 = vpop.permute.xlu0 %3069  ;;  %v2939_v6 = vpop.permute.xlu1 %2938 }
 0x5b1   : > { %v2941_v12 = vsel %vm760_vm5, %v2937_v45, %v2939_v6 }
 0x5b2   : > { %2945 = vst [vmem:[#allocation3 + $0x38] sm:$0xff] %v2941_v12  ;;  %v3492_v35 = vpack.c.bf16 %v2941_v12, %v2902_v40 }
 0x5b4   : > { %v2994_v58 = vpop.permute.xlu0 %2993  ;;  %v3033_v46 = vpop.permute.xlu1 %3032  ;;  %3518 = vmatprep.subr.bf16.mxu1 %v3492_v35 }
 0x5b5   : > { %v2997_v0 = vsel %vm740_vm4, %v2992_v9, %v2994_v58  ;;  %v2998_v41 = vsel %vm740_vm4, %v2994_v58, %v2996_v42  ;;  %v3036_v19 = vsel %vm698_vm1, %v3031_v26, %v3033_v46  ;;  %v3037_v30 = vsel %vm698_vm1, %v3033_v46, %v3035_v53  ;;  %3519 = vmatpush1.bf16.msra.mxu1 %v3491_v11 }
 0x5b6   : > { %v3494_v60 = vpack.c.bf16 %v2998_v41, %v5178_v2  ;;  %v3493_v8 = vpack.c.bf16 %v2997_v0, %v5180_v20  ;;  %v3764_v0 = vcombine.low %v5255_v22, %v5255_v22 }
 0x5b8   : > { %v3072_v34 = vpop.permute.xlu1 %3071  ;;  %3520 = vmatprep.subr.bf16.mxu1 %v3494_v60 }
 0x5b9   : > { %v3075_v52 = vsel %vm653_vm3, %v3070_v56, %v3072_v34  ;;  %v3076_v59 = vsel %vm653_vm3, %v3072_v34, %v3074_v61  ;;  %3521 = vmatpush1.bf16.msra.mxu1 %v3493_v8 }
 0x5ba   : > { %v3496_v1 = vpack.c.bf16 %v3076_v59, %v3037_v30  ;;  %v3495_v7 = vpack.c.bf16 %v3075_v52, %v3036_v19 }
 0x5bc   : > { %v3324_v63 = vpop.permute.xlu0 %3323  ;;  %v3111_v55 = vpop.permute.xlu1 %3110  ;;  %3522 = vmatprep.subr.bf16.mxu1 %v3496_v1 }
 0x5bd   : > { %v3114_v18 = vsel %vm611_vm0, %v3109_v47, %v3111_v55  ;;  %v3115_v57 = vsel %vm611_vm0, %v3111_v55, %v3113_v16  ;;  %3523 = vmatpush1.bf16.msra.mxu1 %v3495_v7 }
 0x5c0   : > { %v3154_v49 = vpop.permute.xlu0 %3153  ;;  %v3152_v2 = vpop.permute.xlu1 %3151 }
 0x5c1   : > { %v3155_v42 = vsel %vm628_vm7, %v5278_v25, %v3152_v2  ;;  %v3156_v54 = vsel %vm628_vm7, %v3152_v2, %v3154_v49 }
 0x5c2   : > { %v3498_v53 = vpack.c.bf16 %v3156_v54, %v3115_v57  ;;  %v3497_v61 = vpack.c.bf16 %v3155_v42, %v3114_v18 }
 0x5c4   : > { %v3193_v20 = vpop.permute.xlu0 %3192  ;;  %v3191_v29 = vpop.permute.xlu1 %3190  ;;  %3524 = vmatprep.subr.bf16.mxu1 %v3498_v53 }
 0x5c5   : > { %v3194_v13 = vsel %vm673_vm6, %v5270_v48, %v3191_v29  ;;  %v3195_v32 = vsel %vm673_vm6, %v3191_v29, %v3193_v20  ;;  %3525 = vmatpush1.bf16.msra.mxu1 %v3497_v61 }
 0x5c8   : > { %v3232_v26 = vpop.permute.xlu0 %3231  ;;  %v3230_v16 = vpop.permute.xlu1 %3229 }
 0x5c9   : > { %v3233_v23 = vsel %vm715_vm2, %v5282_v31, %v3230_v16  ;;  %v3234_v25 = vsel %vm715_vm2, %v3230_v16, %v3232_v26 }
 0x5ca   : > { %v3500_v4 = vpack.c.bf16 %v3234_v25, %v3195_v32  ;;  %v3499_v62 = vpack.c.bf16 %v3233_v23, %v3194_v13 }
 0x5cc   : > { %v3271_v47 = vpop.permute.xlu0 %3270  ;;  %v3269_v51 = vpop.permute.xlu1 %3268  ;;  %3526 = vmatprep.subr.bf16.mxu1 %v3500_v4 }
 0x5cd   : > { %v3272_v45 = vsel %vm760_vm5, %v5272_v10, %v3269_v51  ;;  %v3273_v48 = vsel %vm760_vm5, %v3269_v51, %v3271_v47  ;;  %3527 = vmatpush1.bf16.msra.mxu1 %v3499_v62 }
 0x5ce   : > { %v3502_v31 = vpack.c.bf16 %v5232_v50, %v3273_v48  ;;  %v3501_v24 = vpack.c.bf16 %v5234_v21, %v3272_v45 }
 0x5d0   : > { %v3326_v43 = vpop.permute.xlu0 %3325  ;;  %v3445_v38 = vpop.permute.xlu1 %3444  ;;  %3528 = vmatprep.subr.bf16.mxu1 %v3502_v31 }
 0x5d1   : > { %v3329_v17 = vsel %vm740_vm4, %v3324_v63, %v3326_v43  ;;  %v3330_v44 = vsel %vm740_vm4, %v3326_v43, %v5274_v39  ;;  %3529 = vmatpush1.bf16.msra.mxu1 %v3501_v24 }
 0x5d4   : > { %v3365_v3 = vpop.permute.xlu0 %3364  ;;  %v3363_v15 = vpop.permute.xlu1 %3362 }
 0x5d5   : > { %v3369_v9 = vsel %vm698_vm1, %v3365_v3, %v5276_v27  ;;  %v3368_v56 = vsel %vm698_vm1, %v3363_v15, %v3365_v3 }
 0x5d6   : > { %v3504_v10 = vpack.c.bf16 %v3369_v9, %v3330_v44  ;;  %v3503_v6 = vpack.c.bf16 %v3368_v56, %v3329_v17 }
 0x5d8   : > { %v3404_v40 = vpop.permute.xlu0 %3403  ;;  %3530 = vmatprep.subr.bf16.mxu1 %v3504_v10  ;;  %v3441_v50 = vpop.permute.xlu1 %3440 }
 0x5d9   : > { %v3408_v39 = vsel %vm653_vm3, %v3404_v40, %v5280_v33  ;;  %3531 = vmatpush1.bf16.msra.mxu1 %v3503_v6 }
 0x5dc   : > { %v3443_v12 = vpop.permute.xlu0 %3442 }
 0x5dd   : > { %v3446_v21 = vsel %vm611_vm0, %v3441_v50, %v3443_v12  ;;  %v3447_v35 = vsel %vm611_vm0, %v3443_v12, %v3445_v38 }
 0x5de   : > { %v3506_v11 = vpack.c.bf16 %v3447_v35, %v3408_v39 }
 0x5e0   : > { %v3402_v27 = vpop.permute.xlu0 %3401  ;;  %3532 = vmatprep.subr.bf16.mxu1 %v3506_v11 }
 0x5e1   : > { %v3407_v58 = vsel %vm653_vm3, %v3402_v27, %v3404_v40 }
 0x5e2   : > { %v3505_v46 = vpack.c.bf16 %v3446_v21, %v3407_v58 }
 0x5e4   : > { %3533 = vmatpush1.bf16.msra.mxu1 %v3505_v46 }
 0x5e7   : > { %3549 = vmatmul.mubr.bf16.vlgmr.msra.gmra.mrb[4].mxu1 %v3764_v0 }
 0x5e9   : > { %v3567_v19 = vpop.permute.xlu1 %3566 }
 0x5f1   : > { %v3561_v33 = vpop.permute.xlu0 %3560 }
 0x6ba   : > { %v3550_v41 = vpop.f32.mrb[4].mxu1 }
 0x6bb   : > { %v3563_v30 = vmul.f32 %v3561_v33, %v3550_v41  ;;  %v3552_v60 = vpop.f32.mrb[5].mxu1 }
 0x6bc   : > { %v3564_v8 = vmul.f32 %v3561_v33, %v3552_v60  ;;  %v3554_v34 = vpop.f32.mrb[6].mxu1 }
 0x6bd   : > { %v3569_v63 = vadd.f32 %v3567_v19, %v3563_v30  ;;  %v3555_v52 = vpop.f32.mrb[7].mxu1 }
 0x6be   : > { %v3570_v59 = vadd.f32 %v3567_v19, %v3564_v8 }
 0x6bf   : > { %v3574_v1 = vrot.slane %v3569_v63, %v3954_v5 }
 0x6c0   : > { %v3578_v22 = vrot.slane %v3570_v59, %v3954_v5 }
 0x6c1   : > { %v3579_v7 = vmul.f32 %v3574_v1, %v1467_v37 }
 0x6c2   : > { %v3580_v55 = vmul.f32 %v3578_v22, %v1468_v28 }
 0x6c3   : > { %3581 = vst [vmem:[%s581_s29] sm:$0xff] %v3579_v7 }
 0x6c4   : > { %3582 = vst [vmem:[%s581_s29 + $0x8] sm:$0xff] %v3580_v55 }
 0x6c5 PF: > { %s28_s24 = sadd.s32 1, %s3829_s24  }
 0x6c6   : > { %p25_p4 = scmp.ge.s32.totalorder %s28_s24, 4  }
 0x6c8   :  { %27 = sbr.rel (!%p25_p4) target bundleno = 7 (0x7), region = 145 }

</bundles_post_ra>
